<compile_context>
chip_gen: v7x
topology: tpu7x:2x2x1
jax: 0.10.0
libtpu: 0.0.40
codegen_flags: <defaults>
</compile_context>

<pallas_src>
import functools

import jax
import jax.numpy as jnp
from jax import lax
from jax.experimental import pallas as pl
from jax.experimental.pallas import tpu as pltpu

E = 512            # embed dim (nn.MultiheadAttention(512, 8))
NH = 8             # attention heads (only the reference needs them; softmax==1 at S=1)
HID = 1024         # fc hidden width
SEQ = 1            # max_size + 1  (BatchNorm1d(1) forces seq_len == 1)
EPS = 1e-5         # BatchNorm1d default eps
VMEM_LIMIT = 32 * 1024 * 1024
FUSE_ROWS = 1024   # fused single-kernel path when B*S <= FUSE_ROWS


# --------------------------------------------------------------------------- #
# Fused single-kernel path (small batches): everything stays in VMEM.
# --------------------------------------------------------------------------- #
def _fused_kernel(x_ref, wa_ref, ba_ref, w1_ref, b1_ref, w2_ref, b2_ref, bn_ref,
                  o_ref, *, inv_count):
    x = x_ref[...]                                                    # (n, E) f32
    # seq_len == 1: softmax over one key == 1 -> attention == out_proj(V(x)) (folded).
    attn = jnp.dot(x.astype(jnp.bfloat16), wa_ref[...],
                   preferred_element_type=jnp.float32) + ba_ref[...]
    out = attn + x

    # BatchNorm1d(1), training-mode batch statistics over all N*L elements.
    mu1 = jnp.sum(out) * inv_count
    var1 = jnp.sum(out * out) * inv_count - mu1 * mu1
    a1 = bn_ref[0] * lax.rsqrt(var1 + EPS)
    c1 = bn_ref[1] - mu1 * a1
    xn = out * a1 + c1

    h = jnp.dot(xn.astype(jnp.bfloat16), w1_ref[...],
                preferred_element_type=jnp.float32) + b1_ref[...]
    h = jnp.maximum(h, 0.0)                                           # ReLU
    # TODO(synk): nn.Dropout(0.5) and the 0.1 attention dropout are stochastic;
    # implemented as identity (eval-mode dropout semantics).
    y = jnp.dot(h.astype(jnp.bfloat16), w2_ref[...],
                preferred_element_type=jnp.float32) + b2_ref[...]
    z = y + out

    mu2 = jnp.sum(z) * inv_count
    var2 = jnp.sum(z * z) * inv_count - mu2 * mu2
    a2 = bn_ref[2] * lax.rsqrt(var2 + EPS)
    c2 = bn_ref[3] - mu2 * a2
    o_ref[...] = z * a2 + c2


# --------------------------------------------------------------------------- #
# Tiled 3-pass path (large batches).
# Grid = (nsplit, row_blocks_per_split): leading axis "parallel" (megacore),
# trailing axis "arbitrary" (resident stat accumulators).
# --------------------------------------------------------------------------- #
def _attn_kernel(x_ref, wa_ref, ba_ref, out_ref, s_ref, q_ref):
    """out = folded_attn(x) + x ; stream BN1 sum / sumsq into a per-split row."""
    x = x_ref[...]                                                    # (TM, E) f32
    attn = jnp.dot(x.astype(jnp.bfloat16), wa_ref[...],
                   preferred_element_type=jnp.float32) + ba_ref[...]
    out = attn + x
    out_ref[...] = out

    @pl.when(pl.program_id(1) == 0)
    def _():
        s_ref[...] = jnp.zeros_like(s_ref)
        q_ref[...] = jnp.zeros_like(q_ref)

    s_ref[...] += jnp.sum(out, axis=0, keepdims=True)
    q_ref[...] += jnp.sum(out * out, axis=0, keepdims=True)


def _ffn_kernel(aff1_ref, out_ref, w1_ref, b1_ref, w2_ref, b2_ref,
                z_ref, s_ref, q_ref):
    """z = fc2(relu(fc1(BN1(out)))) + out ; BN1 scale/shift precomputed in SMEM."""
    out = out_ref[...]                                                # (TM, E) f32
    xn = out * aff1_ref[0] + aff1_ref[1]

    h = jnp.dot(xn.astype(jnp.bfloat16), w1_ref[...],
                preferred_element_type=jnp.float32) + b1_ref[...]
    h = jnp.maximum(h, 0.0)
    # TODO(synk): dropout implemented as identity (eval-mode semantics).
    y = jnp.dot(h.astype(jnp.bfloat16), w2_ref[...],
                preferred_element_type=jnp.float32) + b2_ref[...]
    z = y + out
    z_ref[...] = z.astype(z_ref.dtype)                                # bf16 to HBM

    @pl.when(pl.program_id(1) == 0)
    def _():
        s_ref[...] = jnp.zeros_like(s_ref)
        q_ref[...] = jnp.zeros_like(q_ref)

    s_ref[...] += jnp.sum(z, axis=0, keepdims=True)
    q_ref[...] += jnp.sum(z * z, axis=0, keepdims=True)


def _norm_kernel(aff2_ref, z_ref, o_ref):
    """Final BatchNorm1d(1) as a pure affine with precomputed scale/shift."""
    o_ref[...] = z_ref[...].astype(jnp.float32) * aff2_ref[0] + aff2_ref[1]


def _bn_affine(s, q, gamma, beta, inv_count):
    """Tiny XLA finalize of streamed stats -> (scale, shift) pair for SMEM."""
    mu = jnp.sum(s) * inv_count
    var = jnp.sum(q) * inv_count - mu * mu
    a = gamma * lax.rsqrt(var + EPS)
    c = beta - mu * a
    return jnp.stack([a, c]).astype(jnp.float32)                      # (2,)


def _pick_block_rows(n_rows):
    # 512-row tiles sit at the measured HBM-pipelining sweet spot and keep the
    # pass-2 live set (~10 MiB with double buffering) inside every chip's VMEM.
    for tm in (512, 256, 128, 64, 32, 16, 8):
        if n_rows % tm == 0:
            return tm
    return n_rows


def encoder_forward(x, kernel_params, block_rows=None, fuse_threshold=FUSE_ROWS):
    B, S, Emb = x.shape
    assert S == SEQ and Emb == E
    n = B * S
    x2d = x.reshape(n, E)
    inv_count = 1.0 / float(n * E)      # BN1d(1) batch stats over N*L = (B*S)*E

    (wa, ba, w1, b1, w2, b2, bn) = kernel_params
    f32 = jnp.float32
    smem = pl.BlockSpec(memory_space=pltpu.MemorySpace.SMEM)

    # ---------------- fused fast path: whole activation lives in VMEM ----------
    if n <= fuse_threshold:
        full = lambda shape: pl.BlockSpec(shape, lambda i: (0, 0))
        o2d = pl.pallas_call(
            functools.partial(_fused_kernel, inv_count=inv_count),
            grid=(1,),
            in_specs=[full((n, E)), full((E, E)), full((1, E)),
                      full((E, HID)), full((1, HID)),
                      full((HID, E)), full((1, E)), smem],
            out_specs=full((n, E)),
            out_shape=jax.ShapeDtypeStruct((n, E), f32),
            compiler_params=pltpu.CompilerParams(
                dimension_semantics=("arbitrary",), vmem_limit_bytes=VMEM_LIMIT),
        )(x2d, wa, ba, w1, b1, w2, b2, bn)
        return o2d.reshape(B, S, E)

    # ---------------- tiled 3-pass path ----------------------------------------
    tm = block_rows if block_rows is not None else _pick_block_rows(n)
    assert n % tm == 0, f"row tile {tm} must divide {n}"
    # TODO(synk): non-divisible batch sizes would need a cdiv grid + masked remainder.
    n_blocks = n // tm
    nsplit = 2 if n_blocks % 2 == 0 else 1        # 2-way core split when possible
    bpc = n_blocks // nsplit

    row = pl.BlockSpec((tm, E), lambda c, i: (c * bpc + i, 0))       # streamed rows
    stat = pl.BlockSpec((1, E), lambda c, i: (0, c))                 # per-split stats
    pin = lambda shape: pl.BlockSpec(shape, lambda c, i: (0, 0))     # resident weights
    params2 = pltpu.CompilerParams(
        dimension_semantics=("parallel", "arbitrary"), vmem_limit_bytes=VMEM_LIMIT)

    # Pass 1: folded attention + residual; stream BN1 sum / sumsq per split.
    out2d, s1, q1 = pl.pallas_call(
        _attn_kernel,
        grid=(nsplit, bpc),
        in_specs=[row, pin((E, E)), pin((1, E))],
        out_specs=(row, stat, stat),
        out_shape=(jax.ShapeDtypeStruct((n, E), f32),
                   jax.ShapeDtypeStruct((1, nsplit * E), f32),
                   jax.ShapeDtypeStruct((1, nsplit * E), f32)),
        compiler_params=params2,
    )(x2d, wa, ba)

    aff1 = _bn_affine(s1, q1, bn[0], bn[1], inv_count)   # hoisted BN1 finalize

    # Pass 2: BN1-apply -> Linear(512,1024) -> ReLU -> Linear(1024,512) + residual;
    # stream BN2 stats; z stored as bf16 (residual source `out2d` stays f32).
    z2d, s2, q2 = pl.pallas_call(
        _ffn_kernel,
        grid=(nsplit, bpc),
        in_specs=[smem, row, pin((E, HID)), pin((1, HID)),
                  pin((HID, E)), pin((1, E))],
        out_specs=(row, stat, stat),
        out_shape=(jax.ShapeDtypeStruct((n, E), jnp.bfloat16),
                   jax.ShapeDtypeStruct((1, nsplit * E), f32),
                   jax.ShapeDtypeStruct((1, nsplit * E), f32)),
        compiler_params=params2,
    )(aff1, out2d, w1, b1, w2, b2)

    aff2 = _bn_affine(s2, q2, bn[2], bn[3], inv_count)   # hoisted BN2 finalize

    # Pass 3: final BatchNorm1d(1) as a pure affine. Fully parallel row axis.
    row1 = pl.BlockSpec((tm, E), lambda i: (i, 0))
    o2d = pl.pallas_call(
        _norm_kernel,
        grid=(n_blocks,),
        in_specs=[smem, row1],
        out_specs=row1,
        out_shape=jax.ShapeDtypeStruct((n, E), f32),
        compiler_params=pltpu.CompilerParams(
            dimension_semantics=("parallel",), vmem_limit_bytes=VMEM_LIMIT),
    )(aff2, z2d)

    return o2d.reshape(B, S, E)


def init_params(key):
    ks = jax.random.split(key, 8)
    scale = 0.02
    # PyTorch parameter shapes (f32 masters, used by the reference).
    in_proj_w = scale * jax.random.normal(ks[0], (3 * E, E), jnp.float32)
    in_proj_b = scale * jax.random.normal(ks[1], (3 * E,), jnp.float32)
    out_proj_w = scale * jax.random.normal(ks[2], (E, E), jnp.float32)
    out_proj_b = scale * jax.random.normal(ks[3], (E,), jnp.float32)
    fc1_w = scale * jax.random.normal(ks[4], (HID, E), jnp.float32)
    fc1_b = scale * jax.random.normal(ks[5], (HID,), jnp.float32)
    fc2_w = scale * jax.random.normal(ks[6], (E, HID), jnp.float32)
    fc2_b = scale * jax.random.normal(ks[7], (E,), jnp.float32)
    # BatchNorm1d(1) affine params, PyTorch defaults: gamma=1, beta=0.
    bn = jnp.array([1.0, 0.0, 1.0, 0.0], jnp.float32)   # [g1, b1, g2, b2]

    # seq_len == 1 => attention == out_proj(V(x)); fold V-proj and out_proj
    # offline in f32, then cast the folded weight to bf16 (MXU-native).
    v_w = in_proj_w[2 * E:, :]                 # (E, E), PyTorch out x in
    v_b = in_proj_b[2 * E:]
    w_attn = v_w.T @ out_proj_w.T              # (E_in, E_out) f32
    b_attn = v_b @ out_proj_w.T + out_proj_b   # (E,) f32

    bf16 = jnp.bfloat16
    kernel_params = (w_attn.astype(bf16), b_attn.reshape(1, E).astype(jnp.float32),
                     fc1_w.T.astype(bf16), fc1_b.reshape(1, HID),
                     fc2_w.T.astype(bf16), fc2_b.reshape(1, E),
                     bn)
    torch_like_params = (in_proj_w, in_proj_b, out_proj_w, out_proj_b,
                         fc1_w, fc1_b, fc2_w, fc2_b, bn)
    return kernel_params, torch_like_params


def reference_forward(x, torch_params):
    """Pure-JAX f32 mirror of the PyTorch forward (full per-head attention +
    softmax, batch-statistics BatchNorm, dropout disabled)."""
    (in_w, in_b, out_w, out_b, w1, b1, w2, b2, bn) = torch_params
    B, S, _ = x.shape
    Dh = E // NH
    qkv = x @ in_w.T + in_b                              # (B, S, 3E)
    q, k, v = jnp.split(qkv, 3, axis=-1)

    def heads(t):
        return t.reshape(B, S, NH, Dh).transpose(0, 2, 1, 3)   # (B, H, S, Dh)

    qh, kh, vh = heads(q), heads(k), heads(v)
    scores = (qh @ kh.transpose(0, 1, 3, 2)) / jnp.sqrt(jnp.float32(Dh))
    w = jax.nn.softmax(scores, axis=-1)
    ctx = (w @ vh).transpose(0, 2, 1, 3).reshape(B, S, E)
    attn = ctx @ out_w.T + out_b
    out = attn + x

    def bn1d(t, g, beta):
        mu = jnp.mean(t, axis=(0, 2), keepdims=True)
        var = jnp.mean((t - mu) ** 2, axis=(0, 2), keepdims=True)
        return (t - mu) * lax.rsqrt(var + EPS) * g + beta

    xn = bn1d(out, bn[0], bn[1])
    h = jnp.maximum(xn @ w1.T + b1, 0.0)
    y = h @ w2.T + b2
    return bn1d(y + out, bn[2], bn[3])


if __name__ == "__main__":
    key = jax.random.PRNGKey(0)
    kp, kx1, kx2 = jax.random.split(key, 3)
    kernel_params, torch_params = init_params(kp)

    # Small batch -> fused single-kernel VMEM-resident path.
    B1 = 32
    x1 = jax.random.normal(kx1, (B1, SEQ, E), jnp.float32)
    y1 = jax.block_until_ready(encoder_forward(x1, kernel_params))
    y1_ref = reference_forward(x1, torch_params)
    assert y1.shape == (B1, SEQ, E)
    assert jnp.allclose(y1, y1_ref, atol=4e-2, rtol=4e-2), \
        f"fused path max abs err {float(jnp.max(jnp.abs(y1 - y1_ref)))}"

    # Larger batch forced through the tiled 3-pass path: 2-way core split,
    # streamed BN stats across row tiles, bf16 inter-pass activation.
    B2 = 64
    x2 = jax.random.normal(kx2, (B2, SEQ, E), jnp.float32)
    y2 = jax.block_until_ready(
        encoder_forward(x2, kernel_params, block_rows=16, fuse_threshold=0))
    y2_ref = reference_forward(x2, torch_params)
    assert y2.shape == (B2, SEQ, E)
    assert jnp.allclose(y2, y2_ref, atol=4e-2, rtol=4e-2), \
        f"tiled path max abs err {float(jnp.max(jnp.abs(y2 - y2_ref)))}"

    print("KERNEL_OK")
</pallas_src>

<mosaic_0001>
module attributes {stable_mosaic.version = 11 : i64} {
  func.func @_fused_kernel(%arg0: i32, %arg1: memref<32x512xf32, #tpu.memory_space<vmem>>, %arg2: memref<512x512xbf16, #tpu.memory_space<vmem>>, %arg3: memref<1x512xf32, #tpu.memory_space<vmem>>, %arg4: memref<512x1024xbf16, #tpu.memory_space<vmem>>, %arg5: memref<1x1024xf32, #tpu.memory_space<vmem>>, %arg6: memref<1024x512xbf16, #tpu.memory_space<vmem>>, %arg7: memref<1x512xf32, #tpu.memory_space<vmem>>, %arg8: memref<4xf32, #tpu.memory_space<smem>>, %arg9: memref<32x512xf32, #tpu.memory_space<vmem>>) attributes {dimension_semantics = [#tpu.dimension_semantics<arbitrary>], iteration_bounds = array<i64: 1>, scalar_prefetch = 0 : i64, scratch_operands = 0 : i64, tpu.core_type = #tpu.core_type<tc>, window_params = [{pipeline_mode = #tpu.pipeline_mode<synchronous>, transform_indices = @transform_0, window_bounds = array<i64: 32, 512>}, {pipeline_mode = #tpu.pipeline_mode<synchronous>, transform_indices = @transform_1, window_bounds = array<i64: 512, 512>}, {pipeline_mode = #tpu.pipeline_mode<synchronous>, transform_indices = @transform_2, window_bounds = array<i64: 1, 512>}, {pipeline_mode = #tpu.pipeline_mode<synchronous>, transform_indices = @transform_3, window_bounds = array<i64: 512, 1024>}, {pipeline_mode = #tpu.pipeline_mode<synchronous>, transform_indices = @transform_4, window_bounds = array<i64: 1, 1024>}, {pipeline_mode = #tpu.pipeline_mode<synchronous>, transform_indices = @transform_5, window_bounds = array<i64: 1024, 512>}, {pipeline_mode = #tpu.pipeline_mode<synchronous>, transform_indices = @transform_6, window_bounds = array<i64: 1, 512>}, {transform_indices = @transform_7, window_bounds = array<i64: 4>}, {pipeline_mode = #tpu.pipeline_mode<synchronous>, transform_indices = @transform_8, window_bounds = array<i64: 32, 512>}]} {
    %c0 = arith.constant 0 : index
    %c0_0 = arith.constant 0 : index
    %0 = vector.load %arg1[%c0, %c0_0] : memref<32x512xf32, #tpu.memory_space<vmem>>, vector<32x512xf32>
    %1 = arith.truncf %0 : vector<32x512xf32> to vector<32x512xbf16>
    %c0_1 = arith.constant 0 : index
    %c0_2 = arith.constant 0 : index
    %2 = vector.load %arg2[%c0_1, %c0_2] : memref<512x512xbf16, #tpu.memory_space<vmem>>, vector<512x512xbf16>
    %cst = arith.constant dense<0.000000e+00> : vector<32x512xf32>
    %3 = tpu.matmul %1, %2, %cst {dimension_numbers = #tpu.dot_dimension_numbers<[1], [0], [0], [1], [0, 0, 1, 1], [], []>} : vector<32x512xbf16>, vector<512x512xbf16>, vector<32x512xf32> -> vector<32x512xf32>
    %c0_3 = arith.constant 0 : index
    %c0_4 = arith.constant 0 : index
    %4 = vector.load %arg3[%c0_3, %c0_4] : memref<1x512xf32, #tpu.memory_space<vmem>>, vector<1x512xf32>
    %5 = vector.broadcast %4 : vector<1x512xf32> to vector<32x512xf32>
    %6 = arith.addf %3, %5 : vector<32x512xf32>
    %7 = arith.addf %6, %0 : vector<32x512xf32>
    %8 = vector.shape_cast %7 : vector<32x512xf32> to vector<1x32x512xf32>
    %cst_5 = arith.constant dense<0.000000e+00> : vector<1xf32>
    %9 = vector.multi_reduction <add>, %8, %cst_5 [1, 2] : vector<1x32x512xf32> to vector<1xf32>
    %10 = vector.shape_cast %9 : vector<1xf32> to vector<1x1x1xf32>
    %11 = vector.extract %10[0, 0, 0] : f32 from vector<1x1x1xf32>
    %cst_6 = arith.constant 6.10351563E-5 : f32
    %12 = arith.mulf %11, %cst_6 : f32
    %13 = arith.mulf %7, %7 : vector<32x512xf32>
    %14 = vector.shape_cast %13 : vector<32x512xf32> to vector<1x32x512xf32>
    %cst_7 = arith.constant dense<0.000000e+00> : vector<1xf32>
    %15 = vector.multi_reduction <add>, %14, %cst_7 [1, 2] : vector<1x32x512xf32> to vector<1xf32>
    %16 = vector.shape_cast %15 : vector<1xf32> to vector<1x1x1xf32>
    %17 = vector.extract %16[0, 0, 0] : f32 from vector<1x1x1xf32>
    %cst_8 = arith.constant 6.10351563E-5 : f32
    %18 = arith.mulf %17, %cst_8 : f32
    %19 = arith.mulf %12, %12 : f32
    %20 = arith.subf %18, %19 : f32
    %c0_9 = arith.constant 0 : index
    %21 = memref.load %arg8[%c0_9] : memref<4xf32, #tpu.memory_space<smem>>
    %cst_10 = arith.constant 9.99999974E-6 : f32
    %22 = arith.addf %20, %cst_10 : f32
    %23 = math.rsqrt %22 : f32
    %24 = arith.mulf %21, %23 : f32
    %c1 = arith.constant 1 : index
    %25 = memref.load %arg8[%c1] : memref<4xf32, #tpu.memory_space<smem>>
    %26 = arith.mulf %12, %24 : f32
    %27 = arith.subf %25, %26 : f32
    %28 = vector.broadcast %24 : f32 to vector<32x512xf32>
    %29 = arith.mulf %7, %28 : vector<32x512xf32>
    %30 = vector.broadcast %27 : f32 to vector<32x512xf32>
    %31 = arith.addf %29, %30 : vector<32x512xf32>
    %32 = arith.truncf %31 : vector<32x512xf32> to vector<32x512xbf16>
    %c0_11 = arith.constant 0 : index
    %c0_12 = arith.constant 0 : index
    %33 = vector.load %arg4[%c0_11, %c0_12] : memref<512x1024xbf16, #tpu.memory_space<vmem>>, vector<512x1024xbf16>
    %cst_13 = arith.constant dense<0.000000e+00> : vector<32x1024xf32>
    %34 = tpu.matmul %32, %33, %cst_13 {dimension_numbers = #tpu.dot_dimension_numbers<[1], [0], [0], [1], [0, 0, 1, 1], [], []>} : vector<32x512xbf16>, vector<512x1024xbf16>, vector<32x1024xf32> -> vector<32x1024xf32>
    %c0_14 = arith.constant 0 : index
    %c0_15 = arith.constant 0 : index
    %35 = vector.load %arg5[%c0_14, %c0_15] : memref<1x1024xf32, #tpu.memory_space<vmem>>, vector<1x1024xf32>
    %36 = vector.broadcast %35 : vector<1x1024xf32> to vector<32x1024xf32>
    %37 = arith.addf %34, %36 : vector<32x1024xf32>
    %cst_16 = arith.constant 0.000000e+00 : f32
    %38 = vector.broadcast %cst_16 : f32 to vector<32x1024xf32>
    %39 = arith.maximumf %37, %38 : vector<32x1024xf32>
    %40 = arith.truncf %39 : vector<32x1024xf32> to vector<32x1024xbf16>
    %c0_17 = arith.constant 0 : index
    %c0_18 = arith.constant 0 : index
    %41 = vector.load %arg6[%c0_17, %c0_18] : memref<1024x512xbf16, #tpu.memory_space<vmem>>, vector<1024x512xbf16>
    %cst_19 = arith.constant dense<0.000000e+00> : vector<32x512xf32>
    %42 = tpu.matmul %40, %41, %cst_19 {dimension_numbers = #tpu.dot_dimension_numbers<[1], [0], [0], [1], [0, 0, 1, 1], [], []>} : vector<32x1024xbf16>, vector<1024x512xbf16>, vector<32x512xf32> -> vector<32x512xf32>
    %c0_20 = arith.constant 0 : index
    %c0_21 = arith.constant 0 : index
    %43 = vector.load %arg7[%c0_20, %c0_21] : memref<1x512xf32, #tpu.memory_space<vmem>>, vector<1x512xf32>
    %44 = vector.broadcast %43 : vector<1x512xf32> to vector<32x512xf32>
    %45 = arith.addf %42, %44 : vector<32x512xf32>
    %46 = arith.addf %45, %7 : vector<32x512xf32>
    %47 = vector.shape_cast %46 : vector<32x512xf32> to vector<1x32x512xf32>
    %cst_22 = arith.constant dense<0.000000e+00> : vector<1xf32>
    %48 = vector.multi_reduction <add>, %47, %cst_22 [1, 2] : vector<1x32x512xf32> to vector<1xf32>
    %49 = vector.shape_cast %48 : vector<1xf32> to vector<1x1x1xf32>
    %50 = vector.extract %49[0, 0, 0] : f32 from vector<1x1x1xf32>
    %cst_23 = arith.constant 6.10351563E-5 : f32
    %51 = arith.mulf %50, %cst_23 : f32
    %52 = arith.mulf %46, %46 : vector<32x512xf32>
    %53 = vector.shape_cast %52 : vector<32x512xf32> to vector<1x32x512xf32>
    %cst_24 = arith.constant dense<0.000000e+00> : vector<1xf32>
    %54 = vector.multi_reduction <add>, %53, %cst_24 [1, 2] : vector<1x32x512xf32> to vector<1xf32>
    %55 = vector.shape_cast %54 : vector<1xf32> to vector<1x1x1xf32>
    %56 = vector.extract %55[0, 0, 0] : f32 from vector<1x1x1xf32>
    %cst_25 = arith.constant 6.10351563E-5 : f32
    %57 = arith.mulf %56, %cst_25 : f32
    %58 = arith.mulf %51, %51 : f32
    %59 = arith.subf %57, %58 : f32
    %c2 = arith.constant 2 : index
    %60 = memref.load %arg8[%c2] : memref<4xf32, #tpu.memory_space<smem>>
    %cst_26 = arith.constant 9.99999974E-6 : f32
    %61 = arith.addf %59, %cst_26 : f32
    %62 = math.rsqrt %61 : f32
    %63 = arith.mulf %60, %62 : f32
    %c3 = arith.constant 3 : index
    %64 = memref.load %arg8[%c3] : memref<4xf32, #tpu.memory_space<smem>>
    %65 = arith.mulf %51, %63 : f32
    %66 = arith.subf %64, %65 : f32
    %67 = vector.broadcast %63 : f32 to vector<32x512xf32>
    %68 = arith.mulf %46, %67 : vector<32x512xf32>
    %69 = vector.broadcast %66 : f32 to vector<32x512xf32>
    %70 = arith.addf %68, %69 : vector<32x512xf32>
    %c0_27 = arith.constant 0 : index
    %c0_28 = arith.constant 0 : index
    %71 = vector.load %arg9[%c0_27, %c0_28] : memref<32x512xf32, #tpu.memory_space<vmem>>, vector<32x512xf32>
    tpu.vector_store %arg9[%c0_27, %c0_28], %70 {strides = array<i32>} : memref<32x512xf32, #tpu.memory_space<vmem>>, vector<32x512xf32>,
    return
  }
  func.func @transform_0(%arg0: i32) -> (i32, i32) {
    %c0_i32 = arith.constant 0 : i32
    %c0_i32_0 = arith.constant 0 : i32
    %c0_i32_1 = arith.constant 0 : i32
    return %c0_i32, %c0_i32_0 : i32, i32
  }
  func.func @transform_1(%arg0: i32) -> (i32, i32) {
    %c0_i32 = arith.constant 0 : i32
    %c0_i32_0 = arith.constant 0 : i32
    %c0_i32_1 = arith.constant 0 : i32
    return %c0_i32, %c0_i32_0 : i32, i32
  }
  func.func @transform_2(%arg0: i32) -> (i32, i32) {
    %c0_i32 = arith.constant 0 : i32
    %c0_i32_0 = arith.constant 0 : i32
    %c0_i32_1 = arith.constant 0 : i32
    return %c0_i32, %c0_i32_0 : i32, i32
  }
  func.func @transform_3(%arg0: i32) -> (i32, i32) {
    %c0_i32 = arith.constant 0 : i32
    %c0_i32_0 = arith.constant 0 : i32
    %c0_i32_1 = arith.constant 0 : i32
    return %c0_i32, %c0_i32_0 : i32, i32
  }
  func.func @transform_4(%arg0: i32) -> (i32, i32) {
    %c0_i32 = arith.constant 0 : i32
    %c0_i32_0 = arith.constant 0 : i32
    %c0_i32_1 = arith.constant 0 : i32
    return %c0_i32, %c0_i32_0 : i32, i32
  }
  func.func @transform_5(%arg0: i32) -> (i32, i32) {
    %c0_i32 = arith.constant 0 : i32
    %c0_i32_0 = arith.constant 0 : i32
    %c0_i32_1 = arith.constant 0 : i32
    return %c0_i32, %c0_i32_0 : i32, i32
  }
  func.func @transform_6(%arg0: i32) -> (i32, i32) {
    %c0_i32 = arith.constant 0 : i32
    %c0_i32_0 = arith.constant 0 : i32
    %c0_i32_1 = arith.constant 0 : i32
    return %c0_i32, %c0_i32_0 : i32, i32
  }
  func.func @transform_7(%arg0: i32) -> i32 {
    %c0_i32 = arith.constant 0 : i32
    %c0_i32_0 = arith.constant 0 : i32
    return %c0_i32 : i32
  }
  func.func @transform_8(%arg0: i32) -> (i32, i32) {
    %c0_i32 = arith.constant 0 : i32
    %c0_i32_0 = arith.constant 0 : i32
    %c0_i32_1 = arith.constant 0 : i32
    return %c0_i32, %c0_i32_0 : i32, i32
  }
}

</mosaic_0001>

<bundles_post_ra>
// kernel: tpu_custom_call.1
= control target key start
LH: loop header
LB: loop body
LE: loop exit
PB: predicated region body
PF: predicated region fallthrough
CT: control target
= control target key end

     0   :  { %13 = vsyncpa [#allocation3], 0  ;;  %s7634_s0 = inlined_call_operand.hbm [shape: f32[32,512], index: 0, kind: input, shape index: {}]   ;;  %s7635_s1 = inlined_call_operand.hbm [shape: bf16[512,512], index: 1, kind: input, shape index: {}]   ;;  %s7636_s2 = inlined_call_operand.vmem [shape: f32[1,512], index: 2, kind: input, shape index: {}]   ;;  %s7637_s3 = inlined_call_operand.hbm [shape: bf16[512,1024], index: 3, kind: input, shape index: {}]   ;;  %s7638_s4 = inlined_call_operand.vmem [shape: f32[1,1024], index: 4, kind: input, shape index: {}]   ;;  %s7639_s5 = inlined_call_operand.hbm [shape: bf16[1024,512], index: 5, kind: input, shape index: {}]   ;;  %s7640_s6 = inlined_call_operand.vmem [shape: f32[1,512], index: 6, kind: input, shape index: {}]   ;;  %s7641_s7 = inlined_call_operand.vmem [shape: f32[4], index: 7, kind: input, shape index: {}]   ;;  %s7642_s8 = inlined_call_operand.hbm [shape: f32[32,512], index: 8, kind: output, shape index: {}]  }
   0x1   :  { %14 = vsyncpa [#allocation7], 0 }
   0x2   :  { %15 = vsyncpa [#allocation10], 0 }
   0x3   :  { %16 = vsyncpa [#allocation5], 0 }
   0x4   :  { %17 = vsyncpa [#allocation4], 0  ;;  %s6993_s27 = smov [#allocation6]   ;;  %s6861_s9 = scalar_lea.hbm %s7635_s1, 16384 }
   0x5   :  { %s35_s28 = sshll.u32 %s6993_s27, 4  ;;  %p6862_p0 = scmp.ne.s32.totalorder %s7635_s1, %s6861_s9  ;;  %s36_s28 = int_to_ptr.vmem [resolvable:$true] %s35_s28 }
   0x6   :  { %p6865_p1 = scmp.lt.u32.totalorder %s6861_s9, %s7635_s1 }
   0x8   :  { %p6867_p2 = pnand %p6865_p1, %p6862_p0 }
   0xa   :  { %6870 = shalt.err (!%p6867_p2)
}
   0xb   :  { %s6871_s14 = scalar_lea.vmem %s36_s28, 16384  ;;  %p6876_p4 = scmp.lt.s32.totalorder %s36_s28, %s36_s28 }
   0xc   :  { %p6872_p3 = scmp.ne.s32.totalorder %s36_s28, %s6871_s14  ;;  %p6877_p5 = scmp.lt.s32.totalorder %s6871_s14, %s6871_s14 }
   0xe   :  { %p6878_p6 = por %p6877_p5, %p6876_p4 }
  0x10   :  { %p6879_p7 = pnand %p6878_p6, %p6872_p3 }
  0x12   :  { %6882 = shalt.err (!%p6879_p7)
}
  0x13   :  { %s6994_s15 = smov 256   ;;  %s6995_s16 = smov 16  }
  0x14   :  { %41 = dma.hbm_to_vmem [thread:$0]  %s7635_s1, 16384, %s36_s28, [#allocation7], %s6994_s15, %s6994_s15, %s6995_s16  }
  0x15   :  { %s6996_s19 = smov [#allocation2]   ;;  %s6883_s23 = scalar_lea.hbm %s7634_s0, 2048 }
  0x16   :  { %s23_s20 = sshll.u32 %s6996_s19, 4  ;;  %p6884_p8 = scmp.ne.s32.totalorder %s7634_s0, %s6883_s23  ;;  %s24_s20 = int_to_ptr.vmem [resolvable:$true] %s23_s20 }
  0x17   :  { %p6887_p9 = scmp.lt.u32.totalorder %s6883_s23, %s7634_s0 }
  0x19   :  { %p6889_p10 = pnand %p6887_p9, %p6884_p8 }
  0x1b   :  { %6892 = shalt.err (!%p6889_p10)
}
  0x1c   :  { %s6893_s29 = scalar_lea.vmem %s24_s20, 2048  ;;  %p6898_p12 = scmp.lt.s32.totalorder %s24_s20, %s24_s20 }
  0x1d   :  { %p6894_p11 = scmp.ne.s32.totalorder %s24_s20, %s6893_s29  ;;  %p6899_p13 = scmp.lt.s32.totalorder %s6893_s29, %s6893_s29 }
  0x1f   :  { %p6900_p0 = por %p6899_p13, %p6898_p12 }
  0x21   :  { %p6901_p1 = pnand %p6900_p0, %p6894_p11 }
  0x23   :  { %6904 = shalt.err (!%p6901_p1)
}
  0x24   :  { %s6997_s1 = smov 512   ;;  %s6998_s28 = smov 32  }
  0x25   :  { %29 = dma.hbm_to_vmem [thread:$0]  %s7634_s0, 2048, %s24_s20, [#allocation3], %s6997_s1, %s6997_s1, %s6998_s28  }
  0x26   :  { %s6999_s10 = smov [#allocation8]   ;;  %s7000_s12 = smov [#allocation9]  }
  0x27   :  { %s49_s11 = sshll.u32 %s6999_s10, 4  ;;  %s63_s13 = sshll.u32 %s7000_s12, 4  ;;  %s50_s11 = int_to_ptr.vmem [resolvable:$true] %s49_s11  ;;  %s7078_s13 = int_to_ptr.vmem [resolvable:$true] %s63_s13 }
  0x28   :  { %s6905_s18 = scalar_lea.hbm %s7637_s3, 32768 }
  0x29   :  { %p6906_p2 = scmp.ne.s32.totalorder %s7637_s3, %s6905_s18  ;;  %p6909_p3 = scmp.lt.u32.totalorder %s6905_s18, %s7637_s3 }
  0x2b   :  { %p6911_p4 = pnand %p6909_p3, %p6906_p2 }
  0x2d   :  { %6914 = shalt.err (!%p6911_p4)
}
  0x2e   :  { %s6915_s0 = scalar_lea.vmem %s50_s11, 32768  ;;  %p6920_p6 = scmp.lt.s32.totalorder %s50_s11, %s50_s11 }
  0x2f   :  { %p6916_p5 = scmp.ne.s32.totalorder %s50_s11, %s6915_s0  ;;  %p6921_p7 = scmp.lt.s32.totalorder %s6915_s0, %s6915_s0 }
  0x31   :  { %p6922_p8 = por %p6921_p7, %p6920_p6 }
  0x33   :  { %p6923_p9 = pnand %p6922_p8, %p6916_p5 }
  0x35   :  { %6926 = shalt.err (!%p6923_p9)
}
  0x36   :  { %55 = dma.hbm_to_vmem [thread:$0]  %s7637_s3, 32768, %s50_s11, [#allocation7], %s6997_s1, %s6997_s1, %s6998_s28  }
  0x37   :  { %s6927_s27 = scalar_lea.hbm %s7639_s5, 32768 }
  0x38   :  { %p6928_p10 = scmp.ne.s32.totalorder %s7639_s5, %s6927_s27  ;;  %p6931_p11 = scmp.lt.u32.totalorder %s6927_s27, %s7639_s5 }
  0x3a   :  { %p6933_p12 = pnand %p6931_p11, %p6928_p10 }
  0x3c   :  { %6936 = shalt.err (!%p6933_p12)
}
  0x3d   :  { %s6937_s12 = scalar_lea.vmem %s7078_s13, 32768  ;;  %p6942_p0 = scmp.lt.s32.totalorder %s7078_s13, %s7078_s13 }
  0x3e   :  { %p6938_p13 = scmp.ne.s32.totalorder %s7078_s13, %s6937_s12  ;;  %p6943_p1 = scmp.lt.s32.totalorder %s6937_s12, %s6937_s12 }
  0x40   :  { %p6944_p2 = por %p6943_p1, %p6942_p0 }
  0x42   :  { %p6945_p3 = pnand %p6944_p2, %p6938_p13 }
  0x44   :  { %6948 = shalt.err (!%p6945_p3)
}
  0x45   :  { %69 = dma.hbm_to_vmem [thread:$0]  %s7639_s5, 32768, %s7078_s13, [#allocation10], %s6994_s15, %s6994_s15, %s6995_s16  }
  0x46   :  { %s78_s18 = sshll.u32 %s7641_s7, 4  ;;  %s79_s18 = int_to_ptr.vmem [resolvable:$true] %s78_s18 }
  0x47   :  { %s6949_s19 = scalar_lea.vmem %s79_s18, 16  ;;  %p6954_p5 = scmp.lt.s32.totalorder %s79_s18, %s79_s18 }
  0x48   :  { %p6950_p4 = scmp.ne.s32.totalorder %s79_s18, %s6949_s19  ;;  %p6955_p6 = scmp.lt.s32.totalorder %s6949_s19, %s6949_s19 }
  0x4a   :  { %p6956_p7 = por %p6955_p6, %p6954_p5 }
  0x4c   :  { %p6957_p8 = pnand %p6956_p7, %p6950_p4 }
  0x4e   :  { %6960 = shalt.err (!%p6957_p8)
}
  0x4f   :  { %s7001_s21 = smov [#allocation11]  }
  0x50   :  { %81 = dma.vmem_to_smem %s79_s18, 16, %s7001_s21, [#allocation5]  }
  0x51   :  { %6983 = dma.done.wait [#allocation3], 2048  }
  0x52   :  { %6984 = vsyncadd [#allocation3], 4294965248 }
  0x53   :  { %6985 = dma.done.wait [#allocation7], 49152  }
  0x54   :  { %6986 = vsyncadd [#allocation7], 4294918144 }
  0x55   :  { %6987 = dma.done.wait [#allocation10], 32768  }
  0x56   :  { %6988 = vsyncadd [#allocation10], 4294934528 }
  0x57   :  { %6989 = dma.done.wait [#allocation5], 16  }
  0x58   :  { %6990 = vsyncadd [#allocation5], 4294967280 }
  0x59   :  { %97 = sfence }
  0x5a   :  { %v6279_v0 = vld [vmem:[#allocation6 + $0x4] ss:$16 sps:$4 sm:$0xff]   ;;  %v6281_v1 = vld [vmem:[#allocation6 + $0xc] ss:$16 sps:$4 sm:$0xff]   ;;  %v6283_v2 = vld [vmem:[#allocation6] ss:$16 sps:$4 sm:$0xff]  }
  0x5b   :  { %912 = vmatprep.subr.bf16.mxu0 %v6279_v0  ;;  %v6284_v3 = vld [vmem:[#allocation6 + $0x8] ss:$16 sps:$4 sm:$0xff]   ;;  %1018 = vmatprep.subr.bf16.mxu1 %v6281_v1  ;;  %v6285_v4 = vld [vmem:[#allocation6 + $0x24] ss:$16 sps:$4 sm:$0xff]   ;;  %v6287_v5 = vld [vmem:[#allocation6 + $0x2c] ss:$16 sps:$4 sm:$0xff]  }
  0x5c   :  { %913 = vmatpush1.bf16.msra.mxu0 %v6283_v2  ;;  %1019 = vmatpush1.bf16.msra.mxu1 %v6284_v3  ;;  %v6289_v6 = vld [vmem:[#allocation6 + $0x20] ss:$16 sps:$4 sm:$0xff]   ;;  %v6290_v7 = vld [vmem:[#allocation6 + $0x28] ss:$16 sps:$4 sm:$0xff]   ;;  %v6291_v8 = vld [vmem:[#allocation6 + $0x44] ss:$16 sps:$4 sm:$0xff]  }
  0x5d   :  { %914 = vmatprep.subr.bf16.mxu0 %v6285_v4  ;;  %1020 = vmatprep.subr.bf16.mxu1 %v6287_v5  ;;  %v6293_v9 = vld [vmem:[#allocation6 + $0x4c] ss:$16 sps:$4 sm:$0xff]   ;;  %v6295_v10 = vld [vmem:[#allocation6 + $0x40] ss:$16 sps:$4 sm:$0xff]   ;;  %v6296_v11 = vld [vmem:[#allocation6 + $0x48] ss:$16 sps:$4 sm:$0xff]  }
  0x5e   :  { %v6297_v12 = vld [vmem:[#allocation6 + $0x64] ss:$16 sps:$4 sm:$0xff]   ;;  %v6299_v13 = vld [vmem:[#allocation6 + $0x6c] ss:$16 sps:$4 sm:$0xff]   ;;  %v6301_v14 = vld [vmem:[#allocation6 + $0x60] ss:$16 sps:$4 sm:$0xff]  }
  0x5f   :  { %v6302_v15 = vld [vmem:[#allocation6 + $0x68] ss:$16 sps:$4 sm:$0xff]   ;;  %v6303_v16 = vld [vmem:[#allocation6 + $0x84] ss:$16 sps:$4 sm:$0xff]   ;;  %v6305_v17 = vld [vmem:[#allocation6 + $0x8c] ss:$16 sps:$4 sm:$0xff]  }
  0x60   :  { %915 = vmatpush1.bf16.msra.mxu0 %v6289_v6  ;;  %1021 = vmatpush1.bf16.msra.mxu1 %v6290_v7  ;;  %v6307_v18 = vld [vmem:[#allocation6 + $0x80] ss:$16 sps:$4 sm:$0xff]   ;;  %v6308_v19 = vld [vmem:[#allocation6 + $0x88] ss:$16 sps:$4 sm:$0xff]   ;;  %v6309_v20 = vld [vmem:[#allocation6 + $0xa4] ss:$16 sps:$4 sm:$0xff]  }
  0x61   :  { %916 = vmatprep.subr.bf16.mxu0 %v6291_v8  ;;  %1022 = vmatprep.subr.bf16.mxu1 %v6293_v9  ;;  %v6311_v21 = vld [vmem:[#allocation6 + $0xac] ss:$16 sps:$4 sm:$0xff]   ;;  %v6313_v22 = vld [vmem:[#allocation6 + $0xa0] ss:$16 sps:$4 sm:$0xff]   ;;  %v6314_v23 = vld [vmem:[#allocation6 + $0xa8] ss:$16 sps:$4 sm:$0xff]  }
  0x62   :  { %v6315_v24 = vld [vmem:[#allocation6 + $0xc4] ss:$16 sps:$4 sm:$0xff]   ;;  %v6317_v25 = vld [vmem:[#allocation6 + $0xcc] ss:$16 sps:$4 sm:$0xff]   ;;  %v6319_v26 = vld [vmem:[#allocation6 + $0xc0] ss:$16 sps:$4 sm:$0xff]  }
  0x63   :  { %v6320_v27 = vld [vmem:[#allocation6 + $0xc8] ss:$16 sps:$4 sm:$0xff]   ;;  %v6321_v28 = vld [vmem:[#allocation6 + $0xe4] ss:$16 sps:$4 sm:$0xff]   ;;  %v6323_v29 = vld [vmem:[#allocation6 + $0xec] ss:$16 sps:$4 sm:$0xff]  }
  0x64   :  { %917 = vmatpush1.bf16.msra.mxu0 %v6295_v10  ;;  %1023 = vmatpush1.bf16.msra.mxu1 %v6296_v11  ;;  %v6325_v30 = vld [vmem:[#allocation6 + $0xe0] ss:$16 sps:$4 sm:$0xff]   ;;  %v6326_v31 = vld [vmem:[#allocation6 + $0xe8] ss:$16 sps:$4 sm:$0xff]   ;;  %v6327_v32 = vld [vmem:[#allocation6 + $0x104] ss:$16 sps:$4 sm:$0xff]  }
  0x65   :  { %918 = vmatprep.subr.bf16.mxu0 %v6297_v12  ;;  %1024 = vmatprep.subr.bf16.mxu1 %v6299_v13  ;;  %v6329_v33 = vld [vmem:[#allocation6 + $0x10c] ss:$16 sps:$4 sm:$0xff]   ;;  %v6331_v34 = vld [vmem:[#allocation6 + $0x100] ss:$16 sps:$4 sm:$0xff]   ;;  %v6332_v35 = vld [vmem:[#allocation6 + $0x108] ss:$16 sps:$4 sm:$0xff]  }
  0x66   :  { %v6333_v36 = vld [vmem:[#allocation6 + $0x124] ss:$16 sps:$4 sm:$0xff]   ;;  %v6335_v37 = vld [vmem:[#allocation6 + $0x12c] ss:$16 sps:$4 sm:$0xff]   ;;  %v6337_v38 = vld [vmem:[#allocation6 + $0x120] ss:$16 sps:$4 sm:$0xff]  }
  0x67   :  { %v6338_v39 = vld [vmem:[#allocation6 + $0x128] ss:$16 sps:$4 sm:$0xff]   ;;  %v6339_v40 = vld [vmem:[#allocation6 + $0x144] ss:$16 sps:$4 sm:$0xff]   ;;  %v6341_v41 = vld [vmem:[#allocation6 + $0x14c] ss:$16 sps:$4 sm:$0xff]  }
  0x68   :  { %919 = vmatpush1.bf16.msra.mxu0 %v6301_v14  ;;  %1025 = vmatpush1.bf16.msra.mxu1 %v6302_v15  ;;  %v6343_v42 = vld [vmem:[#allocation6 + $0x140] ss:$16 sps:$4 sm:$0xff]   ;;  %v6344_v43 = vld [vmem:[#allocation6 + $0x148] ss:$16 sps:$4 sm:$0xff]   ;;  %v6345_v44 = vld [vmem:[#allocation6 + $0x164] ss:$16 sps:$4 sm:$0xff]  }
  0x69   :  { %920 = vmatprep.subr.bf16.mxu0 %v6303_v16  ;;  %1026 = vmatprep.subr.bf16.mxu1 %v6305_v17  ;;  %v6347_v45 = vld [vmem:[#allocation6 + $0x16c] ss:$16 sps:$4 sm:$0xff]   ;;  %v6349_v48 = vld [vmem:[#allocation6 + $0x160] ss:$16 sps:$4 sm:$0xff]   ;;  %v6350_v49 = vld [vmem:[#allocation6 + $0x168] ss:$16 sps:$4 sm:$0xff]  }
  0x6a   :  { %v99_v46 = vld [vmem:[#allocation2 + $0x8] sm:$0xff]  ;;  %v6351_v51 = vld [vmem:[#allocation6 + $0x184] ss:$16 sps:$4 sm:$0xff]   ;;  %v6355_v53 = vld [vmem:[#allocation6 + $0x180] ss:$16 sps:$4 sm:$0xff]   ;;  %s1208_s20 = sld [smem:[#allocation11]] }
  0x6b   :  { %v103_v47 = vld [vmem:[#allocation2 + $0x28] sm:$0xff]  ;;  %v6357_v55 = vld [vmem:[#allocation6 + $0x1a4] ss:$16 sps:$4 sm:$0xff]   ;;  %v6361_v57 = vld [vmem:[#allocation6 + $0x1a0] ss:$16 sps:$4 sm:$0xff]   ;;  %s5582_s24 = sld [smem:[#allocation11 + $0x1]] }
  0x6c   :  { %921 = vmatpush1.bf16.msra.mxu0 %v6307_v18  ;;  %1027 = vmatpush1.bf16.msra.mxu1 %v6308_v19  ;;  %v115_v50 = vpack.c.bf16 %v103_v47, %v99_v46  ;;  %v6353_v52 = vld [vmem:[#allocation6 + $0x18c] ss:$16 sps:$4 sm:$0xff]   ;;  %v6356_v54 = vld [vmem:[#allocation6 + $0x188] ss:$16 sps:$4 sm:$0xff]   ;;  %v6363_v59 = vld [vmem:[#allocation6 + $0x1c4] ss:$16 sps:$4 sm:$0xff]  }
  0x6d   :  { %922 = vmatprep.subr.bf16.mxu0 %v6309_v20  ;;  %1028 = vmatprep.subr.bf16.mxu1 %v6311_v21  ;;  %v6359_v56 = vld [vmem:[#allocation6 + $0x1ac] ss:$16 sps:$4 sm:$0xff]   ;;  %v6362_v58 = vld [vmem:[#allocation6 + $0x1a8] ss:$16 sps:$4 sm:$0xff]   ;;  %v6367_v61 = vld [vmem:[#allocation6 + $0x1c0] ss:$16 sps:$4 sm:$0xff]  }
  0x6e   :  { %944 = vmatprep.mubr.bf16.mxu0 %v115_v50  ;;  %1050 = vmatprep.mubr.bf16.mxu1 %v115_v50  ;;  %v6365_v60 = vld [vmem:[#allocation6 + $0x1cc] ss:$16 sps:$4 sm:$0xff]   ;;  %v6368_v62 = vld [vmem:[#allocation6 + $0x1c8] ss:$16 sps:$4 sm:$0xff]   ;;  %v6369_v63 = vld [vmem:[#allocation6 + $0x1e4] ss:$16 sps:$4 sm:$0xff]  }
  0x6f   :  { %v6371_v0 = vld [vmem:[#allocation6 + $0x1ec] ss:$16 sps:$4 sm:$0xff]   ;;  %v6373_v1 = vld [vmem:[#allocation6 + $0x1e0] ss:$16 sps:$4 sm:$0xff]   ;;  %v6374_v2 = vld [vmem:[#allocation6 + $0x1e8] ss:$16 sps:$4 sm:$0xff]  }
  0x70   :  { %923 = vmatpush1.bf16.msra.mxu0 %v6313_v22  ;;  %1029 = vmatpush1.bf16.msra.mxu1 %v6314_v23  ;;  %v6377_v3 = vld [vmem:[#allocation6 + $0x204] ss:$16 sps:$4 sm:$0xff]   ;;  %v6380_v6 = vld [vmem:[#allocation6 + $0x20c] ss:$16 sps:$4 sm:$0xff]   ;;  %v6375_v7 = vld [vmem:[#allocation6 + $0x200] ss:$16 sps:$4 sm:$0xff]  }
  0x71   :  { %924 = vmatprep.subr.bf16.mxu0 %v6315_v24  ;;  %1030 = vmatprep.subr.bf16.mxu1 %v6317_v25  ;;  %v7118_v4 = vld [vmem:[#allocation2] sm:$0xff]  ;;  %v6378_v8 = vld [vmem:[#allocation6 + $0x208] ss:$16 sps:$4 sm:$0xff]   ;;  %v6386_v11 = vld [vmem:[#allocation6 + $0x22c] ss:$16 sps:$4 sm:$0xff]   ;;  %s6095_s19 = sld [smem:[#allocation11 + $0x2]] }
  0x72   :  { %v7120_v5 = vld [vmem:[#allocation2 + $0x20] sm:$0xff]  ;;  %v6384_v13 = vld [vmem:[#allocation6 + $0x228] ss:$16 sps:$4 sm:$0xff]   ;;  %v6392_v15 = vld [vmem:[#allocation6 + $0x24c] ss:$16 sps:$4 sm:$0xff]   ;;  %s6096_s21 = sld [smem:[#allocation11 + $0x3]] }
  0x73   :  { %v114_v9 = vpack.c.bf16 %v7120_v5, %v7118_v4  ;;  %v6383_v10 = vld [vmem:[#allocation6 + $0x224] ss:$16 sps:$4 sm:$0xff]   ;;  %v6381_v12 = vld [vmem:[#allocation6 + $0x220] ss:$16 sps:$4 sm:$0xff]   ;;  %v6390_v17 = vld [vmem:[#allocation6 + $0x248] ss:$16 sps:$4 sm:$0xff]  }
  0x74   :  { %925 = vmatpush1.bf16.msra.mxu0 %v6319_v26  ;;  %1031 = vmatpush1.bf16.msra.mxu1 %v6320_v27  ;;  %v6389_v14 = vld [vmem:[#allocation6 + $0x244] ss:$16 sps:$4 sm:$0xff]   ;;  %v6387_v16 = vld [vmem:[#allocation6 + $0x240] ss:$16 sps:$4 sm:$0xff]   ;;  %v6398_v19 = vld [vmem:[#allocation6 + $0x26c] ss:$16 sps:$4 sm:$0xff]  }
  0x75   :  { %926 = vmatprep.subr.bf16.mxu0 %v6321_v28  ;;  %1032 = vmatprep.subr.bf16.mxu1 %v6323_v29  ;;  %v6395_v18 = vld [vmem:[#allocation6 + $0x264] ss:$16 sps:$4 sm:$0xff]   ;;  %v6393_v20 = vld [vmem:[#allocation6 + $0x260] ss:$16 sps:$4 sm:$0xff]   ;;  %v6396_v21 = vld [vmem:[#allocation6 + $0x268] ss:$16 sps:$4 sm:$0xff]  }
  0x76   :  { %v6401_v22 = vld [vmem:[#allocation6 + $0x284] ss:$16 sps:$4 sm:$0xff]   ;;  %v6404_v23 = vld [vmem:[#allocation6 + $0x28c] ss:$16 sps:$4 sm:$0xff]   ;;  %v6399_v24 = vld [vmem:[#allocation6 + $0x280] ss:$16 sps:$4 sm:$0xff]  }
  0x77   :  { %v6402_v25 = vld [vmem:[#allocation6 + $0x288] ss:$16 sps:$4 sm:$0xff]   ;;  %v6407_v26 = vld [vmem:[#allocation6 + $0x2a4] ss:$16 sps:$4 sm:$0xff]   ;;  %v6410_v27 = vld [vmem:[#allocation6 + $0x2ac] ss:$16 sps:$4 sm:$0xff]  }
  0x78   :  { %927 = vmatpush1.bf16.msra.mxu0 %v6325_v30  ;;  %1033 = vmatpush1.bf16.msra.mxu1 %v6326_v31  ;;  %v7124_v28 = vld [vmem:[#allocation2 + $0x48] sm:$0xff]  ;;  %v7130_v31 = vld [vmem:[#allocation2 + $0x40] sm:$0xff] }
  0x79   :  { %928 = vmatprep.subr.bf16.mxu0 %v6327_v32  ;;  %1034 = vmatprep.subr.bf16.mxu1 %v6329_v33  ;;  %v7126_v29 = vld [vmem:[#allocation2 + $0x68] sm:$0xff]  ;;  %v7132_v32 = vld [vmem:[#allocation2 + $0x60] sm:$0xff] }
  0x7a   :  { %v119_v30 = vpack.c.bf16 %v7126_v29, %v7124_v28  ;;  %v6405_v33 = vld [vmem:[#allocation6 + $0x2a0] ss:$16 sps:$4 sm:$0xff]   ;;  %v6420_v46 = vld [vmem:[#allocation6 + $0x2e8] ss:$16 sps:$4 sm:$0xff]   ;;  %v6425_v47 = vld [vmem:[#allocation6 + $0x304] ss:$16 sps:$4 sm:$0xff]  }
  0x7b   :  { %v6426_v50 = vld [vmem:[#allocation6 + $0x308] ss:$16 sps:$4 sm:$0xff]  }
  0x7c   :  { %929 = vmatpush1.bf16.msra.mxu0 %v6331_v34  ;;  %1035 = vmatpush1.bf16.msra.mxu1 %v6332_v35  ;;  %v6408_v34 = vld [vmem:[#allocation6 + $0x2a8] ss:$16 sps:$4 sm:$0xff]   ;;  %v118_v35 = vpack.c.bf16 %v7132_v32, %v7130_v31 }
  0x7d   :  { %930 = vmatprep.subr.bf16.mxu0 %v6333_v36  ;;  %1036 = vmatprep.subr.bf16.mxu1 %v6335_v37  ;;  %v6413_v36 = vld [vmem:[#allocation6 + $0x2c4] ss:$16 sps:$4 sm:$0xff]   ;;  %v6416_v37 = vld [vmem:[#allocation6 + $0x2cc] ss:$16 sps:$4 sm:$0xff]  }
  0x80   :  { %931 = vmatpush1.bf16.msra.mxu0 %v6337_v38  ;;  %1037 = vmatpush1.bf16.msra.mxu1 %v6338_v39  ;;  %v6411_v38 = vld [vmem:[#allocation6 + $0x2c0] ss:$16 sps:$4 sm:$0xff]   ;;  %v6414_v39 = vld [vmem:[#allocation6 + $0x2c8] ss:$16 sps:$4 sm:$0xff]  }
  0x81   :  { %932 = vmatprep.subr.bf16.mxu0 %v6339_v40  ;;  %1038 = vmatprep.subr.bf16.mxu1 %v6341_v41  ;;  %v7136_v40 = vld [vmem:[#allocation2 + $0x18] sm:$0xff] }
  0x82   :  { %v7138_v41 = vld [vmem:[#allocation2 + $0x38] sm:$0xff] }
  0x84   :  { %933 = vmatpush1.bf16.msra.mxu0 %v6343_v42  ;;  %1039 = vmatpush1.bf16.msra.mxu1 %v6344_v43  ;;  %v6419_v42 = vld [vmem:[#allocation6 + $0x2e4] ss:$16 sps:$4 sm:$0xff]   ;;  %v6422_v43 = vld [vmem:[#allocation6 + $0x2ec] ss:$16 sps:$4 sm:$0xff]  }
  0x85   :  { %934 = vmatprep.subr.bf16.mxu0 %v6345_v44  ;;  %1040 = vmatprep.subr.bf16.mxu1 %v6347_v45  ;;  %v117_v44 = vpack.c.bf16 %v7138_v41, %v7136_v40  ;;  %v6417_v45 = vld [vmem:[#allocation6 + $0x2e0] ss:$16 sps:$4 sm:$0xff]  }
  0x88   :  { %935 = vmatpush1.bf16.msra.mxu0 %v6349_v48  ;;  %1041 = vmatpush1.bf16.msra.mxu1 %v6350_v49  ;;  %v6428_v48 = vld [vmem:[#allocation6 + $0x30c] ss:$16 sps:$4 sm:$0xff]   ;;  %v6423_v49 = vld [vmem:[#allocation6 + $0x300] ss:$16 sps:$4 sm:$0xff]  }
  0x89   :  { %936 = vmatprep.subr.bf16.mxu0 %v6351_v51  ;;  %1042 = vmatprep.subr.bf16.mxu1 %v6353_v52  ;;  %v6431_v51 = vld [vmem:[#allocation6 + $0x324] ss:$16 sps:$4 sm:$0xff]   ;;  %v6434_v52 = vld [vmem:[#allocation6 + $0x32c] ss:$16 sps:$4 sm:$0xff]  }
  0x8c   :  { %937 = vmatpush1.bf16.msra.mxu0 %v6355_v53  ;;  %1043 = vmatpush1.bf16.msra.mxu1 %v6356_v54  ;;  %v6429_v53 = vld [vmem:[#allocation6 + $0x320] ss:$16 sps:$4 sm:$0xff]   ;;  %v6432_v54 = vld [vmem:[#allocation6 + $0x328] ss:$16 sps:$4 sm:$0xff]  }
  0x8d   :  { %938 = vmatprep.subr.bf16.mxu0 %v6357_v55  ;;  %1044 = vmatprep.subr.bf16.mxu1 %v6359_v56  ;;  %v6437_v55 = vld [vmem:[#allocation6 + $0x344] ss:$16 sps:$4 sm:$0xff]   ;;  %v6440_v56 = vld [vmem:[#allocation6 + $0x34c] ss:$16 sps:$4 sm:$0xff]  }
  0x90   :  { %939 = vmatpush1.bf16.msra.mxu0 %v6361_v57  ;;  %1045 = vmatpush1.bf16.msra.mxu1 %v6362_v58  ;;  %v6435_v57 = vld [vmem:[#allocation6 + $0x340] ss:$16 sps:$4 sm:$0xff]   ;;  %v6438_v58 = vld [vmem:[#allocation6 + $0x348] ss:$16 sps:$4 sm:$0xff]  }
  0x91   :  { %940 = vmatprep.subr.bf16.mxu0 %v6363_v59  ;;  %1046 = vmatprep.subr.bf16.mxu1 %v6365_v60  ;;  %v6443_v59 = vld [vmem:[#allocation6 + $0x364] ss:$16 sps:$4 sm:$0xff]   ;;  %v6446_v60 = vld [vmem:[#allocation6 + $0x36c] ss:$16 sps:$4 sm:$0xff]  }
  0x94   :  { %941 = vmatpush1.bf16.msra.mxu0 %v6367_v61  ;;  %1047 = vmatpush1.bf16.msra.mxu1 %v6368_v62  ;;  %v6441_v61 = vld [vmem:[#allocation6 + $0x360] ss:$16 sps:$4 sm:$0xff]   ;;  %v6444_v62 = vld [vmem:[#allocation6 + $0x368] ss:$16 sps:$4 sm:$0xff]  }
  0x95   :  { %942 = vmatprep.subr.bf16.mxu0 %v6369_v63  ;;  %1048 = vmatprep.subr.bf16.mxu1 %v6371_v0  ;;  %v6449_v63 = vld [vmem:[#allocation6 + $0x384] ss:$16 sps:$4 sm:$0xff]   ;;  %v6452_v0 = vld [vmem:[#allocation6 + $0x38c] ss:$16 sps:$4 sm:$0xff]  }
  0x98   :  { %943 = vmatpush1.bf16.msra.mxu0 %v6373_v1  ;;  %1049 = vmatpush1.bf16.msra.mxu1 %v6374_v2  ;;  %v6447_v1 = vld [vmem:[#allocation6 + $0x380] ss:$16 sps:$4 sm:$0xff]   ;;  %v6450_v2 = vld [vmem:[#allocation6 + $0x388] ss:$16 sps:$4 sm:$0xff]  }
  0x99   :  { %965 = vmatprep.subr.bf16.mxu0 %v6377_v3  ;;  %1071 = vmatprep.subr.bf16.mxu1 %v6380_v6  ;;  %v6455_v3 = vld [vmem:[#allocation6 + $0x3a4] ss:$16 sps:$4 sm:$0xff]   ;;  %v6458_v6 = vld [vmem:[#allocation6 + $0x3ac] ss:$16 sps:$4 sm:$0xff]  }
  0x9b   :  { %945 = vmatmul.mubr.bf16.vlgmr.msra.gmra.mrb[0].mxu0 %v114_v9  ;;  %1051 = vmatmul.mubr.bf16.vlgmr.msra.gmra.mrb[0].mxu1 %v114_v9  ;;  %v6461_v9 = vld [vmem:[#allocation6 + $0x3c4] ss:$16 sps:$4 sm:$0xff]  }
  0x9c   :  { %966 = vmatpush1.bf16.msra.mxu0 %v6375_v7  ;;  %1072 = vmatpush1.bf16.msra.mxu1 %v6378_v8  ;;  %v6453_v7 = vld [vmem:[#allocation6 + $0x3a0] ss:$16 sps:$4 sm:$0xff]   ;;  %v6456_v8 = vld [vmem:[#allocation6 + $0x3a8] ss:$16 sps:$4 sm:$0xff]  }
  0x9d   :  { %967 = vmatprep.subr.bf16.mxu0 %v6383_v10  ;;  %1073 = vmatprep.subr.bf16.mxu1 %v6386_v11  ;;  %v6464_v10 = vld [vmem:[#allocation6 + $0x3cc] ss:$16 sps:$4 sm:$0xff]   ;;  %v6459_v11 = vld [vmem:[#allocation6 + $0x3c0] ss:$16 sps:$4 sm:$0xff]  }
  0x9e   :  { %954 = vmatprep.mubr.bf16.mxu0 %v119_v30  ;;  %1060 = vmatprep.mubr.bf16.mxu1 %v119_v30 }
  0xa0   :  { %968 = vmatpush1.bf16.msra.mxu0 %v6381_v12  ;;  %1074 = vmatpush1.bf16.msra.mxu1 %v6384_v13  ;;  %v6462_v12 = vld [vmem:[#allocation6 + $0x3c8] ss:$16 sps:$4 sm:$0xff]   ;;  %v6467_v13 = vld [vmem:[#allocation6 + $0x3e4] ss:$16 sps:$4 sm:$0xff]  }
  0xa1   :  { %969 = vmatprep.subr.bf16.mxu0 %v6389_v14  ;;  %1075 = vmatprep.subr.bf16.mxu1 %v6392_v15  ;;  %v6470_v14 = vld [vmem:[#allocation6 + $0x3ec] ss:$16 sps:$4 sm:$0xff]   ;;  %v6465_v15 = vld [vmem:[#allocation6 + $0x3e0] ss:$16 sps:$4 sm:$0xff]  }
  0xa3   :  { %955 = vmatmul.mubr.bf16.gmra.mrb[4].mxu0 %v118_v35  ;;  %1061 = vmatmul.mubr.bf16.gmra.mrb[4].mxu1 %v118_v35 }
  0xa4   :  { %970 = vmatpush1.bf16.msra.mxu0 %v6387_v16  ;;  %1076 = vmatpush1.bf16.msra.mxu1 %v6390_v17  ;;  %v6468_v16 = vld [vmem:[#allocation6 + $0x3e8] ss:$16 sps:$4 sm:$0xff]   ;;  %v100_v17 = vld [vmem:[#allocation2 + $0x10] sm:$0xff] }
  0xa5   :  { %971 = vmatprep.subr.bf16.mxu0 %v6395_v18  ;;  %1077 = vmatprep.subr.bf16.mxu1 %v6398_v19  ;;  %v7142_v18 = vld [vmem:[#allocation2 + $0x30] sm:$0xff]  ;;  %v7144_v19 = vld [vmem:[#allocation2 + $0x58] sm:$0xff] }
  0xa6   :  { %997 = vmatprep.mubr.bf16.mxu0 %v117_v44  ;;  %1103 = vmatprep.mubr.bf16.mxu1 %v117_v44 }
  0xa8   :  { %972 = vmatpush1.bf16.msra.mxu0 %v6393_v20  ;;  %1078 = vmatpush1.bf16.msra.mxu1 %v6396_v21  ;;  %v7146_v20 = vld [vmem:[#allocation2 + $0x78] sm:$0xff]  ;;  %v116_v21 = vpack.c.bf16 %v7142_v18, %v100_v17 }
  0xa9   :  { %973 = vmatprep.subr.bf16.mxu0 %v6401_v22  ;;  %1079 = vmatprep.subr.bf16.mxu1 %v6404_v23  ;;  %v121_v22 = vpack.c.bf16 %v7146_v20, %v7144_v19  ;;  %v7151_v23 = vld [vmem:[#allocation2 + $0x50] sm:$0xff] }
  0xac   :  { %974 = vmatpush1.bf16.msra.mxu0 %v6399_v24  ;;  %1080 = vmatpush1.bf16.msra.mxu1 %v6402_v25  ;;  %v7153_v24 = vld [vmem:[#allocation2 + $0x70] sm:$0xff] }
  0xad   :  { %975 = vmatprep.subr.bf16.mxu0 %v6407_v26  ;;  %1081 = vmatprep.subr.bf16.mxu1 %v6410_v27  ;;  %v120_v25 = vpack.c.bf16 %v7153_v24, %v7151_v23  ;;  %v252_v26 = vlaneseq }
  0xaf   :  { %v7157_v27 = vshrl.u32 %v252_v26, 7 }
  0xb0   :  { %976 = vmatpush1.bf16.msra.mxu0 %v6405_v33  ;;  %1082 = vmatpush1.bf16.msra.mxu1 %v6408_v34  ;;  %v250_v34 = vld [vmem:[%s7636_s2] sm:$0xf] }
  0xb1   :  { %977 = vmatprep.subr.bf16.mxu0 %v6413_v36  ;;  %1083 = vmatprep.subr.bf16.mxu1 %v6416_v37  ;;  %v7160_v30 = vsub.s32 0, %v7157_v27  ;;  %v7163_v33 = vsub.s32 2, %v7157_v27  ;;  %v7169_v35 = vsub.s32 1, %v7157_v27  ;;  %v7172_v36 = vsub.s32 3, %v7157_v27 }
  0xb3   :  { %v7175_v37 = vrot.slane %v250_v34, %v7160_v30 }
  0xb4   :  { %978 = vmatpush1.bf16.msra.mxu0 %v6411_v38  ;;  %1084 = vmatpush1.bf16.msra.mxu1 %v6414_v39  ;;  %v7178_v38 = vrot.slane %v250_v34, %v7163_v33  ;;  %v7181_v39 = vrot.slane %v250_v34, %v7169_v35 }
  0xb5   :  { %979 = vmatprep.subr.bf16.mxu0 %v6419_v42  ;;  %1085 = vmatprep.subr.bf16.mxu1 %v6422_v43  ;;  %v7184_v42 = vrot.slane %v250_v34, %v7172_v36 }
  0xb8   :  { %980 = vmatpush1.bf16.msra.mxu0 %v6417_v45  ;;  %1086 = vmatpush1.bf16.msra.mxu1 %v6420_v46 }
  0xb9   :  { %981 = vmatprep.subr.bf16.mxu0 %v6425_v47  ;;  %1087 = vmatprep.subr.bf16.mxu1 %v6428_v48 }
  0xbc   :  { %982 = vmatpush1.bf16.msra.mxu0 %v6423_v49  ;;  %1088 = vmatpush1.bf16.msra.mxu1 %v6426_v50 }
  0xbd   :  { %983 = vmatprep.subr.bf16.mxu0 %v6431_v51  ;;  %1089 = vmatprep.subr.bf16.mxu1 %v6434_v52 }
  0xc0   :  { %984 = vmatpush1.bf16.msra.mxu0 %v6429_v53  ;;  %1090 = vmatpush1.bf16.msra.mxu1 %v6432_v54 }
  0xc1   :  { %985 = vmatprep.subr.bf16.mxu0 %v6437_v55  ;;  %1091 = vmatprep.subr.bf16.mxu1 %v6440_v56 }
  0xc4   :  { %986 = vmatpush1.bf16.msra.mxu0 %v6435_v57  ;;  %1092 = vmatpush1.bf16.msra.mxu1 %v6438_v58  ;;  %v6859_v57 = vld [vmem:[#allocation2 + $0x8] sm:$0xff] }
  0xc5   :  { %987 = vmatprep.subr.bf16.mxu0 %v6443_v59  ;;  %1093 = vmatprep.subr.bf16.mxu1 %v6446_v60 }
  0xc8   :  { %988 = vmatpush1.bf16.msra.mxu0 %v6441_v61  ;;  %1094 = vmatpush1.bf16.msra.mxu1 %v6444_v62 }
  0xc9   :  { %989 = vmatprep.subr.bf16.mxu0 %v6449_v63  ;;  %1095 = vmatprep.subr.bf16.mxu1 %v6452_v0 }
  0xcc   :  { %990 = vmatpush1.bf16.msra.mxu0 %v6447_v1  ;;  %1096 = vmatpush1.bf16.msra.mxu1 %v6450_v2 }
  0xcd   :  { %991 = vmatprep.subr.bf16.mxu0 %v6455_v3  ;;  %1097 = vmatprep.subr.bf16.mxu1 %v6458_v6 }
  0xd0   :  { %992 = vmatpush1.bf16.msra.mxu0 %v6453_v7  ;;  %1098 = vmatpush1.bf16.msra.mxu1 %v6456_v8 }
  0xd1   :  { %993 = vmatprep.subr.bf16.mxu0 %v6461_v9  ;;  %1099 = vmatprep.subr.bf16.mxu1 %v6464_v10 }
  0xd4   :  { %994 = vmatpush1.bf16.msra.mxu0 %v6459_v11  ;;  %1100 = vmatpush1.bf16.msra.mxu1 %v6462_v12 }
  0xd5   :  { %995 = vmatprep.subr.bf16.mxu0 %v6467_v13  ;;  %1101 = vmatprep.subr.bf16.mxu1 %v6470_v14  ;;  %v6860_v14 = vld [vmem:[#allocation2 + $0x28] sm:$0xff] }
  0xd8   :  { %996 = vmatpush1.bf16.msra.mxu0 %v6465_v15  ;;  %1102 = vmatpush1.bf16.msra.mxu1 %v6468_v16 }
  0xdb   :  { %998 = vmatmul.mubr.bf16.vlgmr.msra.gmra.mrb[0].mxu0 %v116_v21  ;;  %1104 = vmatmul.mubr.bf16.vlgmr.msra.gmra.mrb[0].mxu1 %v116_v21 }
  0xdc   :  { %1007 = vmatprep.mubr.bf16.mxu0 %v121_v22  ;;  %1113 = vmatprep.mubr.bf16.mxu1 %v121_v22 }
  0xe3   :  { %1008 = vmatmul.mubr.bf16.gmra.mrb[4].mxu0 %v120_v25  ;;  %1114 = vmatmul.mubr.bf16.gmra.mrb[4].mxu1 %v120_v25 }
 0x1ae   :  { %v999_v43 = vpop.f32.mrb[0].mxu0  ;;  %v1105_v44 = vpop.f32.mrb[0].mxu1 }
 0x1af   :  { %v6097_v45 = vadd.f32 %v999_v43, %v7175_v37  ;;  %v6105_v46 = vadd.f32 %v1105_v44, %v7178_v38  ;;  %v1001_v47 = vpop.f32.mrb[1].mxu0  ;;  %v1107_v48 = vpop.f32.mrb[1].mxu1 }
 0x1b0   :  { %v6098_v49 = vadd.f32 %v1001_v47, %v7181_v39  ;;  %v6106_v50 = vadd.f32 %v1107_v48, %v7184_v42  ;;  %v1003_v51 = vpop.f32.mrb[2].mxu0  ;;  %v1109_v52 = vpop.f32.mrb[2].mxu1 }
 0x1b1   :  { %v7191_v53 = vadd.f32 %v6097_v45, %v7118_v4  ;;  %v1005_v54 = vpop.f32.mrb[3].mxu0  ;;  %v1111_v55 = vpop.f32.mrb[3].mxu1  ;;  %v7193_v56 = vadd.f32 %v6105_v46, %v100_v17  ;;  %v6099_v59 = vadd.f32 %v1003_v51, %v7175_v37  ;;  %v6107_v0 = vadd.f32 %v1109_v52, %v7178_v38 }
 0x1b2   :  { %v7195_v58 = vadd.f32 %v6859_v57, %v6098_v49  ;;  %v7205_v4 = vadd.f32 %v6106_v50, %v7136_v40  ;;  %v6100_v63 = vadd.f32 %v1005_v54, %v7181_v39  ;;  %v6108_v9 = vadd.f32 %v1111_v55, %v7184_v42 }
 0x1b3   :  { %v1165_v60 = vmul.f32 %v7191_v53, %v7191_v53  ;;  %v1167_v1 = vmul.f32 %v7193_v56, %v7193_v56  ;;  %v7213_v6 = vadd.f32 %v6099_v59, %v7120_v5  ;;  %v7222_v5 = vadd.f32 %v6107_v0, %v7142_v18 }
 0x1b4   :  { %v1140_v61 = vadd.f32 %v7195_v58, %v7191_v53  ;;  %v1166_v62 = vmul.f32 %v7195_v58, %v7195_v58  ;;  %v1168_v12 = vmul.f32 %v7205_v4, %v7205_v4  ;;  %v7219_v15 = vadd.f32 %v6860_v14, %v6100_v63 }
 0x1b5   :  { %v1169_v34 = vmul.f32 %v7213_v6, %v7213_v6  ;;  %v7229_v44 = vadd.f32 %v6108_v9, %v7138_v41  ;;  %v1171_v49 = vmul.f32 %v7222_v5, %v7222_v5 }
 0x1b6   :  { %v1181_v2 = vadd.f32 %v1166_v62, %v1165_v60  ;;  %v1141_v3 = vadd.f32 %v1140_v61, %v7193_v56  ;;  %v1009_v7 = vpop.f32.mrb[4].mxu0  ;;  %v1115_v8 = vpop.f32.mrb[4].mxu1  ;;  %v1170_v18 = vmul.f32 %v7219_v15, %v7219_v15 }
 0x1b7   :  { %v1011_v10 = vpop.f32.mrb[5].mxu0  ;;  %v1117_v40 = vpop.f32.mrb[5].mxu1  ;;  %v6101_v43 = vadd.f32 %v1009_v7, %v7175_v37  ;;  %v6109_v48 = vadd.f32 %v1115_v8, %v7178_v38  ;;  %v1172_v55 = vmul.f32 %v7229_v44, %v7229_v44 }
 0x1b8   :  { %v1142_v11 = vadd.f32 %v1141_v3, %v7205_v4  ;;  %v1182_v13 = vadd.f32 %v1181_v2, %v1167_v1  ;;  %v1013_v16 = vpop.f32.mrb[6].mxu0  ;;  %v1119_v17 = vpop.f32.mrb[6].mxu1  ;;  %v6102_v47 = vadd.f32 %v1011_v10, %v7181_v39  ;;  %v6110_v41 = vadd.f32 %v1117_v40, %v7184_v42 }
 0x1b9   :  { %v1015_v21 = vpop.f32.mrb[7].mxu0  ;;  %v1121_v22 = vpop.f32.mrb[7].mxu1  ;;  %v7240_v52 = vadd.f32 %v6101_v43, %v7130_v31  ;;  %v7250_v60 = vadd.f32 %v6109_v48, %v7151_v23  ;;  %v6103_v63 = vadd.f32 %v1013_v16, %v7175_v37  ;;  %v6111_v3 = vadd.f32 %v1119_v17, %v7178_v38  ;;  %v1259_v43 = vld [vmem:[#allocation8] sm:$0xff] }
 0x1ba   :  { %v1183_v25 = vadd.f32 %v1182_v13, %v1168_v12  ;;  %v1143_v26 = vadd.f32 %v1142_v11, %v7213_v6  ;;  %v7247_v59 = vadd.f32 %v6102_v47, %v7124_v28  ;;  %v7257_v0 = vadd.f32 %v6110_v41, %v7144_v19  ;;  %v1264_v47 = vld [vmem:[#allocation8 + $0x28] sm:$0xff] }
 0x1bb   :  { %v1173_v31 = vmul.f32 %v7240_v52, %v7240_v52  ;;  %v6104_v23 = vadd.f32 %v1015_v21, %v7181_v39  ;;  %v1175_v7 = vmul.f32 %v7250_v60, %v7250_v60  ;;  %v7267_v9 = vadd.f32 %v6103_v63, %v7132_v32  ;;  %v1268_v41 = vld [vmem:[#allocation8 + $0x48] sm:$0xff] }
 0x1bc   :  { %v1184_v45 = vadd.f32 %v1183_v25, %v1169_v34  ;;  %v1144_v46 = vadd.f32 %v1143_v26, %v7219_v15  ;;  %v1174_v28 = vmul.f32 %v7247_v59, %v7247_v59  ;;  %v1176_v37 = vmul.f32 %v7257_v0, %v7257_v0 }
 0x1bd   :  { %v7273_v10 = vadd.f32 %v6104_v23, %v7126_v29  ;;  %v7277_v38 = vadd.f32 %v6111_v3, %v7153_v24  ;;  %v6112_v11 = vadd.f32 %v1121_v22, %v7184_v42  ;;  %v1177_v32 = vmul.f32 %v7267_v9, %v7267_v9  ;;  %v1283_v23 = vld [vmem:[#allocation8 + $0xc0] sm:$0xff] }
 0x1be   :  { %v1185_v50 = vadd.f32 %v1184_v45, %v1170_v18  ;;  %v1145_v51 = vadd.f32 %v1144_v46, %v7222_v5  ;;  %v1263_v45 = vld [vmem:[#allocation8 + $0x20] sm:$0xff]  ;;  %v1260_v46 = vld [vmem:[#allocation8 + $0x8] sm:$0xff] }
 0x1bf   :  { %v1178_v29 = vmul.f32 %v7273_v10, %v7273_v10  ;;  %v7287_v17 = vadd.f32 %v6112_v11, %v7146_v20  ;;  %v1179_v42 = vmul.f32 %v7277_v38, %v7277_v38  ;;  %v5583_v20 = vcombine.low %v1259_v43, %v1263_v45 }
 0x1c0   :  { %v1146_v54 = vadd.f32 %v1145_v51, %v7229_v44  ;;  %v1186_v57 = vadd.f32 %v1185_v50, %v1171_v49  ;;  %v5584_v18 = vcombine.high %v1259_v43, %v1263_v45  ;;  %v5585_v48 = vcombine.low %v1260_v46, %v1264_v47  ;;  %v1267_v50 = vld [vmem:[#allocation8 + $0x40] sm:$0xff] }
 0x1c1   :  { %v1180_v26 = vmul.f32 %v7287_v17, %v7287_v17  ;;  %v5586_v49 = vcombine.high %v1260_v46, %v1264_v47  ;;  %v1271_v51 = vld [vmem:[#allocation8 + $0x60] sm:$0xff]  ;;  %v1308_v47 = vld [vmem:[#allocation8 + $0x188] sm:$0xff] }
 0x1c2   :  { %v1187_v61 = vadd.f32 %v1186_v57, %v1172_v55  ;;  %v1147_v62 = vadd.f32 %v1146_v54, %v7240_v52  ;;  %2837 = vmatprep.subr.bf16.mxu0 %v5584_v18  ;;  %v5591_v54 = vcombine.low %v1267_v50, %v1271_v51  ;;  %v5592_v55 = vcombine.high %v1267_v50, %v1271_v51  ;;  %v1272_v57 = vld [vmem:[#allocation8 + $0x68] sm:$0xff]  ;;  %v1311_v18 = vld [vmem:[#allocation8 + $0x1a0] sm:$0xff] }
 0x1c3   :  { %2943 = vmatprep.subr.bf16.mxu1 %v5586_v49  ;;  %2838 = vmatpush1.bf16.msra.mxu0 %v5583_v20  ;;  %v5594_v63 = vcombine.high %v1268_v41, %v1272_v57  ;;  %v1307_v20 = vld [vmem:[#allocation8 + $0x180] sm:$0xff] }
 0x1c4   :  { %v1188_v1 = vadd.f32 %v1187_v61, %v1173_v31  ;;  %v1148_v2 = vadd.f32 %v1147_v62, %v7247_v59  ;;  %2944 = vmatpush1.bf16.msra.mxu1 %v5585_v48  ;;  %v1275_v61 = vld [vmem:[#allocation8 + $0x80] sm:$0xff]  ;;  %v5593_v31 = vcombine.low %v1268_v41, %v1272_v57  ;;  %2839 = vmatprep.subr.bf16.mxu0 %v5592_v55  ;;  %v1312_v48 = vld [vmem:[#allocation8 + $0x1a8] sm:$0xff] }
 0x1c5   :  { %v1279_v62 = vld [vmem:[#allocation8 + $0xa0] sm:$0xff]  ;;  %2945 = vmatprep.subr.bf16.mxu1 %v5594_v63  ;;  %v5632_v51 = vcombine.high %v1307_v20, %v1311_v18  ;;  %v5634_v41 = vcombine.high %v1308_v47, %v1312_v48  ;;  %v1316_v57 = vld [vmem:[#allocation8 + $0x1c8] sm:$0xff] }
 0x1c6   :  { %v1189_v8 = vadd.f32 %v1188_v1, %v1174_v28  ;;  %v1149_v19 = vadd.f32 %v1148_v2, %v7250_v60  ;;  %v5600_v1 = vcombine.high %v1275_v61, %v1279_v62  ;;  %v1276_v2 = vld [vmem:[#allocation8 + $0x88] sm:$0xff]  ;;  %v1319_v55 = vld [vmem:[#allocation8 + $0x1e0] sm:$0xff] }
 0x1c7   :  { %v1280_v28 = vld [vmem:[#allocation8 + $0xa8] sm:$0xff]  ;;  %2840 = vmatpush1.bf16.msra.mxu0 %v5591_v54  ;;  %v1315_v54 = vld [vmem:[#allocation8 + $0x1c0] sm:$0xff] }
 0x1c8   :  { %v1150_v40 = vadd.f32 %v1149_v19, %v7257_v0  ;;  %v1190_v39 = vadd.f32 %v1189_v8, %v1175_v7  ;;  %v5602_v3 = vcombine.high %v1276_v2, %v1280_v28  ;;  %v1287_v7 = vld [vmem:[#allocation8 + $0xe0] sm:$0xff]  ;;  %v1284_v8 = vld [vmem:[#allocation8 + $0xc8] sm:$0xff]  ;;  %2946 = vmatpush1.bf16.msra.mxu1 %v5593_v31  ;;  %2841 = vmatprep.subr.bf16.mxu0 %v5600_v1 }
 0x1c9   :  { %v1288_v19 = vld [vmem:[#allocation8 + $0xe8] sm:$0xff]  ;;  %v5633_v31 = vcombine.low %v1308_v47, %v1312_v48  ;;  %v5640_v63 = vcombine.high %v1315_v54, %v1319_v55 }
 0x1ca   :  { %v1151_v12 = vadd.f32 %v1150_v40, %v7267_v9  ;;  %v1191_v13 = vadd.f32 %v1190_v39, %v1176_v37  ;;  %v5599_v37 = vcombine.low %v1275_v61, %v1279_v62  ;;  %v5601_v40 = vcombine.low %v1276_v2, %v1280_v28  ;;  %2947 = vmatprep.subr.bf16.mxu1 %v5602_v3  ;;  %v1320_v61 = vld [vmem:[#allocation8 + $0x1e8] sm:$0xff]  ;;  %v1323_v2 = vld [vmem:[#allocation8 + $0x200] sm:$0xff] }
 0x1cb   :  { %v5608_v39 = vcombine.high %v1283_v23, %v1287_v7  ;;  %v5610_v11 = vcombine.high %v1284_v8, %v1288_v19  ;;  %v5631_v62 = vcombine.low %v1307_v20, %v1311_v18  ;;  %v5642_v1 = vcombine.high %v1316_v57, %v1320_v61  ;;  %v1327_v28 = vld [vmem:[#allocation8 + $0x220] sm:$0xff]  ;;  %v1328_v3 = vld [vmem:[#allocation8 + $0x228] sm:$0xff] }
 0x1cc   :  { %v1152_v14 = vadd.f32 %v1151_v12, %v7273_v10  ;;  %v1192_v16 = vadd.f32 %v1191_v13, %v1177_v32  ;;  %v1291_v12 = vld [vmem:[#allocation8 + $0x100] sm:$0xff]  ;;  %v1292_v13 = vld [vmem:[#allocation8 + $0x108] sm:$0xff]  ;;  %2842 = vmatpush1.bf16.msra.mxu0 %v5599_v37  ;;  %2948 = vmatpush1.bf16.msra.mxu1 %v5601_v40 }
 0x1cd   :  { %v1295_v32 = vld [vmem:[#allocation8 + $0x120] sm:$0xff]  ;;  %2843 = vmatprep.subr.bf16.mxu0 %v5608_v39  ;;  %2949 = vmatprep.subr.bf16.mxu1 %v5610_v11  ;;  %v1332_v11 = vld [vmem:[#allocation8 + $0x248] sm:$0xff] }
 0x1ce   :  { %v1153_v24 = vadd.f32 %v1152_v14, %v7277_v38  ;;  %v1193_v21 = vadd.f32 %v1192_v16, %v1178_v29  ;;  %v1296_v14 = vld [vmem:[#allocation8 + $0x128] sm:$0xff]  ;;  %v5607_v29 = vcombine.low %v1283_v23, %v1287_v7  ;;  %v5609_v16 = vcombine.low %v1284_v8, %v1288_v19  ;;  %v1331_v40 = vld [vmem:[#allocation8 + $0x240] sm:$0xff] }
 0x1cf   :  { %v5617_v43 = vcombine.low %v1292_v13, %v1296_v14  ;;  %v1324_v23 = vld [vmem:[#allocation8 + $0x208] sm:$0xff]  ;;  %v5639_v7 = vcombine.low %v1315_v54, %v1319_v55  ;;  %v5641_v8 = vcombine.low %v1316_v57, %v1320_v61  ;;  %v5648_v19 = vcombine.high %v1323_v2, %v1327_v28  ;;  %v1335_v39 = vld [vmem:[#allocation8 + $0x260] sm:$0xff] }
 0x1d0   :  { %v1154_v22 = vadd.f32 %v1153_v24, %v7287_v17  ;;  %v1194_v25 = vadd.f32 %v1193_v21, %v1179_v42  ;;  %v5616_v24 = vcombine.high %v1291_v12, %v1295_v32  ;;  %v5618_v42 = vcombine.high %v1292_v13, %v1296_v14  ;;  %v1299_v21 = vld [vmem:[#allocation8 + $0x140] sm:$0xff]  ;;  %2844 = vmatpush1.bf16.msra.mxu0 %v5607_v29  ;;  %v1352_v20 = vld [vmem:[#allocation8 + $0x2e8] sm:$0xff] }
 0x1d1   :  { %2950 = vmatpush1.bf16.msra.mxu1 %v5609_v16  ;;  %v5650_v37 = vcombine.high %v1324_v23, %v1328_v3  ;;  %v5649_v13 = vcombine.low %v1324_v23, %v1328_v3  ;;  %v5656_v14 = vcombine.high %v1331_v40, %v1335_v39  ;;  %v1339_v16 = vld [vmem:[#allocation8 + $0x280] sm:$0xff]  ;;  %v1360_v54 = vld [vmem:[#allocation8 + $0x328] sm:$0xff] }
 0x1d2   :  { %1155 = vadd.xlane.f32.xlu0 %v1154_v22  ;;  %v1195_v34 = vadd.f32 %v1194_v25, %v1180_v26  ;;  %v1303_v22 = vld [vmem:[#allocation8 + $0x160] sm:$0xff]  ;;  %v1300_v25 = vld [vmem:[#allocation8 + $0x148] sm:$0xff]  ;;  %2845 = vmatprep.subr.bf16.mxu0 %v5616_v24 }
 0x1d3   :  { %v1304_v26 = vld [vmem:[#allocation8 + $0x168] sm:$0xff]  ;;  %v5624_v45 = vcombine.high %v1299_v21, %v1303_v22  ;;  %2951 = vmatprep.subr.bf16.mxu1 %v5618_v42  ;;  %v5623_v49 = vcombine.low %v1299_v21, %v1303_v22  ;;  %v1343_v24 = vld [vmem:[#allocation8 + $0x2a0] sm:$0xff]  ;;  %v5655_v22 = vcombine.low %v1331_v40, %v1335_v39 }
 0x1d4   :  { %v5626_v46 = vcombine.high %v1300_v25, %v1304_v26  ;;  %v5625_v50 = vcombine.low %v1300_v25, %v1304_v26  ;;  %v1340_v42 = vld [vmem:[#allocation8 + $0x288] sm:$0xff]  ;;  %v5664_v26 = vcombine.high %v1339_v16, %v1343_v24  ;;  %v5663_v18 = vcombine.low %v1339_v16, %v1343_v24  ;;  %v1371_v24 = vld [vmem:[#allocation8 + $0x380] sm:$0xff] }
 0x1d5   :  { %2952 = vmatpush1.bf16.msra.mxu1 %v5617_v43  ;;  %v1344_v21 = vld [vmem:[#allocation8 + $0x2a8] sm:$0xff]  ;;  %v1347_v43 = vld [vmem:[#allocation8 + $0x2c0] sm:$0xff] }
 0x1d6   :  { %1196 = vadd.xlane.f32.xlu0 %v1195_v34  ;;  %v5615_v34 = vcombine.low %v1291_v12, %v1295_v32  ;;  %2953 = vmatprep.subr.bf16.mxu1 %v5626_v46  ;;  %v1336_v12 = vld [vmem:[#allocation8 + $0x268] sm:$0xff]  ;;  %v5647_v32 = vcombine.low %v1323_v2, %v1327_v28  ;;  %v5665_v47 = vcombine.low %v1340_v42, %v1344_v21 }
 0x1d7   :  { %v5658_v29 = vcombine.high %v1332_v11, %v1336_v12  ;;  %v5657_v25 = vcombine.low %v1332_v11, %v1336_v12  ;;  %v1348_v46 = vld [vmem:[#allocation8 + $0x2c8] sm:$0xff] }
 0x1d8   :  { %2846 = vmatpush1.bf16.msra.mxu0 %v5615_v34  ;;  %v5666_v34 = vcombine.high %v1340_v42, %v1344_v21  ;;  %v5673_v57 = vcombine.low %v1348_v46, %v1352_v20  ;;  %v1368_v12 = vld [vmem:[#allocation8 + $0x368] sm:$0xff]  ;;  %v1375_v42 = vld [vmem:[#allocation8 + $0x3a0] sm:$0xff] }
 0x1d9   :  { %2847 = vmatprep.subr.bf16.mxu0 %v5624_v45  ;;  %2954 = vmatpush1.bf16.msra.mxu1 %v5625_v50  ;;  %v1351_v45 = vld [vmem:[#allocation8 + $0x2e0] sm:$0xff]  ;;  %v1372_v21 = vld [vmem:[#allocation8 + $0x388] sm:$0xff] }
 0x1da   :  { %2955 = vmatprep.subr.bf16.mxu1 %v5634_v41  ;;  %v5672_v48 = vcombine.high %v1347_v43, %v1351_v45  ;;  %v1355_v50 = vld [vmem:[#allocation8 + $0x300] sm:$0xff]  ;;  %v1356_v41 = vld [vmem:[#allocation8 + $0x308] sm:$0xff]  ;;  %v5671_v55 = vcombine.low %v1347_v43, %v1351_v45  ;;  %v5695_v43 = vcombine.low %v1371_v24, %v1375_v42 }
 0x1db   :  { %v5681_v2 = vcombine.low %v1356_v41, %v1360_v54 }
 0x1dc   :  { %2848 = vmatpush1.bf16.msra.mxu0 %v5623_v49  ;;  %v5674_v49 = vcombine.high %v1348_v46, %v1352_v20 }
 0x1dd   :  { %2849 = vmatprep.subr.bf16.mxu0 %v5632_v51  ;;  %2956 = vmatpush1.bf16.msra.mxu1 %v5633_v31  ;;  %v1359_v51 = vld [vmem:[#allocation8 + $0x320] sm:$0xff] }
 0x1de   :  { %2957 = vmatprep.subr.bf16.mxu1 %v5642_v1  ;;  %v5680_v61 = vcombine.high %v1355_v50, %v1359_v51  ;;  %v5679_v1 = vcombine.low %v1355_v50, %v1359_v51  ;;  %v1384_v51 = vld [vmem:[#allocation8 + $0x3e8] sm:$0xff] }
 0x1e0   :  { %2850 = vmatpush1.bf16.msra.mxu0 %v5631_v62  ;;  %v5682_v62 = vcombine.high %v1356_v41, %v1360_v54 }
 0x1e1   :  { %2851 = vmatprep.subr.bf16.mxu0 %v5640_v63  ;;  %2958 = vmatpush1.bf16.msra.mxu1 %v5641_v8  ;;  %v1363_v8 = vld [vmem:[#allocation8 + $0x340] sm:$0xff] }
 0x1e2   :  { %2959 = vmatprep.subr.bf16.mxu1 %v5650_v37  ;;  %v1364_v37 = vld [vmem:[#allocation8 + $0x348] sm:$0xff] }
 0x1e4   :  { %2852 = vmatpush1.bf16.msra.mxu0 %v5639_v7 }
 0x1e5   :  { %2853 = vmatprep.subr.bf16.mxu0 %v5648_v19  ;;  %2960 = vmatpush1.bf16.msra.mxu1 %v5649_v13  ;;  %v1367_v19 = vld [vmem:[#allocation8 + $0x360] sm:$0xff]  ;;  %v5689_v13 = vcombine.low %v1364_v37, %v1368_v12 }
 0x1e6   :  { %2961 = vmatprep.subr.bf16.mxu1 %v5658_v29  ;;  %v5688_v11 = vcombine.high %v1363_v8, %v1367_v19 }
 0x1e8   :  { %2854 = vmatpush1.bf16.msra.mxu0 %v5647_v32  ;;  %v5687_v32 = vcombine.low %v1363_v8, %v1367_v19  ;;  %v7313_v8 = vld [vmem:[#allocation8 + $0x460] sm:$0xff]  ;;  %v7315_v19 = vld [vmem:[#allocation8 + $0x448] sm:$0xff] }
 0x1e9   :  { %2855 = vmatprep.subr.bf16.mxu0 %v5656_v14  ;;  %2962 = vmatpush1.bf16.msra.mxu1 %v5657_v25  ;;  %v5690_v14 = vcombine.high %v1364_v37, %v1368_v12  ;;  %v7317_v37 = vld [vmem:[#allocation8 + $0x468] sm:$0xff] }
 0x1ea   :  { %2963 = vmatprep.subr.bf16.mxu1 %v5666_v34  ;;  %v1376_v34 = vld [vmem:[#allocation8 + $0x3a8] sm:$0xff] }
 0x1eb   :  { %v5697_v45 = vcombine.low %v1372_v21, %v1376_v34  ;;  %v5698_v46 = vcombine.high %v1372_v21, %v1376_v34  ;;  %v7325_v12 = vld [vmem:[#allocation8 + $0x4a8] sm:$0xff] }
 0x1ec   :  { %2856 = vmatpush1.bf16.msra.mxu0 %v5655_v22 }
 0x1ed   :  { %2857 = vmatprep.subr.bf16.mxu0 %v5664_v26  ;;  %2964 = vmatpush1.bf16.msra.mxu1 %v5665_v47  ;;  %v5696_v26 = vcombine.high %v1371_v24, %v1375_v42  ;;  %v1383_v47 = vld [vmem:[#allocation8 + $0x3e0] sm:$0xff] }
 0x1ee   :  { %2965 = vmatprep.subr.bf16.mxu1 %v5674_v49 }
 0x1f0   :  { %2858 = vmatpush1.bf16.msra.mxu0 %v5663_v18  ;;  %v1379_v18 = vld [vmem:[#allocation8 + $0x3c0] sm:$0xff] }
 0x1f1   :  { %2859 = vmatprep.subr.bf16.mxu0 %v5672_v48  ;;  %2966 = vmatpush1.bf16.msra.mxu1 %v5673_v57  ;;  %v1380_v48 = vld [vmem:[#allocation8 + $0x3c8] sm:$0xff]  ;;  %v5703_v49 = vcombine.low %v1379_v18, %v1383_v47  ;;  %v5704_v50 = vcombine.high %v1379_v18, %v1383_v47  ;;  %v7295_v57 = vld [vmem:[#allocation8 + $0x400] sm:$0xff] }
 0x1f2   :  { %2967 = vmatprep.subr.bf16.mxu1 %v5682_v62  ;;  %v5705_v54 = vcombine.low %v1380_v48, %v1384_v51  ;;  %v7299_v62 = vld [vmem:[#allocation8 + $0x408] sm:$0xff] }
 0x1f4   :  { %2860 = vmatpush1.bf16.msra.mxu0 %v5671_v55  ;;  %v5706_v55 = vcombine.high %v1380_v48, %v1384_v51 }
 0x1f5   :  { %2861 = vmatprep.subr.bf16.mxu0 %v5680_v61  ;;  %2968 = vmatpush1.bf16.msra.mxu1 %v5681_v2  ;;  %v7297_v61 = vld [vmem:[#allocation8 + $0x420] sm:$0xff] }
 0x1f6   :  { %2969 = vmatprep.subr.bf16.mxu1 %v5690_v14 }
 0x1f8   :  { %2862 = vmatpush1.bf16.msra.mxu0 %v5679_v1  ;;  %v7305_v1 = vld [vmem:[#allocation8 + $0x428] sm:$0xff] }
 0x1f9   :  { %2863 = vmatprep.subr.bf16.mxu0 %v5688_v11  ;;  %2970 = vmatpush1.bf16.msra.mxu1 %v5689_v13  ;;  %v5713_v2 = vcombine.low %v7299_v62, %v7305_v1  ;;  %v7323_v11 = vld [vmem:[#allocation8 + $0x488] sm:$0xff] }
 0x1fa   :  { %2971 = vmatprep.subr.bf16.mxu1 %v5698_v46  ;;  %v5730_v42 = vcombine.high %v7323_v11, %v7325_v12 }
 0x1fc   :  { %2864 = vmatpush1.bf16.msra.mxu0 %v5687_v32 }
 0x1fd   :  { %2865 = vmatprep.subr.bf16.mxu0 %v5696_v26  ;;  %2972 = vmatpush1.bf16.msra.mxu1 %v5697_v45 }
 0x1fe   :  { %2973 = vmatprep.subr.bf16.mxu1 %v5706_v55 }
 0x200   :  { %2866 = vmatpush1.bf16.msra.mxu0 %v5695_v43 }
 0x201   :  { %2867 = vmatprep.subr.bf16.mxu0 %v5704_v50  ;;  %2974 = vmatpush1.bf16.msra.mxu1 %v5705_v54 }
 0x204   :  { %2868 = vmatpush1.bf16.msra.mxu0 %v5703_v49 }
 0x25f   :  { %v1156_v31 = vpop.xlane.xlu0 %1155 }
 0x260   :  { %v1157_v63 = vrot.slane %v1156_v31, 4 }
 0x262   :  { %v1158_v28 = vadd.f32 %v1157_v63, %v1156_v31  ;;  %v5711_v31 = vcombine.low %v7295_v57, %v7297_v61  ;;  %v5712_v63 = vcombine.high %v7295_v57, %v7297_v61  ;;  %v1411_v57 = vld [vmem:[#allocation8 + $0x4c0] sm:$0xff] }
 0x263   :  { %v1197_v23 = vpop.xlane.xlu0 %1196 }
 0x264   :  { %v1159_v3 = vrot.slane %v1158_v28, 2  ;;  %v1198_v7 = vrot.slane %v1197_v23, 4  ;;  %2890 = vmatprep.subr.bf16.mxu0 %v5712_v63 }
 0x266   :  { %v1199_v40 = vadd.f32 %v1198_v7, %v1197_v23  ;;  %v1160_v39 = vadd.f32 %v1159_v3, %v1158_v28  ;;  %v5714_v28 = vcombine.high %v7299_v62, %v7305_v1  ;;  %v7311_v7 = vld [vmem:[#allocation8 + $0x440] sm:$0xff]  ;;  %v1412_v1 = vld [vmem:[#allocation8 + $0x4c8] sm:$0xff] }
 0x267   :  { %v5719_v13 = vcombine.low %v7311_v7, %v7313_v8  ;;  %v5720_v14 = vcombine.high %v7311_v7, %v7313_v8  ;;  %v1415_v62 = vld [vmem:[#allocation8 + $0x4e0] sm:$0xff] }
 0x268   :  { %v1200_v29 = vrot.slane %v1199_v40, 2  ;;  %v1161_v16 = vrot.slane %v1160_v39, 1  ;;  %2996 = vmatprep.subr.bf16.mxu1 %v5714_v28 }
 0x26a   :  { %v1201_v22 = vadd.f32 %v1200_v29, %v1199_v40  ;;  %v1162_v25 = vadd.f32 %v1161_v16, %v1160_v39  ;;  %v7319_v40 = vld [vmem:[#allocation8 + $0x480] sm:$0xff]  ;;  %v5721_v29 = vcombine.low %v7315_v19, %v7317_v37  ;;  %v5722_v16 = vcombine.high %v7315_v19, %v7317_v37 }
 0x26b   :  { %v7321_v39 = vld [vmem:[#allocation8 + $0x4a0] sm:$0xff] }
 0x26c   :  { %6257 = vpush %v1162_v25  ;;  %v1202_v20 = vrot.slane %v1201_v22, 1  ;;  %v5728_v24 = vcombine.high %v7319_v40, %v7321_v39 }
 0x26e   :  { %v1203_v41 = vadd.f32 %v1202_v20, %v1201_v22 }
 0x270   :  { %6259 = vpush %v1203_v41 }
 0x29d   :  { %s6258_s2 = spop %6257 }
 0x29e   :  { %s1164_s15 = smul.f32 6.1035156e-05, %s6258_s2 }
 0x2a0   :  { %s1206_s16 = smul.f32 %s1164_s15, %s1164_s15 }
 0x2a1   :  { %s6260_s13 = spop %6259 }
 0x2a2   :  { %s1205_s22 = smul.f32 6.1035156e-05, %s6260_s13 }
 0x2a4   :  { %s1207_s23 = ssub.f32 %s1205_s22, %s1206_s16  ;;  %s7002_s16 = smov [#allocation12]  }
 0x2a5   :  { %s5439_s13 = sshll.u32 %s7002_s16, 4  ;;  %s5440_s13 = int_to_ptr.vmem [resolvable:$true] %s5439_s13 }
 0x2a6   :  { %s1209_s0 = sadd.f32 1e-05, %s1207_s23  ;;  %s6961_s22 = scalar_lea.vmem %s5440_s13, 2048 }
 0x2a7   :  { %p6962_p9 = scmp.ne.s32.totalorder %s5440_s13, %s6961_s22  ;;  %p6966_p10 = scmp.lt.s32.totalorder %s5440_s13, %s5440_s13 }
 0x2a8   :  { %v1210_v23 = vstv %s1209_s0  ;;  %p6967_p11 = scmp.lt.s32.totalorder %s6961_s22, %s6961_s22 }
 0x2a9   :  { %6855 = vrsqrt.f32 %v1210_v23 }
 0x2aa   :  { %p6968_p12 = por %p6967_p11, %p6966_p10 }
 0x2ac   :  { %p6969_p13 = pnand %p6968_p12, %p6962_p9 }
 0x2b3   :  { %v6856_v3 = vpop.eup %6855 }
 0x2b4   :  { %6261 = vpush %v6856_v3 }
 0x2e5   :  { %s6262_s25 = spop %6261 }
 0x2e6   :  { %s1213_s26 = smul.f32 %s6262_s25, %s1208_s20 }
 0x2e8   :  { %s1215_s27 = smul.f32 %s1213_s26, %s1164_s15  ;;  %v1217_v32 = vstv %s1213_s26 }
 0x2e9   :  { %v1219_v21 = vmul.f32 %v1217_v32, %v7195_v58  ;;  %v1223_v22 = vmul.f32 %v1217_v32, %v7219_v15  ;;  %v1218_v25 = vmul.f32 %v1217_v32, %v7191_v53  ;;  %v1222_v26 = vmul.f32 %v1217_v32, %v7213_v6 }
 0x2ea   :  { %s1216_s29 = ssub.f32 %s5582_s24, %s1215_s27  ;;  %v1227_v43 = vmul.f32 %v1217_v32, %v7247_v59  ;;  %v1231_v45 = vmul.f32 %v1217_v32, %v7273_v10  ;;  %v1226_v46 = vmul.f32 %v1217_v32, %v7240_v52  ;;  %v1220_v51 = vmul.f32 %v1217_v32, %v7193_v56 }
 0x2eb   :  { %v1224_v41 = vmul.f32 %v1217_v32, %v7222_v5  ;;  %v1229_v63 = vmul.f32 %v1217_v32, %v7257_v0  ;;  %v1233_v28 = vmul.f32 %v1217_v32, %v7287_v17  ;;  %v1230_v23 = vmul.f32 %v1217_v32, %v7267_v9 }
 0x2ec   :  { %v1234_v34 = vstv %s1216_s29  ;;  %v1228_v8 = vmul.f32 %v1217_v32, %v7250_v60 }
 0x2ed   :  { %v1236_v20 = vadd.f32 %v1234_v34, %v1219_v21  ;;  %v1240_v18 = vadd.f32 %v1234_v34, %v1223_v22  ;;  %v1235_v47 = vadd.f32 %v1234_v34, %v1218_v25  ;;  %v1239_v48 = vadd.f32 %v1234_v34, %v1222_v26 }
 0x2ee   :  { %v1244_v49 = vadd.f32 %v1234_v34, %v1227_v43  ;;  %v1248_v50 = vadd.f32 %v1234_v34, %v1231_v45  ;;  %v1237_v3 = vadd.f32 %v1234_v34, %v1220_v51  ;;  %v1241_v7 = vadd.f32 %v1234_v34, %v1224_v41  ;;  %v1423_v51 = vld [vmem:[#allocation8 + $0x520] sm:$0xff]  ;;  %v1420_v41 = vld [vmem:[#allocation8 + $0x508] sm:$0xff] }
 0x2ef   :  { %v7348_v54 = vpack.c.bf16 %v1240_v18, %v1236_v20  ;;  %v7350_v55 = vpack.c.bf16 %v1239_v48, %v1235_v47  ;;  %v1246_v37 = vadd.f32 %v1234_v34, %v1229_v63  ;;  %v1250_v21 = vadd.f32 %v1234_v34, %v1233_v28  ;;  %v1424_v63 = vld [vmem:[#allocation8 + $0x528] sm:$0xff] }
 0x2f0   :  { %v7358_v19 = vpack.c.bf16 %v1248_v50, %v1244_v49  ;;  %v7362_v22 = vpack.c.bf16 %v1241_v7, %v1237_v3  ;;  %v1232_v25 = vmul.f32 %v1217_v32, %v7277_v38  ;;  %v1245_v26 = vadd.f32 %v1234_v34, %v1228_v8  ;;  %v1432_v28 = vld [vmem:[#allocation8 + $0x568] sm:$0xff] }
 0x2f1   :  { %2869 = vmatprep.mubr.bf16.mxu0 %v7348_v54  ;;  %2975 = vmatprep.mubr.bf16.mxu1 %v7348_v54  ;;  %v1221_v43 = vmul.f32 %v1217_v32, %v7205_v4  ;;  %v1225_v45 = vmul.f32 %v1217_v32, %v7229_v44  ;;  %v7373_v20 = vpack.c.bf16 %v1250_v21, %v1246_v37  ;;  %v1435_v37 = vld [vmem:[#allocation8 + $0x580] sm:$0xff] }
 0x2f2   :  { %2870 = vmatmul.mubr.bf16.vlgmr.msra.gmra.mrb[8].mxu0 %v7350_v55  ;;  %2976 = vmatmul.mubr.bf16.vlgmr.msra.gmra.mrb[8].mxu1 %v7350_v55  ;;  %v1243_v18 = vadd.f32 %v1234_v34, %v1226_v46  ;;  %v1247_v47 = vadd.f32 %v1234_v34, %v1230_v23  ;;  %v1249_v48 = vadd.f32 %v1234_v34, %v1232_v25  ;;  %v1439_v21 = vld [vmem:[#allocation8 + $0x5a0] sm:$0xff]  ;;  %v1436_v25 = vld [vmem:[#allocation8 + $0x588] sm:$0xff] }
 0x2f3   :  { %2891 = vmatpush1.bf16.msra.mxu0 %v5711_v31  ;;  %2997 = vmatpush1.bf16.msra.mxu1 %v5713_v2  ;;  %v1238_v61 = vadd.f32 %v1234_v34, %v1221_v43  ;;  %v1242_v31 = vadd.f32 %v1234_v34, %v1225_v45  ;;  %v1416_v2 = vld [vmem:[#allocation8 + $0x4e8] sm:$0xff]  ;;  %v5727_v32 = vcombine.low %v7319_v40, %v7321_v39 }
 0x2f4   :  { %2879 = vmatprep.mubr.bf16.mxu0 %v7358_v19  ;;  %2985 = vmatprep.mubr.bf16.mxu1 %v7358_v19  ;;  %v7377_v49 = vpack.c.bf16 %v1249_v48, %v1245_v26  ;;  %v5729_v46 = vcombine.low %v7323_v11, %v7325_v12  ;;  %v5736_v50 = vcombine.high %v1411_v57, %v1415_v62  ;;  %v1440_v26 = vld [vmem:[#allocation8 + $0x5a8] sm:$0xff]  ;;  %v1443_v48 = vld [vmem:[#allocation8 + $0x5c0] sm:$0xff] }
 0x2f5   :  { %2892 = vmatprep.subr.bf16.mxu0 %v5720_v14  ;;  %2998 = vmatprep.subr.bf16.mxu1 %v5722_v16  ;;  %v7383_v14 = vpack.c.bf16 %v1247_v47, %v1243_v18  ;;  %v1419_v16 = vld [vmem:[#allocation8 + $0x500] sm:$0xff]  ;;  %v5738_v34 = vcombine.high %v1412_v1, %v1416_v2  ;;  %v5735_v40 = vcombine.low %v1411_v57, %v1415_v62 }
 0x2f6   :  { %v5737_v39 = vcombine.low %v1412_v1, %v1416_v2  ;;  %v5744_v11 = vcombine.high %v1419_v16, %v1423_v51  ;;  %v5746_v12 = vcombine.high %v1420_v41, %v1424_v63  ;;  %v5743_v23 = vcombine.low %v1419_v16, %v1423_v51  ;;  %v1447_v57 = vld [vmem:[#allocation8 + $0x5e0] sm:$0xff] }
 0x2f7   :  { %2893 = vmatpush1.bf16.msra.mxu0 %v5719_v13  ;;  %2999 = vmatpush1.bf16.msra.mxu1 %v5721_v29  ;;  %v7387_v13 = vpack.c.bf16 %v1242_v31, %v1238_v61  ;;  %v1427_v29 = vld [vmem:[#allocation8 + $0x540] sm:$0xff]  ;;  %v5745_v3 = vcombine.low %v1420_v41, %v1424_v63  ;;  %v5760_v18 = vcombine.high %v1435_v37, %v1439_v21  ;;  %v1444_v61 = vld [vmem:[#allocation8 + $0x5c8] sm:$0xff] }
 0x2f8   :  { %2894 = vmatprep.subr.bf16.mxu0 %v5728_v24  ;;  %3000 = vmatprep.subr.bf16.mxu1 %v5730_v42  ;;  %v1431_v24 = vld [vmem:[#allocation8 + $0x560] sm:$0xff]  ;;  %v1428_v42 = vld [vmem:[#allocation8 + $0x548] sm:$0xff]  ;;  %v5762_v47 = vcombine.high %v1436_v25, %v1440_v26  ;;  %v5759_v62 = vcombine.low %v1435_v37, %v1439_v21  ;;  %v5761_v1 = vcombine.low %v1436_v25, %v1440_v26 }
 0x2f9   :  { %v5752_v7 = vcombine.high %v1427_v29, %v1431_v24  ;;  %v5754_v8 = vcombine.high %v1428_v42, %v1432_v28  ;;  %v5751_v43 = vcombine.low %v1427_v29, %v1431_v24  ;;  %v5753_v45 = vcombine.low %v1428_v42, %v1432_v28  ;;  %v1448_v31 = vld [vmem:[#allocation8 + $0x5e8] sm:$0xff]  ;;  %v1455_v16 = vld [vmem:[#allocation8 + $0x620] sm:$0xff] }
 0x2fa   :  { %2880 = vmatmul.mubr.bf16.gmra.mrb[12].mxu0 %v7383_v14  ;;  %2986 = vmatmul.mubr.bf16.gmra.mrb[12].mxu1 %v7383_v14  ;;  %v5768_v2 = vcombine.high %v1443_v48, %v1447_v57  ;;  %v5767_v51 = vcombine.low %v1443_v48, %v1447_v57  ;;  %v5769_v41 = vcombine.low %v1444_v61, %v1448_v31  ;;  %v1464_v29 = vld [vmem:[#allocation8 + $0x668] sm:$0xff] }
 0x2fb   :  { %2895 = vmatpush1.bf16.msra.mxu0 %v5727_v32  ;;  %3001 = vmatpush1.bf16.msra.mxu1 %v5729_v46  ;;  %v5770_v32 = vcombine.high %v1444_v61, %v1448_v31  ;;  %v1451_v46 = vld [vmem:[#allocation8 + $0x600] sm:$0xff]  ;;  %v1472_v37 = vld [vmem:[#allocation8 + $0x6a8] sm:$0xff] }
 0x2fc   :  { %2922 = vmatprep.mubr.bf16.mxu0 %v7387_v13  ;;  %3028 = vmatprep.mubr.bf16.mxu1 %v7387_v13  ;;  %v5776_v63 = vcombine.high %v1451_v46, %v1455_v16  ;;  %v5775_v24 = vcombine.low %v1451_v46, %v1455_v16  ;;  %v1480_v48 = vld [vmem:[#allocation8 + $0x6e8] sm:$0xff] }
 0x2fd   :  { %2896 = vmatprep.subr.bf16.mxu0 %v5736_v50  ;;  %3002 = vmatprep.subr.bf16.mxu1 %v5738_v34  ;;  %v1452_v50 = vld [vmem:[#allocation8 + $0x608] sm:$0xff] }
 0x2fe   :  { %v1456_v34 = vld [vmem:[#allocation8 + $0x628] sm:$0xff] }
 0x2ff   :  { %2897 = vmatpush1.bf16.msra.mxu0 %v5735_v40  ;;  %3003 = vmatpush1.bf16.msra.mxu1 %v5737_v39  ;;  %v5778_v40 = vcombine.high %v1452_v50, %v1456_v34  ;;  %v1459_v39 = vld [vmem:[#allocation8 + $0x640] sm:$0xff]  ;;  %v5777_v42 = vcombine.low %v1452_v50, %v1456_v34  ;;  %v1488_v46 = vld [vmem:[#allocation8 + $0x728] sm:$0xff] }
 0x300   :  { %2898 = vmatprep.subr.bf16.mxu0 %v5744_v11  ;;  %3004 = vmatprep.subr.bf16.mxu1 %v5746_v12  ;;  %v1463_v11 = vld [vmem:[#allocation8 + $0x660] sm:$0xff]  ;;  %v1460_v12 = vld [vmem:[#allocation8 + $0x648] sm:$0xff] }
 0x301   :  { %v5784_v28 = vcombine.high %v1459_v39, %v1463_v11  ;;  %v5783_v21 = vcombine.low %v1459_v39, %v1463_v11  ;;  %v5785_v25 = vcombine.low %v1460_v12, %v1464_v29  ;;  %v1496_v39 = vld [vmem:[#allocation8 + $0x768] sm:$0xff] }
 0x303   :  { %2899 = vmatpush1.bf16.msra.mxu0 %v5743_v23  ;;  %3005 = vmatpush1.bf16.msra.mxu1 %v5745_v3  ;;  %v5786_v23 = vcombine.high %v1460_v12, %v1464_v29  ;;  %v1467_v3 = vld [vmem:[#allocation8 + $0x680] sm:$0xff] }
 0x304   :  { %2900 = vmatprep.subr.bf16.mxu0 %v5752_v7  ;;  %3006 = vmatprep.subr.bf16.mxu1 %v5754_v8  ;;  %v1471_v7 = vld [vmem:[#allocation8 + $0x6a0] sm:$0xff]  ;;  %v1468_v8 = vld [vmem:[#allocation8 + $0x688] sm:$0xff] }
 0x305   :  { %v5792_v26 = vcombine.high %v1467_v3, %v1471_v7  ;;  %v5791_v57 = vcombine.low %v1467_v3, %v1471_v7  ;;  %v5793_v61 = vcombine.low %v1468_v8, %v1472_v37  ;;  %v1504_v3 = vld [vmem:[#allocation8 + $0x7a8] sm:$0xff] }
 0x307   :  { %2901 = vmatpush1.bf16.msra.mxu0 %v5751_v43  ;;  %3007 = vmatpush1.bf16.msra.mxu1 %v5753_v45  ;;  %v5794_v43 = vcombine.high %v1468_v8, %v1472_v37  ;;  %v1475_v45 = vld [vmem:[#allocation8 + $0x6c0] sm:$0xff] }
 0x308   :  { %2902 = vmatprep.subr.bf16.mxu0 %v5760_v18  ;;  %3008 = vmatprep.subr.bf16.mxu1 %v5762_v47  ;;  %v1479_v18 = vld [vmem:[#allocation8 + $0x6e0] sm:$0xff]  ;;  %v1476_v47 = vld [vmem:[#allocation8 + $0x6c8] sm:$0xff] }
 0x309   :  { %v5800_v31 = vcombine.high %v1475_v45, %v1479_v18  ;;  %v5799_v16 = vcombine.low %v1475_v45, %v1479_v18  ;;  %v5801_v50 = vcombine.low %v1476_v47, %v1480_v48  ;;  %v1512_v45 = vld [vmem:[#allocation8 + $0x7e8] sm:$0xff] }
 0x30b   :  { %2903 = vmatpush1.bf16.msra.mxu0 %v5759_v62  ;;  %3009 = vmatpush1.bf16.msra.mxu1 %v5761_v1  ;;  %v5802_v62 = vcombine.high %v1476_v47, %v1480_v48  ;;  %v1483_v1 = vld [vmem:[#allocation8 + $0x700] sm:$0xff] }
 0x30c   :  { %2904 = vmatprep.subr.bf16.mxu0 %v5768_v2  ;;  %3010 = vmatprep.subr.bf16.mxu1 %v5770_v32  ;;  %v1487_v2 = vld [vmem:[#allocation8 + $0x720] sm:$0xff]  ;;  %v1484_v32 = vld [vmem:[#allocation8 + $0x708] sm:$0xff] }
 0x30d   :  { %v5808_v34 = vcombine.high %v1483_v1, %v1487_v2  ;;  %v5807_v11 = vcombine.low %v1483_v1, %v1487_v2  ;;  %v5809_v12 = vcombine.low %v1484_v32, %v1488_v46  ;;  %v1266_v1 = vld [vmem:[#allocation8 + $0x38] sm:$0xff] }
 0x30f   :  { %2905 = vmatpush1.bf16.msra.mxu0 %v5767_v51  ;;  %3011 = vmatpush1.bf16.msra.mxu1 %v5769_v41  ;;  %v5810_v51 = vcombine.high %v1484_v32, %v1488_v46  ;;  %v1491_v41 = vld [vmem:[#allocation8 + $0x740] sm:$0xff] }
 0x310   :  { %2906 = vmatprep.subr.bf16.mxu0 %v5776_v63  ;;  %3012 = vmatprep.subr.bf16.mxu1 %v5778_v40  ;;  %v1495_v63 = vld [vmem:[#allocation8 + $0x760] sm:$0xff]  ;;  %v1492_v40 = vld [vmem:[#allocation8 + $0x748] sm:$0xff] }
 0x311   :  { %v5816_v29 = vcombine.high %v1491_v41, %v1495_v63  ;;  %v5815_v7 = vcombine.low %v1491_v41, %v1495_v63  ;;  %v5817_v8 = vcombine.low %v1492_v40, %v1496_v39  ;;  %v1274_v41 = vld [vmem:[#allocation8 + $0x78] sm:$0xff] }
 0x313   :  { %2907 = vmatpush1.bf16.msra.mxu0 %v5775_v24  ;;  %3013 = vmatpush1.bf16.msra.mxu1 %v5777_v42  ;;  %v5818_v24 = vcombine.high %v1492_v40, %v1496_v39  ;;  %v1499_v42 = vld [vmem:[#allocation8 + $0x780] sm:$0xff] }
 0x314   :  { %2908 = vmatprep.subr.bf16.mxu0 %v5784_v28  ;;  %3014 = vmatprep.subr.bf16.mxu1 %v5786_v23  ;;  %v1503_v28 = vld [vmem:[#allocation8 + $0x7a0] sm:$0xff]  ;;  %v1500_v23 = vld [vmem:[#allocation8 + $0x788] sm:$0xff] }
 0x315   :  { %v5824_v37 = vcombine.high %v1499_v42, %v1503_v28  ;;  %v5823_v18 = vcombine.low %v1499_v42, %v1503_v28  ;;  %v5825_v47 = vcombine.low %v1500_v23, %v1504_v3  ;;  %v1282_v42 = vld [vmem:[#allocation8 + $0xb8] sm:$0xff] }
 0x317   :  { %2909 = vmatpush1.bf16.msra.mxu0 %v5783_v21  ;;  %3015 = vmatpush1.bf16.msra.mxu1 %v5785_v25  ;;  %v5826_v21 = vcombine.high %v1500_v23, %v1504_v3  ;;  %v1507_v25 = vld [vmem:[#allocation8 + $0x7c0] sm:$0xff] }
 0x318   :  { %2910 = vmatprep.subr.bf16.mxu0 %v5792_v26  ;;  %3016 = vmatprep.subr.bf16.mxu1 %v5794_v43  ;;  %v1511_v26 = vld [vmem:[#allocation8 + $0x7e0] sm:$0xff]  ;;  %v1508_v43 = vld [vmem:[#allocation8 + $0x7c8] sm:$0xff] }
 0x319   :  { %v5832_v48 = vcombine.high %v1507_v25, %v1511_v26  ;;  %v5831_v2 = vcombine.low %v1507_v25, %v1511_v26  ;;  %v5833_v32 = vcombine.low %v1508_v43, %v1512_v45  ;;  %v1290_v25 = vld [vmem:[#allocation8 + $0xf8] sm:$0xff] }
 0x31b   :  { %2911 = vmatpush1.bf16.msra.mxu0 %v5791_v57  ;;  %3017 = vmatpush1.bf16.msra.mxu1 %v5793_v61  ;;  %v5834_v57 = vcombine.high %v1508_v43, %v1512_v45  ;;  %v1261_v61 = vld [vmem:[#allocation8 + $0x10] sm:$0xff] }
 0x31c   :  { %2912 = vmatprep.subr.bf16.mxu0 %v5800_v31  ;;  %3018 = vmatprep.subr.bf16.mxu1 %v5802_v62  ;;  %v1265_v31 = vld [vmem:[#allocation8 + $0x30] sm:$0xff]  ;;  %v1262_v62 = vld [vmem:[#allocation8 + $0x18] sm:$0xff] }
 0x31d   :  { %v5588_v46 = vcombine.high %v1261_v61, %v1265_v31  ;;  %v5587_v63 = vcombine.low %v1261_v61, %v1265_v31  ;;  %v5589_v40 = vcombine.low %v1262_v62, %v1266_v1  ;;  %v1298_v61 = vld [vmem:[#allocation8 + $0x138] sm:$0xff] }
 0x31f   :  { %2913 = vmatpush1.bf16.msra.mxu0 %v5799_v16  ;;  %3019 = vmatpush1.bf16.msra.mxu1 %v5801_v50  ;;  %v5590_v16 = vcombine.high %v1262_v62, %v1266_v1  ;;  %v1269_v50 = vld [vmem:[#allocation8 + $0x50] sm:$0xff] }
 0x320   :  { %2914 = vmatprep.subr.bf16.mxu0 %v5808_v34  ;;  %3020 = vmatprep.subr.bf16.mxu1 %v5810_v51  ;;  %v1273_v34 = vld [vmem:[#allocation8 + $0x70] sm:$0xff]  ;;  %v1270_v51 = vld [vmem:[#allocation8 + $0x58] sm:$0xff] }
 0x321   :  { %v5596_v39 = vcombine.high %v1269_v50, %v1273_v34  ;;  %v5595_v28 = vcombine.low %v1269_v50, %v1273_v34  ;;  %v5597_v23 = vcombine.low %v1270_v51, %v1274_v41  ;;  %v1306_v50 = vld [vmem:[#allocation8 + $0x178] sm:$0xff] }
 0x323   :  { %2915 = vmatpush1.bf16.msra.mxu0 %v5807_v11  ;;  %3021 = vmatpush1.bf16.msra.mxu1 %v5809_v12  ;;  %v5598_v11 = vcombine.high %v1270_v51, %v1274_v41  ;;  %v1277_v12 = vld [vmem:[#allocation8 + $0x90] sm:$0xff] }
 0x324   :  { %2916 = vmatprep.subr.bf16.mxu0 %v5816_v29  ;;  %3022 = vmatprep.subr.bf16.mxu1 %v5818_v24  ;;  %v1281_v29 = vld [vmem:[#allocation8 + $0xb0] sm:$0xff]  ;;  %v1278_v24 = vld [vmem:[#allocation8 + $0x98] sm:$0xff] }
 0x325   :  { %v5604_v3 = vcombine.high %v1277_v12, %v1281_v29  ;;  %v5603_v26 = vcombine.low %v1277_v12, %v1281_v29  ;;  %v5605_v43 = vcombine.low %v1278_v24, %v1282_v42 }
 0x327   :  { %2917 = vmatpush1.bf16.msra.mxu0 %v5815_v7  ;;  %3023 = vmatpush1.bf16.msra.mxu1 %v5817_v8  ;;  %v5606_v7 = vcombine.high %v1278_v24, %v1282_v42  ;;  %v1285_v8 = vld [vmem:[#allocation8 + $0xd0] sm:$0xff] }
 0x328   :  { %2918 = vmatprep.subr.bf16.mxu0 %v5824_v37  ;;  %3024 = vmatprep.subr.bf16.mxu1 %v5826_v21  ;;  %v1289_v37 = vld [vmem:[#allocation8 + $0xf0] sm:$0xff]  ;;  %v1286_v21 = vld [vmem:[#allocation8 + $0xd8] sm:$0xff] }
 0x329   :  { %v5612_v45 = vcombine.high %v1285_v8, %v1289_v37  ;;  %v5611_v31 = vcombine.low %v1285_v8, %v1289_v37  ;;  %v5613_v62 = vcombine.low %v1286_v21, %v1290_v25 }
 0x32b   :  { %2919 = vmatpush1.bf16.msra.mxu0 %v5823_v18  ;;  %3025 = vmatpush1.bf16.msra.mxu1 %v5825_v47  ;;  %v5614_v18 = vcombine.high %v1286_v21, %v1290_v25  ;;  %v1293_v47 = vld [vmem:[#allocation8 + $0x110] sm:$0xff] }
 0x32c   :  { %2920 = vmatprep.subr.bf16.mxu0 %v5832_v48  ;;  %3026 = vmatprep.subr.bf16.mxu1 %v5834_v57  ;;  %v1297_v48 = vld [vmem:[#allocation8 + $0x130] sm:$0xff]  ;;  %v1294_v57 = vld [vmem:[#allocation8 + $0x118] sm:$0xff] }
 0x32d   :  { %v5620_v1 = vcombine.high %v1293_v47, %v1297_v48  ;;  %v5619_v34 = vcombine.low %v1293_v47, %v1297_v48  ;;  %v5621_v51 = vcombine.low %v1294_v57, %v1298_v61 }
 0x32f   :  { %2921 = vmatpush1.bf16.msra.mxu0 %v5831_v2  ;;  %3027 = vmatpush1.bf16.msra.mxu1 %v5833_v32  ;;  %v5622_v2 = vcombine.high %v1294_v57, %v1298_v61  ;;  %v1301_v32 = vld [vmem:[#allocation8 + $0x150] sm:$0xff] }
 0x330   :  { %3049 = vmatprep.subr.bf16.mxu0 %v5588_v46  ;;  %3155 = vmatprep.subr.bf16.mxu1 %v5590_v16  ;;  %v1305_v46 = vld [vmem:[#allocation8 + $0x170] sm:$0xff]  ;;  %v1302_v16 = vld [vmem:[#allocation8 + $0x158] sm:$0xff] }
 0x331   :  { %v5628_v41 = vcombine.high %v1301_v32, %v1305_v46  ;;  %v5627_v12 = vcombine.low %v1301_v32, %v1305_v46  ;;  %v5629_v29 = vcombine.low %v1302_v16, %v1306_v50 }
 0x332   :  { %2923 = vmatmul.mubr.bf16.vlgmr.msra.gmra.mrb[8].mxu0 %v7362_v22  ;;  %3029 = vmatmul.mubr.bf16.vlgmr.msra.gmra.mrb[8].mxu1 %v7362_v22 }
 0x333   :  { %2932 = vmatprep.mubr.bf16.mxu0 %v7373_v20  ;;  %3038 = vmatprep.mubr.bf16.mxu1 %v7373_v20 }
 0x334   :  { %3050 = vmatpush1.bf16.msra.mxu0 %v5587_v63  ;;  %3156 = vmatpush1.bf16.msra.mxu1 %v5589_v40  ;;  %v1309_v63 = vld [vmem:[#allocation8 + $0x190] sm:$0xff] }
 0x335   :  { %3051 = vmatprep.subr.bf16.mxu0 %v5596_v39  ;;  %3157 = vmatprep.subr.bf16.mxu1 %v5598_v11  ;;  %v1313_v40 = vld [vmem:[#allocation8 + $0x1b0] sm:$0xff]  ;;  %v1310_v39 = vld [vmem:[#allocation8 + $0x198] sm:$0xff] }
 0x336   :  { %v1314_v11 = vld [vmem:[#allocation8 + $0x1b8] sm:$0xff]  ;;  %v5636_v24 = vcombine.high %v1309_v63, %v1313_v40  ;;  %v5635_v8 = vcombine.low %v1309_v63, %v1313_v40 }
 0x337   :  { %v5638_v42 = vcombine.high %v1310_v39, %v1314_v11  ;;  %v5637_v37 = vcombine.low %v1310_v39, %v1314_v11 }
 0x338   :  { %3052 = vmatpush1.bf16.msra.mxu0 %v5595_v28  ;;  %3158 = vmatpush1.bf16.msra.mxu1 %v5597_v23  ;;  %v1317_v28 = vld [vmem:[#allocation8 + $0x1d0] sm:$0xff] }
 0x339   :  { %3053 = vmatprep.subr.bf16.mxu0 %v5604_v3  ;;  %3159 = vmatprep.subr.bf16.mxu1 %v5606_v7  ;;  %v1321_v23 = vld [vmem:[#allocation8 + $0x1f0] sm:$0xff]  ;;  %v1318_v3 = vld [vmem:[#allocation8 + $0x1d8] sm:$0xff] }
 0x33a   :  { %2933 = vmatmul.mubr.bf16.gmra.mrb[12].mxu0 %v7377_v49  ;;  %3039 = vmatmul.mubr.bf16.gmra.mrb[12].mxu1 %v7377_v49  ;;  %v1322_v7 = vld [vmem:[#allocation8 + $0x1f8] sm:$0xff]  ;;  %v5644_v21 = vcombine.high %v1317_v28, %v1321_v23  ;;  %v5643_v47 = vcombine.low %v1317_v28, %v1321_v23 }
 0x33b   :  { %3081 = vmatprep.mubr.bf16.mxu0 %v7348_v54  ;;  %3187 = vmatprep.mubr.bf16.mxu1 %v7348_v54  ;;  %v5630_v54 = vcombine.high %v1302_v16, %v1306_v50  ;;  %v5646_v25 = vcombine.high %v1318_v3, %v1322_v7  ;;  %v5645_v48 = vcombine.low %v1318_v3, %v1322_v7 }
 0x33c   :  { %3054 = vmatpush1.bf16.msra.mxu0 %v5603_v26  ;;  %3160 = vmatpush1.bf16.msra.mxu1 %v5605_v43  ;;  %v1325_v26 = vld [vmem:[#allocation8 + $0x210] sm:$0xff] }
 0x33d   :  { %3055 = vmatprep.subr.bf16.mxu0 %v5612_v45  ;;  %3161 = vmatprep.subr.bf16.mxu1 %v5614_v18  ;;  %v1329_v43 = vld [vmem:[#allocation8 + $0x230] sm:$0xff]  ;;  %v1326_v45 = vld [vmem:[#allocation8 + $0x218] sm:$0xff] }
 0x33e   :  { %v1330_v18 = vld [vmem:[#allocation8 + $0x238] sm:$0xff]  ;;  %v5652_v57 = vcombine.high %v1325_v26, %v1329_v43  ;;  %v5651_v32 = vcombine.low %v1325_v26, %v1329_v43 }
 0x33f   :  { %v5654_v61 = vcombine.high %v1326_v45, %v1330_v18  ;;  %v5653_v46 = vcombine.low %v1326_v45, %v1330_v18 }
 0x340   :  { %3056 = vmatpush1.bf16.msra.mxu0 %v5611_v31  ;;  %3162 = vmatpush1.bf16.msra.mxu1 %v5613_v62  ;;  %v1333_v31 = vld [vmem:[#allocation8 + $0x250] sm:$0xff] }
 0x341   :  { %3057 = vmatprep.subr.bf16.mxu0 %v5620_v1  ;;  %3163 = vmatprep.subr.bf16.mxu1 %v5622_v2  ;;  %v1337_v62 = vld [vmem:[#allocation8 + $0x270] sm:$0xff]  ;;  %v1334_v1 = vld [vmem:[#allocation8 + $0x258] sm:$0xff] }
 0x342   :  { %v1338_v2 = vld [vmem:[#allocation8 + $0x278] sm:$0xff]  ;;  %v5660_v16 = vcombine.high %v1333_v31, %v1337_v62  ;;  %v5659_v63 = vcombine.low %v1333_v31, %v1337_v62 }
 0x343   :  { %v5662_v50 = vcombine.high %v1334_v1, %v1338_v2  ;;  %v5661_v40 = vcombine.low %v1334_v1, %v1338_v2 }
 0x344   :  { %3058 = vmatpush1.bf16.msra.mxu0 %v5619_v34  ;;  %3164 = vmatpush1.bf16.msra.mxu1 %v5621_v51  ;;  %v1341_v34 = vld [vmem:[#allocation8 + $0x290] sm:$0xff] }
 0x345   :  { %3059 = vmatprep.subr.bf16.mxu0 %v5628_v41  ;;  %3165 = vmatprep.subr.bf16.mxu1 %v5630_v54  ;;  %v1345_v51 = vld [vmem:[#allocation8 + $0x2b0] sm:$0xff]  ;;  %v1342_v41 = vld [vmem:[#allocation8 + $0x298] sm:$0xff] }
 0x346   :  { %v1346_v54 = vld [vmem:[#allocation8 + $0x2b8] sm:$0xff]  ;;  %v5668_v39 = vcombine.high %v1341_v34, %v1345_v51  ;;  %v5667_v28 = vcombine.low %v1341_v34, %v1345_v51 }
 0x347   :  { %v5670_v11 = vcombine.high %v1342_v41, %v1346_v54  ;;  %v5669_v23 = vcombine.low %v1342_v41, %v1346_v54 }
 0x348   :  { %3060 = vmatpush1.bf16.msra.mxu0 %v5627_v12  ;;  %3166 = vmatpush1.bf16.msra.mxu1 %v5629_v29  ;;  %v1349_v12 = vld [vmem:[#allocation8 + $0x2d0] sm:$0xff] }
 0x349   :  { %3061 = vmatprep.subr.bf16.mxu0 %v5636_v24  ;;  %3167 = vmatprep.subr.bf16.mxu1 %v5638_v42  ;;  %v1353_v29 = vld [vmem:[#allocation8 + $0x2f0] sm:$0xff]  ;;  %v1350_v24 = vld [vmem:[#allocation8 + $0x2d8] sm:$0xff] }
 0x34a   :  { %v1354_v42 = vld [vmem:[#allocation8 + $0x2f8] sm:$0xff]  ;;  %v5676_v3 = vcombine.high %v1349_v12, %v1353_v29  ;;  %v5675_v26 = vcombine.low %v1349_v12, %v1353_v29 }
 0x34b   :  { %v5678_v7 = vcombine.high %v1350_v24, %v1354_v42  ;;  %v5677_v43 = vcombine.low %v1350_v24, %v1354_v42 }
 0x34c   :  { %3062 = vmatpush1.bf16.msra.mxu0 %v5635_v8  ;;  %3168 = vmatpush1.bf16.msra.mxu1 %v5637_v37  ;;  %v1357_v8 = vld [vmem:[#allocation8 + $0x310] sm:$0xff] }
 0x34d   :  { %3063 = vmatprep.subr.bf16.mxu0 %v5644_v21  ;;  %3169 = vmatprep.subr.bf16.mxu1 %v5646_v25  ;;  %v1361_v37 = vld [vmem:[#allocation8 + $0x330] sm:$0xff]  ;;  %v1358_v21 = vld [vmem:[#allocation8 + $0x318] sm:$0xff] }
 0x34e   :  { %v1362_v25 = vld [vmem:[#allocation8 + $0x338] sm:$0xff]  ;;  %v5684_v45 = vcombine.high %v1357_v8, %v1361_v37  ;;  %v5683_v31 = vcombine.low %v1357_v8, %v1361_v37 }
 0x34f   :  { %v5686_v18 = vcombine.high %v1358_v21, %v1362_v25  ;;  %v5685_v62 = vcombine.low %v1358_v21, %v1362_v25 }
 0x350   :  { %3064 = vmatpush1.bf16.msra.mxu0 %v5643_v47  ;;  %3170 = vmatpush1.bf16.msra.mxu1 %v5645_v48  ;;  %v1365_v47 = vld [vmem:[#allocation8 + $0x350] sm:$0xff] }
 0x351   :  { %3065 = vmatprep.subr.bf16.mxu0 %v5652_v57  ;;  %3171 = vmatprep.subr.bf16.mxu1 %v5654_v61  ;;  %v1369_v48 = vld [vmem:[#allocation8 + $0x370] sm:$0xff]  ;;  %v1366_v57 = vld [vmem:[#allocation8 + $0x358] sm:$0xff] }
 0x352   :  { %v1370_v61 = vld [vmem:[#allocation8 + $0x378] sm:$0xff]  ;;  %v5692_v1 = vcombine.high %v1365_v47, %v1369_v48  ;;  %v5691_v34 = vcombine.low %v1365_v47, %v1369_v48 }
 0x353   :  { %v5694_v2 = vcombine.high %v1366_v57, %v1370_v61  ;;  %v5693_v51 = vcombine.low %v1366_v57, %v1370_v61 }
 0x354   :  { %3066 = vmatpush1.bf16.msra.mxu0 %v5651_v32  ;;  %3172 = vmatpush1.bf16.msra.mxu1 %v5653_v46  ;;  %v1373_v32 = vld [vmem:[#allocation8 + $0x390] sm:$0xff] }
 0x355   :  { %3067 = vmatprep.subr.bf16.mxu0 %v5660_v16  ;;  %3173 = vmatprep.subr.bf16.mxu1 %v5662_v50  ;;  %v1377_v46 = vld [vmem:[#allocation8 + $0x3b0] sm:$0xff]  ;;  %v1374_v16 = vld [vmem:[#allocation8 + $0x398] sm:$0xff] }
 0x356   :  { %v1378_v50 = vld [vmem:[#allocation8 + $0x3b8] sm:$0xff]  ;;  %v5700_v41 = vcombine.high %v1373_v32, %v1377_v46  ;;  %v5699_v12 = vcombine.low %v1373_v32, %v1377_v46 }
 0x357   :  { %v5702_v54 = vcombine.high %v1374_v16, %v1378_v50  ;;  %v5701_v29 = vcombine.low %v1374_v16, %v1378_v50 }
 0x358   :  { %3068 = vmatpush1.bf16.msra.mxu0 %v5659_v63  ;;  %3174 = vmatpush1.bf16.msra.mxu1 %v5661_v40  ;;  %v1381_v63 = vld [vmem:[#allocation8 + $0x3d0] sm:$0xff] }
 0x359   :  { %3069 = vmatprep.subr.bf16.mxu0 %v5668_v39  ;;  %3175 = vmatprep.subr.bf16.mxu1 %v5670_v11  ;;  %v1385_v40 = vld [vmem:[#allocation8 + $0x3f0] sm:$0xff]  ;;  %v1382_v39 = vld [vmem:[#allocation8 + $0x3d8] sm:$0xff] }
 0x35a   :  { %v1386_v11 = vld [vmem:[#allocation8 + $0x3f8] sm:$0xff]  ;;  %v5708_v24 = vcombine.high %v1381_v63, %v1385_v40  ;;  %v5707_v8 = vcombine.low %v1381_v63, %v1385_v40 }
 0x35b   :  { %v5710_v42 = vcombine.high %v1382_v39, %v1386_v11  ;;  %v5709_v37 = vcombine.low %v1382_v39, %v1386_v11  ;;  %v1421_v11 = vld [vmem:[#allocation8 + $0x510] sm:$0xff] }
 0x35c   :  { %3070 = vmatpush1.bf16.msra.mxu0 %v5667_v28  ;;  %3176 = vmatpush1.bf16.msra.mxu1 %v5669_v23  ;;  %v1389_v28 = vld [vmem:[#allocation8 + $0x410] sm:$0xff] }
 0x35d   :  { %3071 = vmatprep.subr.bf16.mxu0 %v5676_v3  ;;  %3177 = vmatprep.subr.bf16.mxu1 %v5678_v7  ;;  %v1393_v23 = vld [vmem:[#allocation8 + $0x430] sm:$0xff]  ;;  %v1390_v3 = vld [vmem:[#allocation8 + $0x418] sm:$0xff] }
 0x35e   :  { %v1394_v7 = vld [vmem:[#allocation8 + $0x438] sm:$0xff]  ;;  %v5716_v21 = vcombine.high %v1389_v28, %v1393_v23  ;;  %v5715_v47 = vcombine.low %v1389_v28, %v1393_v23 }
 0x35f   :  { %v5718_v25 = vcombine.high %v1390_v3, %v1394_v7  ;;  %v5717_v48 = vcombine.low %v1390_v3, %v1394_v7  ;;  %v1429_v3 = vld [vmem:[#allocation8 + $0x550] sm:$0xff] }
 0x360   :  { %3072 = vmatpush1.bf16.msra.mxu0 %v5675_v26  ;;  %3178 = vmatpush1.bf16.msra.mxu1 %v5677_v43  ;;  %v1397_v26 = vld [vmem:[#allocation8 + $0x450] sm:$0xff] }
 0x361   :  { %3073 = vmatprep.subr.bf16.mxu0 %v5684_v45  ;;  %3179 = vmatprep.subr.bf16.mxu1 %v5686_v18  ;;  %v1401_v43 = vld [vmem:[#allocation8 + $0x470] sm:$0xff]  ;;  %v1398_v45 = vld [vmem:[#allocation8 + $0x458] sm:$0xff] }
 0x362   :  { %v1402_v18 = vld [vmem:[#allocation8 + $0x478] sm:$0xff]  ;;  %v5724_v57 = vcombine.high %v1397_v26, %v1401_v43  ;;  %v5723_v32 = vcombine.low %v1397_v26, %v1401_v43  ;;  %v1433_v7 = vld [vmem:[#allocation8 + $0x570] sm:$0xff] }
 0x363   :  { %v5726_v61 = vcombine.high %v1398_v45, %v1402_v18  ;;  %v5725_v46 = vcombine.low %v1398_v45, %v1402_v18  ;;  %v1437_v43 = vld [vmem:[#allocation8 + $0x590] sm:$0xff]  ;;  %v1442_v18 = vld [vmem:[#allocation8 + $0x5b8] sm:$0xff] }
 0x364   :  { %3074 = vmatpush1.bf16.msra.mxu0 %v5683_v31  ;;  %3180 = vmatpush1.bf16.msra.mxu1 %v5685_v62  ;;  %v1405_v31 = vld [vmem:[#allocation8 + $0x490] sm:$0xff] }
 0x365   :  { %3075 = vmatprep.subr.bf16.mxu0 %v5692_v1  ;;  %3181 = vmatprep.subr.bf16.mxu1 %v5694_v2  ;;  %v1409_v62 = vld [vmem:[#allocation8 + $0x4b0] sm:$0xff]  ;;  %v1406_v1 = vld [vmem:[#allocation8 + $0x498] sm:$0xff] }
 0x366   :  { %v1410_v2 = vld [vmem:[#allocation8 + $0x4b8] sm:$0xff]  ;;  %v5732_v16 = vcombine.high %v1405_v31, %v1409_v62  ;;  %v1441_v45 = vld [vmem:[#allocation8 + $0x5b0] sm:$0xff] }
 0x367   :  { %v5734_v50 = vcombine.high %v1406_v1, %v1410_v2  ;;  %v5733_v63 = vcombine.low %v1406_v1, %v1410_v2  ;;  %v1446_v1 = vld [vmem:[#allocation8 + $0x5d8] sm:$0xff] }
 0x368   :  { %3076 = vmatpush1.bf16.msra.mxu0 %v5691_v34  ;;  %3182 = vmatpush1.bf16.msra.mxu1 %v5693_v51  ;;  %v1413_v34 = vld [vmem:[#allocation8 + $0x4d0] sm:$0xff]  ;;  %v1450_v2 = vld [vmem:[#allocation8 + $0x5f8] sm:$0xff] }
 0x369   :  { %3077 = vmatprep.subr.bf16.mxu0 %v5700_v41  ;;  %3183 = vmatprep.subr.bf16.mxu1 %v5702_v54  ;;  %v1417_v51 = vld [vmem:[#allocation8 + $0x4f0] sm:$0xff]  ;;  %v1414_v41 = vld [vmem:[#allocation8 + $0x4d8] sm:$0xff] }
 0x36a   :  { %v1418_v54 = vld [vmem:[#allocation8 + $0x4f8] sm:$0xff]  ;;  %v5740_v40 = vcombine.high %v1413_v34, %v1417_v51 }
 0x36b   :  { %v5742_v39 = vcombine.high %v1414_v41, %v1418_v54 }
 0x36c   :  { %3078 = vmatpush1.bf16.msra.mxu0 %v5699_v12  ;;  %3184 = vmatpush1.bf16.msra.mxu1 %v5701_v29  ;;  %v1422_v12 = vld [vmem:[#allocation8 + $0x518] sm:$0xff] }
 0x36d   :  { %3079 = vmatprep.subr.bf16.mxu0 %v5708_v24  ;;  %3185 = vmatprep.subr.bf16.mxu1 %v5710_v42  ;;  %v1426_v29 = vld [vmem:[#allocation8 + $0x538] sm:$0xff]  ;;  %v5739_v24 = vcombine.low %v1413_v34, %v1417_v51  ;;  %v5741_v42 = vcombine.low %v1414_v41, %v1418_v54  ;;  %v1453_v34 = vld [vmem:[#allocation8 + $0x610] sm:$0xff] }
 0x36e   :  { %v5750_v23 = vcombine.high %v1422_v12, %v1426_v29  ;;  %v1457_v51 = vld [vmem:[#allocation8 + $0x630] sm:$0xff]  ;;  %v1454_v41 = vld [vmem:[#allocation8 + $0x618] sm:$0xff] }
 0x36f   :  { %v1458_v54 = vld [vmem:[#allocation8 + $0x638] sm:$0xff] }
 0x370   :  { %3080 = vmatpush1.bf16.msra.mxu0 %v5707_v8  ;;  %3186 = vmatpush1.bf16.msra.mxu1 %v5709_v37  ;;  %v1430_v8 = vld [vmem:[#allocation8 + $0x558] sm:$0xff] }
 0x371   :  { %3102 = vmatprep.subr.bf16.mxu0 %v5716_v21  ;;  %3208 = vmatprep.subr.bf16.mxu1 %v5718_v25  ;;  %v1434_v37 = vld [vmem:[#allocation8 + $0x578] sm:$0xff]  ;;  %v5749_v21 = vcombine.low %v1422_v12, %v1426_v29  ;;  %v5756_v25 = vcombine.high %v1429_v3, %v1433_v7 }
 0x372   :  { %v5758_v26 = vcombine.high %v1430_v8, %v1434_v37  ;;  %v1462_v12 = vld [vmem:[#allocation8 + $0x658] sm:$0xff] }
 0x373   :  { %3082 = vmatmul.mubr.bf16.vlgmr.msra.gmra.mrb[16].mxu0 %v7350_v55  ;;  %3188 = vmatmul.mubr.bf16.vlgmr.msra.gmra.mrb[16].mxu1 %v7350_v55  ;;  %v5731_v55 = vcombine.low %v1405_v31, %v1409_v62  ;;  %v1445_v31 = vld [vmem:[#allocation8 + $0x5d0] sm:$0xff]  ;;  %v1466_v29 = vld [vmem:[#allocation8 + $0x678] sm:$0xff] }
 0x374   :  { %3091 = vmatprep.mubr.bf16.mxu0 %v7358_v19  ;;  %3103 = vmatpush1.bf16.msra.mxu0 %v5715_v47  ;;  %v5755_v47 = vcombine.low %v1429_v3, %v1433_v7  ;;  %v1449_v62 = vld [vmem:[#allocation8 + $0x5f0] sm:$0xff] }
 0x375   :  { %3197 = vmatprep.mubr.bf16.mxu1 %v7358_v19  ;;  %3209 = vmatpush1.bf16.msra.mxu1 %v5717_v48  ;;  %v1425_v19 = vld [vmem:[#allocation8 + $0x530] sm:$0xff]  ;;  %v5757_v48 = vcombine.low %v1430_v8, %v1434_v37  ;;  %v1470_v8 = vld [vmem:[#allocation8 + $0x698] sm:$0xff] }
 0x376   :  { %3104 = vmatprep.subr.bf16.mxu0 %v5724_v57  ;;  %3210 = vmatprep.subr.bf16.mxu1 %v5726_v61  ;;  %v5748_v28 = vcombine.high %v1421_v11, %v1425_v19  ;;  %v5764_v57 = vcombine.high %v1437_v43, %v1441_v45  ;;  %v1469_v3 = vld [vmem:[#allocation8 + $0x690] sm:$0xff]  ;;  %v1474_v37 = vld [vmem:[#allocation8 + $0x6b8] sm:$0xff] }
 0x377   :  { %v1473_v7 = vld [vmem:[#allocation8 + $0x6b0] sm:$0xff] }
 0x378   :  { %3105 = vmatpush1.bf16.msra.mxu0 %v5723_v32  ;;  %v5763_v32 = vcombine.low %v1437_v43, %v1441_v45  ;;  %v1477_v43 = vld [vmem:[#allocation8 + $0x6d0] sm:$0xff] }
 0x379   :  { %3211 = vmatpush1.bf16.msra.mxu1 %v5725_v46  ;;  %3106 = vmatprep.subr.bf16.mxu0 %v5732_v16  ;;  %v5772_v16 = vcombine.high %v1445_v31, %v1449_v62  ;;  %v1481_v45 = vld [vmem:[#allocation8 + $0x6f0] sm:$0xff] }
 0x37a   :  { %3212 = vmatprep.subr.bf16.mxu1 %v5734_v50  ;;  %v5774_v50 = vcombine.high %v1446_v1, %v1450_v2 }
 0x37b   :  { %3092 = vmatmul.mubr.bf16.gmra.mrb[20].mxu0 %v7383_v14  ;;  %3198 = vmatmul.mubr.bf16.gmra.mrb[20].mxu1 %v7383_v14  ;;  %v5747_v14 = vcombine.low %v1421_v11, %v1425_v19  ;;  %v1461_v11 = vld [vmem:[#allocation8 + $0x650] sm:$0xff] }
 0x37c   :  { %3107 = vmatpush1.bf16.msra.mxu0 %v5731_v55  ;;  %3134 = vmatprep.mubr.bf16.mxu0 %v7387_v13  ;;  %v5771_v55 = vcombine.low %v1445_v31, %v1449_v62  ;;  %v1465_v19 = vld [vmem:[#allocation8 + $0x670] sm:$0xff] }
 0x37d   :  { %3213 = vmatpush1.bf16.msra.mxu1 %v5733_v63  ;;  %3240 = vmatprep.mubr.bf16.mxu1 %v7387_v13  ;;  %v1438_v13 = vld [vmem:[#allocation8 + $0x598] sm:$0xff]  ;;  %v5773_v63 = vcombine.low %v1446_v1, %v1450_v2  ;;  %v1485_v31 = vld [vmem:[#allocation8 + $0x710] sm:$0xff] }
 0x37e   :  { %3108 = vmatprep.subr.bf16.mxu0 %v5740_v40  ;;  %3214 = vmatprep.subr.bf16.mxu1 %v5742_v39  ;;  %v5766_v61 = vcombine.high %v1438_v13, %v1442_v18  ;;  %v5765_v46 = vcombine.low %v1438_v13, %v1442_v18  ;;  %v5780_v40 = vcombine.high %v1453_v34, %v1457_v51  ;;  %v1478_v13 = vld [vmem:[#allocation8 + $0x6d8] sm:$0xff]  ;;  %v1489_v62 = vld [vmem:[#allocation8 + $0x730] sm:$0xff] }
 0x37f   :  { %v5782_v39 = vcombine.high %v1454_v41, %v1458_v54  ;;  %v1482_v18 = vld [vmem:[#allocation8 + $0x6f8] sm:$0xff] }
 0x380   :  { %3109 = vmatpush1.bf16.msra.mxu0 %v5739_v24  ;;  %v5779_v24 = vcombine.low %v1453_v34, %v1457_v51  ;;  %v1486_v1 = vld [vmem:[#allocation8 + $0x718] sm:$0xff]  ;;  %v1493_v34 = vld [vmem:[#allocation8 + $0x750] sm:$0xff] }
 0x381   :  { %3215 = vmatpush1.bf16.msra.mxu1 %v5741_v42  ;;  %3110 = vmatprep.subr.bf16.mxu0 %v5748_v28  ;;  %v5781_v42 = vcombine.low %v1454_v41, %v1458_v54  ;;  %v5788_v28 = vcombine.high %v1461_v11, %v1465_v19  ;;  %v1490_v2 = vld [vmem:[#allocation8 + $0x738] sm:$0xff]  ;;  %v1497_v51 = vld [vmem:[#allocation8 + $0x770] sm:$0xff] }
 0x382   :  { %3216 = vmatprep.subr.bf16.mxu1 %v5750_v23  ;;  %v5790_v23 = vcombine.high %v1462_v12, %v1466_v29  ;;  %v1494_v41 = vld [vmem:[#allocation8 + $0x758] sm:$0xff] }
 0x383   :  { %v1498_v54 = vld [vmem:[#allocation8 + $0x778] sm:$0xff] }
 0x384   :  { %3111 = vmatpush1.bf16.msra.mxu0 %v5747_v14  ;;  %v5787_v14 = vcombine.low %v1461_v11, %v1465_v19  ;;  %v1501_v11 = vld [vmem:[#allocation8 + $0x790] sm:$0xff] }
 0x385   :  { %3217 = vmatpush1.bf16.msra.mxu1 %v5749_v21  ;;  %3112 = vmatprep.subr.bf16.mxu0 %v5756_v25  ;;  %v5789_v21 = vcombine.low %v1462_v12, %v1466_v29  ;;  %v5796_v25 = vcombine.high %v1469_v3, %v1473_v7  ;;  %v1505_v19 = vld [vmem:[#allocation8 + $0x7b0] sm:$0xff]  ;;  %v1502_v12 = vld [vmem:[#allocation8 + $0x798] sm:$0xff] }
 0x386   :  { %3218 = vmatprep.subr.bf16.mxu1 %v5758_v26  ;;  %v5798_v26 = vcombine.high %v1470_v8, %v1474_v37  ;;  %v1506_v29 = vld [vmem:[#allocation8 + $0x7b8] sm:$0xff] }
 0x388   :  { %3113 = vmatpush1.bf16.msra.mxu0 %v5755_v47  ;;  %v5795_v47 = vcombine.low %v1469_v3, %v1473_v7  ;;  %v1509_v3 = vld [vmem:[#allocation8 + $0x7d0] sm:$0xff] }
 0x389   :  { %3219 = vmatpush1.bf16.msra.mxu1 %v5757_v48  ;;  %3114 = vmatprep.subr.bf16.mxu0 %v5764_v57  ;;  %v5797_v48 = vcombine.low %v1470_v8, %v1474_v37  ;;  %v5804_v57 = vcombine.high %v1477_v43, %v1481_v45  ;;  %v1513_v7 = vld [vmem:[#allocation8 + $0x7f0] sm:$0xff]  ;;  %v1510_v8 = vld [vmem:[#allocation8 + $0x7d8] sm:$0xff] }
 0x38a   :  { %3220 = vmatprep.subr.bf16.mxu1 %v5766_v61  ;;  %v5806_v61 = vcombine.high %v1478_v13, %v1482_v18  ;;  %v1514_v37 = vld [vmem:[#allocation8 + $0x7f8] sm:$0xff] }
 0x38c   :  { %3115 = vmatpush1.bf16.msra.mxu0 %v5763_v32  ;;  %v5803_v32 = vcombine.low %v1477_v43, %v1481_v45  ;;  %v5835_v43 = vcombine.low %v1509_v3, %v1513_v7  ;;  %v5837_v45 = vcombine.low %v1510_v8, %v1514_v37 }
 0x38d   :  { %3221 = vmatpush1.bf16.msra.mxu1 %v5765_v46  ;;  %3116 = vmatprep.subr.bf16.mxu0 %v5772_v16  ;;  %v5805_v46 = vcombine.low %v1478_v13, %v1482_v18  ;;  %v5812_v16 = vcombine.high %v1485_v31, %v1489_v62  ;;  %v6473_v13 = vld [vmem:[#allocation9 + $0x4] ss:$16 sps:$4 sm:$0xff]   ;;  %v6476_v18 = vld [vmem:[#allocation9 + $0xc] ss:$16 sps:$4 sm:$0xff]  }
 0x38e   :  { %3222 = vmatprep.subr.bf16.mxu1 %v5774_v50  ;;  %v5814_v50 = vcombine.high %v1486_v1, %v1490_v2 }
 0x390   :  { %3117 = vmatpush1.bf16.msra.mxu0 %v5771_v55  ;;  %v5811_v55 = vcombine.low %v1485_v31, %v1489_v62  ;;  %v6477_v31 = vld [vmem:[#allocation9 + $0x20] ss:$16 sps:$4 sm:$0xff]   ;;  %v6480_v62 = vld [vmem:[#allocation9 + $0x28] ss:$16 sps:$4 sm:$0xff]  }
 0x391   :  { %3223 = vmatpush1.bf16.msra.mxu1 %v5773_v63  ;;  %3118 = vmatprep.subr.bf16.mxu0 %v5780_v40  ;;  %v5813_v63 = vcombine.low %v1486_v1, %v1490_v2  ;;  %v5820_v40 = vcombine.high %v1493_v34, %v1497_v51  ;;  %v6485_v1 = vld [vmem:[#allocation9 + $0x44] ss:$16 sps:$4 sm:$0xff]   ;;  %v6488_v2 = vld [vmem:[#allocation9 + $0x4c] ss:$16 sps:$4 sm:$0xff]  }
 0x392   :  { %3224 = vmatprep.subr.bf16.mxu1 %v5782_v39  ;;  %v5822_v39 = vcombine.high %v1494_v41, %v1498_v54 }
 0x394   :  { %3119 = vmatpush1.bf16.msra.mxu0 %v5779_v24  ;;  %v5819_v24 = vcombine.low %v1493_v34, %v1497_v51  ;;  %v6497_v34 = vld [vmem:[#allocation9 + $0x84] ss:$16 sps:$4 sm:$0xff]   ;;  %v6500_v51 = vld [vmem:[#allocation9 + $0x8c] ss:$16 sps:$4 sm:$0xff]  }
 0x395   :  { %3225 = vmatpush1.bf16.msra.mxu1 %v5781_v42  ;;  %3120 = vmatprep.subr.bf16.mxu0 %v5788_v28  ;;  %v5821_v42 = vcombine.low %v1494_v41, %v1498_v54  ;;  %v5828_v28 = vcombine.high %v1501_v11, %v1505_v19  ;;  %v6495_v41 = vld [vmem:[#allocation9 + $0x80] ss:$16 sps:$4 sm:$0xff]   ;;  %v6498_v54 = vld [vmem:[#allocation9 + $0x88] ss:$16 sps:$4 sm:$0xff]  }
 0x396   :  { %3226 = vmatprep.subr.bf16.mxu1 %v5790_v23  ;;  %v5830_v23 = vcombine.high %v1502_v12, %v1506_v29 }
 0x398   :  { %3121 = vmatpush1.bf16.msra.mxu0 %v5787_v14  ;;  %v5827_v14 = vcombine.low %v1501_v11, %v1505_v19  ;;  %v6512_v11 = vld [vmem:[#allocation9 + $0xcc] ss:$16 sps:$4 sm:$0xff]   ;;  %v6507_v19 = vld [vmem:[#allocation9 + $0xc0] ss:$16 sps:$4 sm:$0xff]  }
 0x399   :  { %3227 = vmatpush1.bf16.msra.mxu1 %v5789_v21  ;;  %3122 = vmatprep.subr.bf16.mxu0 %v5796_v25  ;;  %v5829_v21 = vcombine.low %v1502_v12, %v1506_v29  ;;  %v5836_v25 = vcombine.high %v1509_v3, %v1513_v7  ;;  %v6510_v12 = vld [vmem:[#allocation9 + $0xc8] ss:$16 sps:$4 sm:$0xff]   ;;  %v6515_v29 = vld [vmem:[#allocation9 + $0xe4] ss:$16 sps:$4 sm:$0xff]   ;;  %v6524_v3 = vld [vmem:[#allocation9 + $0x10c] ss:$16 sps:$4 sm:$0xff]  }
 0x39a   :  { %3228 = vmatprep.subr.bf16.mxu1 %v5798_v26  ;;  %v5838_v26 = vcombine.high %v1510_v8, %v1514_v37  ;;  %v6519_v7 = vld [vmem:[#allocation9 + $0x100] ss:$16 sps:$4 sm:$0xff]   ;;  %v6522_v8 = vld [vmem:[#allocation9 + $0x108] ss:$16 sps:$4 sm:$0xff]   ;;  %v6527_v37 = vld [vmem:[#allocation9 + $0x124] ss:$16 sps:$4 sm:$0xff]  }
 0x39c   :  { %3123 = vmatpush1.bf16.msra.mxu0 %v5795_v47  ;;  %v6471_v47 = vld [vmem:[#allocation9] ss:$16 sps:$4 sm:$0xff]  }
 0x39d   :  { %3229 = vmatpush1.bf16.msra.mxu1 %v5797_v48  ;;  %3124 = vmatprep.subr.bf16.mxu0 %v5804_v57  ;;  %v6474_v48 = vld [vmem:[#allocation9 + $0x8] ss:$16 sps:$4 sm:$0xff]   ;;  %v6479_v57 = vld [vmem:[#allocation9 + $0x24] ss:$16 sps:$4 sm:$0xff]  }
 0x39e   :  { %3230 = vmatprep.subr.bf16.mxu1 %v5806_v61  ;;  %v6482_v61 = vld [vmem:[#allocation9 + $0x2c] ss:$16 sps:$4 sm:$0xff]  }
 0x3a0   :  { %3125 = vmatpush1.bf16.msra.mxu0 %v5803_v32  ;;  %v6483_v32 = vld [vmem:[#allocation9 + $0x40] ss:$16 sps:$4 sm:$0xff]  }
 0x3a1   :  { %3231 = vmatpush1.bf16.msra.mxu1 %v5805_v46  ;;  %3126 = vmatprep.subr.bf16.mxu0 %v5812_v16  ;;  %v6486_v46 = vld [vmem:[#allocation9 + $0x48] ss:$16 sps:$4 sm:$0xff]   ;;  %v6491_v16 = vld [vmem:[#allocation9 + $0x64] ss:$16 sps:$4 sm:$0xff]  }
 0x3a2   :  { %3232 = vmatprep.subr.bf16.mxu1 %v5814_v50  ;;  %v6492_v50 = vld [vmem:[#allocation9 + $0x68] ss:$16 sps:$4 sm:$0xff]  }
 0x3a4   :  { %3127 = vmatpush1.bf16.msra.mxu0 %v5811_v55  ;;  %v6503_v55 = vld [vmem:[#allocation9 + $0xa4] ss:$16 sps:$4 sm:$0xff]  }
 0x3a5   :  { %3233 = vmatpush1.bf16.msra.mxu1 %v5813_v63  ;;  %3128 = vmatprep.subr.bf16.mxu0 %v5820_v40  ;;  %v6506_v63 = vld [vmem:[#allocation9 + $0xac] ss:$16 sps:$4 sm:$0xff]   ;;  %v6501_v40 = vld [vmem:[#allocation9 + $0xa0] ss:$16 sps:$4 sm:$0xff]  }
 0x3a6   :  { %3234 = vmatprep.subr.bf16.mxu1 %v5822_v39  ;;  %v6509_v39 = vld [vmem:[#allocation9 + $0xc4] ss:$16 sps:$4 sm:$0xff]  }
 0x3a8   :  { %3129 = vmatpush1.bf16.msra.mxu0 %v5819_v24  ;;  %v6518_v24 = vld [vmem:[#allocation9 + $0xec] ss:$16 sps:$4 sm:$0xff]  }
 0x3a9   :  { %3235 = vmatpush1.bf16.msra.mxu1 %v5821_v42  ;;  %3130 = vmatprep.subr.bf16.mxu0 %v5828_v28  ;;  %v6513_v42 = vld [vmem:[#allocation9 + $0xe0] ss:$16 sps:$4 sm:$0xff]   ;;  %v6516_v28 = vld [vmem:[#allocation9 + $0xe8] ss:$16 sps:$4 sm:$0xff]  }
 0x3aa   :  { %3236 = vmatprep.subr.bf16.mxu1 %v5830_v23  ;;  %v6521_v23 = vld [vmem:[#allocation9 + $0x104] ss:$16 sps:$4 sm:$0xff]  }
 0x3ac   :  { %3131 = vmatpush1.bf16.msra.mxu0 %v5827_v14  ;;  %v6530_v14 = vld [vmem:[#allocation9 + $0x12c] ss:$16 sps:$4 sm:$0xff]  }
 0x3ad   :  { %3237 = vmatpush1.bf16.msra.mxu1 %v5829_v21  ;;  %3132 = vmatprep.subr.bf16.mxu0 %v5836_v25  ;;  %v6525_v21 = vld [vmem:[#allocation9 + $0x120] ss:$16 sps:$4 sm:$0xff]   ;;  %v6528_v25 = vld [vmem:[#allocation9 + $0x128] ss:$16 sps:$4 sm:$0xff]  }
 0x3ae   :  { %3238 = vmatprep.subr.bf16.mxu1 %v5838_v26  ;;  %v6533_v26 = vld [vmem:[#allocation9 + $0x144] ss:$16 sps:$4 sm:$0xff]  }
 0x3b0   :  { %3133 = vmatpush1.bf16.msra.mxu0 %v5835_v43  ;;  %v6536_v43 = vld [vmem:[#allocation9 + $0x14c] ss:$16 sps:$4 sm:$0xff]  }
 0x3b1   :  { %3239 = vmatpush1.bf16.msra.mxu1 %v5837_v45  ;;  %4867 = vmatprep.subr.bf16.mxu0 %v6473_v13  ;;  %v6531_v45 = vld [vmem:[#allocation9 + $0x140] ss:$16 sps:$4 sm:$0xff]   ;;  %v6534_v13 = vld [vmem:[#allocation9 + $0x148] ss:$16 sps:$4 sm:$0xff]  }
 0x3b2   :  { %5079 = vmatprep.subr.bf16.mxu1 %v6476_v18  ;;  %v6539_v18 = vld [vmem:[#allocation9 + $0x164] ss:$16 sps:$4 sm:$0xff]  }
 0x3b3   :  { %3135 = vmatmul.mubr.bf16.vlgmr.msra.gmra.mrb[16].mxu0 %v7362_v22 }
 0x3b4   :  { %3241 = vmatmul.mubr.bf16.vlgmr.msra.gmra.mrb[16].mxu1 %v7362_v22  ;;  %3144 = vmatprep.mubr.bf16.mxu0 %v7373_v20  ;;  %v6494_v22 = vld [vmem:[#allocation9 + $0x6c] ss:$16 sps:$4 sm:$0xff]  }
 0x3b5   :  { %3250 = vmatprep.mubr.bf16.mxu1 %v7373_v20  ;;  %4868 = vmatpush1.bf16.msra.mxu0 %v6471_v47  ;;  %v6489_v20 = vld [vmem:[#allocation9 + $0x60] ss:$16 sps:$4 sm:$0xff]   ;;  %v6542_v47 = vld [vmem:[#allocation9 + $0x16c] ss:$16 sps:$4 sm:$0xff]  }
 0x3b6   :  { %5080 = vmatpush1.bf16.msra.mxu1 %v6474_v48  ;;  %4869 = vmatprep.subr.bf16.mxu0 %v6479_v57  ;;  %v6537_v48 = vld [vmem:[#allocation9 + $0x160] ss:$16 sps:$4 sm:$0xff]   ;;  %v6540_v57 = vld [vmem:[#allocation9 + $0x168] ss:$16 sps:$4 sm:$0xff]  }
 0x3b7   :  { %5081 = vmatprep.subr.bf16.mxu1 %v6482_v61  ;;  %v6545_v61 = vld [vmem:[#allocation9 + $0x184] ss:$16 sps:$4 sm:$0xff]  }
 0x3b9   :  { %4870 = vmatpush1.bf16.msra.mxu0 %v6477_v31  ;;  %v6548_v31 = vld [vmem:[#allocation9 + $0x18c] ss:$16 sps:$4 sm:$0xff]  }
 0x3ba   :  { %5082 = vmatpush1.bf16.msra.mxu1 %v6480_v62  ;;  %4871 = vmatprep.subr.bf16.mxu0 %v6485_v1  ;;  %v6543_v62 = vld [vmem:[#allocation9 + $0x180] ss:$16 sps:$4 sm:$0xff]   ;;  %v6546_v1 = vld [vmem:[#allocation9 + $0x188] ss:$16 sps:$4 sm:$0xff]  }
 0x3bb   :  { %3145 = vmatmul.mubr.bf16.gmra.mrb[20].mxu0 %v7377_v49  ;;  %5083 = vmatprep.subr.bf16.mxu1 %v6488_v2  ;;  %v6551_v2 = vld [vmem:[#allocation9 + $0x1a4] ss:$16 sps:$4 sm:$0xff]  }
 0x3bc   :  { %3251 = vmatmul.mubr.bf16.gmra.mrb[20].mxu1 %v7377_v49  ;;  %v6504_v49 = vld [vmem:[#allocation9 + $0xa8] ss:$16 sps:$4 sm:$0xff]  }
 0x3bd   :  { %4872 = vmatpush1.bf16.msra.mxu0 %v6483_v32  ;;  %v6554_v32 = vld [vmem:[#allocation9 + $0x1ac] ss:$16 sps:$4 sm:$0xff]  }
 0x3be   :  { %5084 = vmatpush1.bf16.msra.mxu1 %v6486_v46  ;;  %4873 = vmatprep.subr.bf16.mxu0 %v6491_v16  ;;  %v6549_v46 = vld [vmem:[#allocation9 + $0x1a0] ss:$16 sps:$4 sm:$0xff]   ;;  %v6552_v16 = vld [vmem:[#allocation9 + $0x1a8] ss:$16 sps:$4 sm:$0xff]  }
 0x3bf   :  { %5085 = vmatprep.subr.bf16.mxu1 %v6494_v22  ;;  %v6557_v22 = vld [vmem:[#allocation9 + $0x1c4] ss:$16 sps:$4 sm:$0xff]  }
 0x3c1   :  { %4874 = vmatpush1.bf16.msra.mxu0 %v6489_v20  ;;  %v6560_v20 = vld [vmem:[#allocation9 + $0x1cc] ss:$16 sps:$4 sm:$0xff]  }
 0x3c2   :  { %5086 = vmatpush1.bf16.msra.mxu1 %v6492_v50  ;;  %4875 = vmatprep.subr.bf16.mxu0 %v6497_v34  ;;  %v6555_v50 = vld [vmem:[#allocation9 + $0x1c0] ss:$16 sps:$4 sm:$0xff]   ;;  %v6558_v34 = vld [vmem:[#allocation9 + $0x1c8] ss:$16 sps:$4 sm:$0xff]  }
 0x3c3   :  { %5087 = vmatprep.subr.bf16.mxu1 %v6500_v51  ;;  %v6563_v51 = vld [vmem:[#allocation9 + $0x1e4] ss:$16 sps:$4 sm:$0xff]  }
 0x3c5   :  { %4876 = vmatpush1.bf16.msra.mxu0 %v6495_v41  ;;  %v6566_v41 = vld [vmem:[#allocation9 + $0x1ec] ss:$16 sps:$4 sm:$0xff]  }
 0x3c6   :  { %5088 = vmatpush1.bf16.msra.mxu1 %v6498_v54  ;;  %4877 = vmatprep.subr.bf16.mxu0 %v6503_v55  ;;  %v6561_v54 = vld [vmem:[#allocation9 + $0x1e0] ss:$16 sps:$4 sm:$0xff]   ;;  %v6564_v55 = vld [vmem:[#allocation9 + $0x1e8] ss:$16 sps:$4 sm:$0xff]  }
 0x3c7   :  { %5089 = vmatprep.subr.bf16.mxu1 %v6506_v63  ;;  %v6569_v63 = vld [vmem:[#allocation9 + $0x204] ss:$16 sps:$4 sm:$0xff]  }
 0x3c9   :  { %4878 = vmatpush1.bf16.msra.mxu0 %v6501_v40  ;;  %v6572_v40 = vld [vmem:[#allocation9 + $0x20c] ss:$16 sps:$4 sm:$0xff]  }
 0x3ca   :  { %5090 = vmatpush1.bf16.msra.mxu1 %v6504_v49  ;;  %4879 = vmatprep.subr.bf16.mxu0 %v6509_v39  ;;  %v7416_v49 = vld [vmem:[%s7638_s4] sm:$0xff] }
 0x3cb   :  { %5091 = vmatprep.subr.bf16.mxu1 %v6512_v11  ;;  %v1520_v39 = vrot.slane %v7416_v49, %v7160_v30  ;;  %v1528_v11 = vrot.slane %v7416_v49, %v7163_v33 }
 0x3cd   :  { %4880 = vmatpush1.bf16.msra.mxu0 %v6507_v19  ;;  %v1524_v19 = vrot.slane %v7416_v49, %v7169_v35 }
 0x3ce   :  { %5092 = vmatpush1.bf16.msra.mxu1 %v6510_v12  ;;  %4881 = vmatprep.subr.bf16.mxu0 %v6515_v29  ;;  %v1532_v12 = vrot.slane %v7416_v49, %v7172_v36 }
 0x3cf   :  { %5093 = vmatprep.subr.bf16.mxu1 %v6518_v24 }
 0x3d1   :  { %4882 = vmatpush1.bf16.msra.mxu0 %v6513_v42 }
 0x3d2   :  { %5094 = vmatpush1.bf16.msra.mxu1 %v6516_v28  ;;  %4883 = vmatprep.subr.bf16.mxu0 %v6521_v23 }
 0x3d3   :  { %5095 = vmatprep.subr.bf16.mxu1 %v6524_v3 }
 0x3d5   :  { %4884 = vmatpush1.bf16.msra.mxu0 %v6519_v7 }
 0x3d6   :  { %5096 = vmatpush1.bf16.msra.mxu1 %v6522_v8  ;;  %4885 = vmatprep.subr.bf16.mxu0 %v6527_v37 }
 0x3d7   :  { %5097 = vmatprep.subr.bf16.mxu1 %v6530_v14 }
 0x3d9   :  { %4886 = vmatpush1.bf16.msra.mxu0 %v6525_v21 }
 0x3da   :  { %5098 = vmatpush1.bf16.msra.mxu1 %v6528_v25  ;;  %4887 = vmatprep.subr.bf16.mxu0 %v6533_v26 }
 0x3db   :  { %5099 = vmatprep.subr.bf16.mxu1 %v6536_v43 }
 0x3dd   :  { %4888 = vmatpush1.bf16.msra.mxu0 %v6531_v45 }
 0x3de   :  { %5100 = vmatpush1.bf16.msra.mxu1 %v6534_v13  ;;  %4889 = vmatprep.subr.bf16.mxu0 %v6539_v18 }
 0x3df   :  { %5101 = vmatprep.subr.bf16.mxu1 %v6542_v47 }
 0x3e1   :  { %4890 = vmatpush1.bf16.msra.mxu0 %v6537_v48 }
 0x3e2   :  { %5102 = vmatpush1.bf16.msra.mxu1 %v6540_v57  ;;  %4891 = vmatprep.subr.bf16.mxu0 %v6545_v61 }
 0x3e3   :  { %5103 = vmatprep.subr.bf16.mxu1 %v6548_v31 }
 0x3e5   :  { %4892 = vmatpush1.bf16.msra.mxu0 %v6543_v62 }
 0x3e6   :  { %5104 = vmatpush1.bf16.msra.mxu1 %v6546_v1  ;;  %4893 = vmatprep.subr.bf16.mxu0 %v6551_v2 }
 0x3e7   :  { %5105 = vmatprep.subr.bf16.mxu1 %v6554_v32 }
 0x3e9   :  { %4894 = vmatpush1.bf16.msra.mxu0 %v6549_v46 }
 0x3ea   :  { %5106 = vmatpush1.bf16.msra.mxu1 %v6552_v16  ;;  %4895 = vmatprep.subr.bf16.mxu0 %v6557_v22 }
 0x3eb   :  { %5107 = vmatprep.subr.bf16.mxu1 %v6560_v20 }
 0x3ed   :  { %4896 = vmatpush1.bf16.msra.mxu0 %v6555_v50  ;;  %v6567_v50 = vld [vmem:[#allocation9 + $0x200] ss:$16 sps:$4 sm:$0xff]  }
 0x3ee   :  { %5108 = vmatpush1.bf16.msra.mxu1 %v6558_v34  ;;  %4897 = vmatprep.subr.bf16.mxu0 %v6563_v51  ;;  %v6570_v34 = vld [vmem:[#allocation9 + $0x208] ss:$16 sps:$4 sm:$0xff]  }
 0x3ef   :  { %5109 = vmatprep.subr.bf16.mxu1 %v6566_v41 }
 0x3f1   :  { %4898 = vmatpush1.bf16.msra.mxu0 %v6561_v54 }
 0x3f2   :  { %5110 = vmatpush1.bf16.msra.mxu1 %v6564_v55  ;;  %4920 = vmatprep.subr.bf16.mxu0 %v6569_v63  ;;  %v6575_v63 = vld [vmem:[#allocation9 + $0x224] ss:$16 sps:$4 sm:$0xff]  }
 0x3f3   :  { %5132 = vmatprep.subr.bf16.mxu1 %v6572_v40  ;;  %v6578_v40 = vld [vmem:[#allocation9 + $0x22c] ss:$16 sps:$4 sm:$0xff]  }
 0x405   :  { %v2924_v29 = vpop.f32.mrb[8].mxu0  ;;  %v3030_v24 = vpop.f32.mrb[8].mxu1 }
 0x406   :  { %v6113_v42 = vadd.f32 %v2924_v29, %v1520_v39  ;;  %v6121_v28 = vadd.f32 %v3030_v24, %v1528_v11  ;;  %v2926_v23 = vpop.f32.mrb[9].mxu0  ;;  %v3032_v3 = vpop.f32.mrb[9].mxu1 }
 0x407   :  { %v6114_v7 = vadd.f32 %v2926_v23, %v1524_v19  ;;  %v6122_v8 = vadd.f32 %v3032_v3, %v1532_v12  ;;  %v2928_v37 = vpop.f32.mrb[10].mxu0  ;;  %v3034_v14 = vpop.f32.mrb[10].mxu1 }
 0x408   :  { %v6115_v21 = vadd.f32 %v2928_v37, %v1520_v39  ;;  %v6123_v25 = vadd.f32 %v3034_v14, %v1528_v11  ;;  %v2930_v26 = vpop.f32.mrb[11].mxu0  ;;  %v3036_v43 = vpop.f32.mrb[11].mxu1  ;;  %v3261_v18 = vmax.f32 %v6113_v42, 0.0  ;;  %v3263_v47 = vmax.f32 %v6121_v28, 0.0 }
 0x409   :  { %v6116_v45 = vadd.f32 %v2930_v26, %v1524_v19  ;;  %v6124_v13 = vadd.f32 %v3036_v43, %v1532_v12  ;;  %v3262_v61 = vmax.f32 %v6114_v7, 0.0  ;;  %v3264_v31 = vmax.f32 %v6122_v8, 0.0  ;;  %v6581_v26 = vld [vmem:[#allocation9 + $0x244] ss:$16 sps:$4 sm:$0xff]  }
 0x40a   :  { %v3269_v48 = vmax.f32 %v6115_v21, 0.0  ;;  %v3271_v57 = vmax.f32 %v6123_v25, 0.0  ;;  %v6573_v21 = vld [vmem:[#allocation9 + $0x220] ss:$16 sps:$4 sm:$0xff]   ;;  %v6576_v25 = vld [vmem:[#allocation9 + $0x228] ss:$16 sps:$4 sm:$0xff]  }
 0x40b   :  { %v3270_v62 = vmax.f32 %v6116_v45, 0.0  ;;  %v3272_v1 = vmax.f32 %v6124_v13, 0.0 }
 0x40c   :  { %v3293_v2 = vpack.c.bf16 %v3269_v48, %v3261_v18  ;;  %v7426_v32 = vpack.c.bf16 %v3271_v57, %v3263_v47  ;;  %v6584_v47 = vld [vmem:[#allocation9 + $0x24c] ss:$16 sps:$4 sm:$0xff]  }
 0x40d   :  { %v3294_v46 = vpack.c.bf16 %v3270_v62, %v3262_v61  ;;  %v3296_v16 = vpack.c.bf16 %v3272_v1, %v3264_v31  ;;  %v2934_v22 = vpop.f32.mrb[12].mxu0  ;;  %v3040_v20 = vpop.f32.mrb[12].mxu1  ;;  %v6579_v62 = vld [vmem:[#allocation9 + $0x240] ss:$16 sps:$4 sm:$0xff]   ;;  %v6582_v1 = vld [vmem:[#allocation9 + $0x248] ss:$16 sps:$4 sm:$0xff]  }
 0x40e   :  { %v6117_v51 = vadd.f32 %v2934_v22, %v1520_v39  ;;  %v6125_v41 = vadd.f32 %v3040_v20, %v1528_v11  ;;  %v2936_v54 = vpop.f32.mrb[13].mxu0  ;;  %v3042_v55 = vpop.f32.mrb[13].mxu1  ;;  %v6585_v22 = vld [vmem:[#allocation9 + $0x260] ss:$16 sps:$4 sm:$0xff]   ;;  %v6588_v20 = vld [vmem:[#allocation9 + $0x268] ss:$16 sps:$4 sm:$0xff]  }
 0x40f   :  { %v6118_v29 = vadd.f32 %v2936_v54, %v1524_v19  ;;  %v6126_v24 = vadd.f32 %v3042_v55, %v1532_v12  ;;  %v2938_v42 = vpop.f32.mrb[14].mxu0  ;;  %v3044_v28 = vpop.f32.mrb[14].mxu1  ;;  %4899 = vmatprep.mubr.bf16.mxu0 %v3294_v46  ;;  %5111 = vmatprep.mubr.bf16.mxu1 %v3294_v46  ;;  %v6590_v46 = vld [vmem:[#allocation9 + $0x26c] ss:$16 sps:$4 sm:$0xff]   ;;  %v6599_v54 = vld [vmem:[#allocation9 + $0x2a4] ss:$16 sps:$4 sm:$0xff]  }
 0x410   :  { %v6119_v23 = vadd.f32 %v2938_v42, %v1520_v39  ;;  %v6127_v3 = vadd.f32 %v3044_v28, %v1528_v11  ;;  %v2940_v7 = vpop.f32.mrb[15].mxu0  ;;  %v3046_v8 = vpop.f32.mrb[15].mxu1  ;;  %4900 = vmatmul.mubr.bf16.vlgmr.msra.gmra.mrb[24].mxu0 %v3293_v2  ;;  %5112 = vmatmul.mubr.bf16.vlgmr.msra.gmra.mrb[24].mxu1 %v3293_v2  ;;  %v3277_v43 = vmax.f32 %v6117_v51, 0.0  ;;  %v3279_v45 = vmax.f32 %v6125_v41, 0.0  ;;  %v6587_v2 = vld [vmem:[#allocation9 + $0x264] ss:$16 sps:$4 sm:$0xff]  }
 0x411   :  { %v6120_v37 = vadd.f32 %v2940_v7, %v1524_v19  ;;  %v6128_v14 = vadd.f32 %v3046_v8, %v1532_v12  ;;  %4921 = vmatpush1.bf16.msra.mxu0 %v6567_v50  ;;  %5133 = vmatpush1.bf16.msra.mxu1 %v6570_v34  ;;  %v3278_v39 = vmax.f32 %v6118_v29, 0.0  ;;  %v3280_v11 = vmax.f32 %v6126_v24, 0.0  ;;  %v6593_v50 = vld [vmem:[#allocation9 + $0x284] ss:$16 sps:$4 sm:$0xff]   ;;  %v6596_v34 = vld [vmem:[#allocation9 + $0x28c] ss:$16 sps:$4 sm:$0xff]  }
 0x412   :  { %v3285_v13 = vmax.f32 %v6119_v23, 0.0  ;;  %v3287_v18 = vmax.f32 %v6127_v3, 0.0  ;;  %4922 = vmatprep.subr.bf16.mxu0 %v6575_v63  ;;  %5134 = vmatprep.subr.bf16.mxu1 %v6578_v40  ;;  %v6591_v51 = vld [vmem:[#allocation9 + $0x280] ss:$16 sps:$4 sm:$0xff]   ;;  %v6594_v41 = vld [vmem:[#allocation9 + $0x288] ss:$16 sps:$4 sm:$0xff]  }
 0x413   :  { %v3286_v48 = vmax.f32 %v6120_v37, 0.0  ;;  %v3288_v57 = vmax.f32 %v6128_v14, 0.0  ;;  %v6602_v55 = vld [vmem:[#allocation9 + $0x2ac] ss:$16 sps:$4 sm:$0xff]   ;;  %v6597_v63 = vld [vmem:[#allocation9 + $0x2a0] ss:$16 sps:$4 sm:$0xff]  }
 0x414   :  { %v3301_v61 = vpack.c.bf16 %v3285_v13, %v3277_v43  ;;  %v7428_v31 = vpack.c.bf16 %v3287_v18, %v3279_v45  ;;  %v6600_v40 = vld [vmem:[#allocation9 + $0x2a8] ss:$16 sps:$4 sm:$0xff]   ;;  %v6605_v29 = vld [vmem:[#allocation9 + $0x2c4] ss:$16 sps:$4 sm:$0xff]   ;;  %v6603_v24 = vld [vmem:[#allocation9 + $0x2c0] ss:$16 sps:$4 sm:$0xff]  }
 0x415   :  { %v3302_v19 = vpack.c.bf16 %v3286_v48, %v3278_v39  ;;  %v7430_v12 = vpack.c.bf16 %v3288_v57, %v3280_v11  ;;  %4923 = vmatpush1.bf16.msra.mxu0 %v6573_v21  ;;  %5135 = vmatpush1.bf16.msra.mxu1 %v6576_v25  ;;  %v6606_v42 = vld [vmem:[#allocation9 + $0x2c8] ss:$16 sps:$4 sm:$0xff]   ;;  %v6611_v28 = vld [vmem:[#allocation9 + $0x2e4] ss:$16 sps:$4 sm:$0xff]   ;;  %v6614_v23 = vld [vmem:[#allocation9 + $0x2ec] ss:$16 sps:$4 sm:$0xff]  }
 0x416   :  { %4924 = vmatprep.subr.bf16.mxu0 %v6581_v26  ;;  %5136 = vmatprep.subr.bf16.mxu1 %v6584_v47  ;;  %v6609_v3 = vld [vmem:[#allocation9 + $0x2e0] ss:$16 sps:$4 sm:$0xff]   ;;  %v6612_v7 = vld [vmem:[#allocation9 + $0x2e8] ss:$16 sps:$4 sm:$0xff]   ;;  %v6617_v8 = vld [vmem:[#allocation9 + $0x304] ss:$16 sps:$4 sm:$0xff]  }
 0x417   :  { %4909 = vmatprep.mubr.bf16.mxu0 %v3302_v19  ;;  %5121 = vmatprep.mubr.bf16.mxu1 %v3302_v19  ;;  %v6620_v37 = vld [vmem:[#allocation9 + $0x30c] ss:$16 sps:$4 sm:$0xff]   ;;  %v6615_v14 = vld [vmem:[#allocation9 + $0x300] ss:$16 sps:$4 sm:$0xff]   ;;  %v6618_v21 = vld [vmem:[#allocation9 + $0x308] ss:$16 sps:$4 sm:$0xff]  }
 0x418   :  { %4910 = vmatmul.mubr.bf16.gmra.mrb[28].mxu0 %v3301_v61  ;;  %5122 = vmatmul.mubr.bf16.gmra.mrb[28].mxu1 %v3301_v61  ;;  %v6623_v25 = vld [vmem:[#allocation9 + $0x324] ss:$16 sps:$4 sm:$0xff]   ;;  %v6626_v26 = vld [vmem:[#allocation9 + $0x32c] ss:$16 sps:$4 sm:$0xff]   ;;  %v6621_v43 = vld [vmem:[#allocation9 + $0x320] ss:$16 sps:$4 sm:$0xff]  }
 0x419   :  { %4925 = vmatpush1.bf16.msra.mxu0 %v6579_v62  ;;  %5137 = vmatpush1.bf16.msra.mxu1 %v6582_v1  ;;  %v6624_v45 = vld [vmem:[#allocation9 + $0x328] ss:$16 sps:$4 sm:$0xff]   ;;  %v6629_v13 = vld [vmem:[#allocation9 + $0x344] ss:$16 sps:$4 sm:$0xff]   ;;  %v6632_v18 = vld [vmem:[#allocation9 + $0x34c] ss:$16 sps:$4 sm:$0xff]  }
 0x41a   :  { %4952 = vmatprep.mubr.bf16.mxu0 %v3296_v16  ;;  %5164 = vmatprep.mubr.bf16.mxu1 %v3296_v16  ;;  %v6608_v16 = vld [vmem:[#allocation9 + $0x2cc] ss:$16 sps:$4 sm:$0xff]   ;;  %v6627_v47 = vld [vmem:[#allocation9 + $0x340] ss:$16 sps:$4 sm:$0xff]   ;;  %v6630_v39 = vld [vmem:[#allocation9 + $0x348] ss:$16 sps:$4 sm:$0xff]  }
 0x41b   :  { %4926 = vmatprep.subr.bf16.mxu0 %v6587_v2  ;;  %5138 = vmatprep.subr.bf16.mxu1 %v6590_v46  ;;  %v6635_v11 = vld [vmem:[#allocation9 + $0x364] ss:$16 sps:$4 sm:$0xff]   ;;  %v6638_v48 = vld [vmem:[#allocation9 + $0x36c] ss:$16 sps:$4 sm:$0xff]   ;;  %v6633_v57 = vld [vmem:[#allocation9 + $0x360] ss:$16 sps:$4 sm:$0xff]  }
 0x41c   :  { %v6636_v61 = vld [vmem:[#allocation9 + $0x368] ss:$16 sps:$4 sm:$0xff]   ;;  %v6641_v19 = vld [vmem:[#allocation9 + $0x384] ss:$16 sps:$4 sm:$0xff]   ;;  %v6644_v62 = vld [vmem:[#allocation9 + $0x38c] ss:$16 sps:$4 sm:$0xff]  }
 0x41d   :  { %4927 = vmatpush1.bf16.msra.mxu0 %v6585_v22  ;;  %5139 = vmatpush1.bf16.msra.mxu1 %v6588_v20  ;;  %v6639_v1 = vld [vmem:[#allocation9 + $0x380] ss:$16 sps:$4 sm:$0xff]   ;;  %v6642_v2 = vld [vmem:[#allocation9 + $0x388] ss:$16 sps:$4 sm:$0xff]   ;;  %v6647_v46 = vld [vmem:[#allocation9 + $0x3a4] ss:$16 sps:$4 sm:$0xff]  }
 0x41e   :  { %4928 = vmatprep.subr.bf16.mxu0 %v6593_v50  ;;  %5140 = vmatprep.subr.bf16.mxu1 %v6596_v34  ;;  %v6650_v22 = vld [vmem:[#allocation9 + $0x3ac] ss:$16 sps:$4 sm:$0xff]   ;;  %v6645_v20 = vld [vmem:[#allocation9 + $0x3a0] ss:$16 sps:$4 sm:$0xff]   ;;  %v6648_v50 = vld [vmem:[#allocation9 + $0x3a8] ss:$16 sps:$4 sm:$0xff]  }
 0x41f   :  { %v6653_v34 = vld [vmem:[#allocation9 + $0x3c4] ss:$16 sps:$4 sm:$0xff]  }
 0x421   :  { %4929 = vmatpush1.bf16.msra.mxu0 %v6591_v51  ;;  %5141 = vmatpush1.bf16.msra.mxu1 %v6594_v41  ;;  %v6656_v51 = vld [vmem:[#allocation9 + $0x3cc] ss:$16 sps:$4 sm:$0xff]   ;;  %v6651_v41 = vld [vmem:[#allocation9 + $0x3c0] ss:$16 sps:$4 sm:$0xff]  }
 0x422   :  { %4930 = vmatprep.subr.bf16.mxu0 %v6599_v54  ;;  %5142 = vmatprep.subr.bf16.mxu1 %v6602_v55  ;;  %v6654_v54 = vld [vmem:[#allocation9 + $0x3c8] ss:$16 sps:$4 sm:$0xff]   ;;  %v6659_v55 = vld [vmem:[#allocation9 + $0x3e4] ss:$16 sps:$4 sm:$0xff]  }
 0x425   :  { %4931 = vmatpush1.bf16.msra.mxu0 %v6597_v63  ;;  %5143 = vmatpush1.bf16.msra.mxu1 %v6600_v40  ;;  %v6662_v63 = vld [vmem:[#allocation9 + $0x3ec] ss:$16 sps:$4 sm:$0xff]   ;;  %v6657_v40 = vld [vmem:[#allocation9 + $0x3e0] ss:$16 sps:$4 sm:$0xff]  }
 0x426   :  { %4932 = vmatprep.subr.bf16.mxu0 %v6605_v29  ;;  %5144 = vmatprep.subr.bf16.mxu1 %v6608_v16  ;;  %v6660_v29 = vld [vmem:[#allocation9 + $0x3e8] ss:$16 sps:$4 sm:$0xff]   ;;  %v6665_v16 = vld [vmem:[#allocation9 + $0x404] ss:$16 sps:$4 sm:$0xff]  }
 0x429   :  { %4933 = vmatpush1.bf16.msra.mxu0 %v6603_v24  ;;  %5145 = vmatpush1.bf16.msra.mxu1 %v6606_v42  ;;  %v6668_v24 = vld [vmem:[#allocation9 + $0x40c] ss:$16 sps:$4 sm:$0xff]   ;;  %v6663_v42 = vld [vmem:[#allocation9 + $0x400] ss:$16 sps:$4 sm:$0xff]  }
 0x42a   :  { %4934 = vmatprep.subr.bf16.mxu0 %v6611_v28  ;;  %5146 = vmatprep.subr.bf16.mxu1 %v6614_v23  ;;  %v6666_v28 = vld [vmem:[#allocation9 + $0x408] ss:$16 sps:$4 sm:$0xff]   ;;  %v6671_v23 = vld [vmem:[#allocation9 + $0x424] ss:$16 sps:$4 sm:$0xff]  }
 0x42d   :  { %4935 = vmatpush1.bf16.msra.mxu0 %v6609_v3  ;;  %5147 = vmatpush1.bf16.msra.mxu1 %v6612_v7  ;;  %v6674_v3 = vld [vmem:[#allocation9 + $0x42c] ss:$16 sps:$4 sm:$0xff]   ;;  %v6669_v7 = vld [vmem:[#allocation9 + $0x420] ss:$16 sps:$4 sm:$0xff]  }
 0x42e   :  { %4936 = vmatprep.subr.bf16.mxu0 %v6617_v8  ;;  %5148 = vmatprep.subr.bf16.mxu1 %v6620_v37  ;;  %v6672_v8 = vld [vmem:[#allocation9 + $0x428] ss:$16 sps:$4 sm:$0xff]   ;;  %v6677_v37 = vld [vmem:[#allocation9 + $0x444] ss:$16 sps:$4 sm:$0xff]  }
 0x431   :  { %4937 = vmatpush1.bf16.msra.mxu0 %v6615_v14  ;;  %5149 = vmatpush1.bf16.msra.mxu1 %v6618_v21  ;;  %v6680_v14 = vld [vmem:[#allocation9 + $0x44c] ss:$16 sps:$4 sm:$0xff]   ;;  %v6675_v21 = vld [vmem:[#allocation9 + $0x440] ss:$16 sps:$4 sm:$0xff]  }
 0x432   :  { %4938 = vmatprep.subr.bf16.mxu0 %v6623_v25  ;;  %5150 = vmatprep.subr.bf16.mxu1 %v6626_v26  ;;  %v6678_v25 = vld [vmem:[#allocation9 + $0x448] ss:$16 sps:$4 sm:$0xff]   ;;  %v6683_v26 = vld [vmem:[#allocation9 + $0x464] ss:$16 sps:$4 sm:$0xff]  }
 0x435   :  { %4939 = vmatpush1.bf16.msra.mxu0 %v6621_v43  ;;  %5151 = vmatpush1.bf16.msra.mxu1 %v6624_v45  ;;  %v6684_v43 = vld [vmem:[#allocation9 + $0x468] ss:$16 sps:$4 sm:$0xff]   ;;  %v6689_v45 = vld [vmem:[#allocation9 + $0x484] ss:$16 sps:$4 sm:$0xff]  }
 0x436   :  { %4940 = vmatprep.subr.bf16.mxu0 %v6629_v13  ;;  %5152 = vmatprep.subr.bf16.mxu1 %v6632_v18  ;;  %v6692_v13 = vld [vmem:[#allocation9 + $0x48c] ss:$16 sps:$4 sm:$0xff]   ;;  %v6687_v18 = vld [vmem:[#allocation9 + $0x480] ss:$16 sps:$4 sm:$0xff]  }
 0x439   :  { %4941 = vmatpush1.bf16.msra.mxu0 %v6627_v47  ;;  %5153 = vmatpush1.bf16.msra.mxu1 %v6630_v39  ;;  %v6690_v47 = vld [vmem:[#allocation9 + $0x488] ss:$16 sps:$4 sm:$0xff]   ;;  %v6695_v39 = vld [vmem:[#allocation9 + $0x4a4] ss:$16 sps:$4 sm:$0xff]  }
 0x43a   :  { %4942 = vmatprep.subr.bf16.mxu0 %v6635_v11  ;;  %5154 = vmatprep.subr.bf16.mxu1 %v6638_v48  ;;  %v6698_v11 = vld [vmem:[#allocation9 + $0x4ac] ss:$16 sps:$4 sm:$0xff]   ;;  %v6693_v48 = vld [vmem:[#allocation9 + $0x4a0] ss:$16 sps:$4 sm:$0xff]  }
 0x43d   :  { %4943 = vmatpush1.bf16.msra.mxu0 %v6633_v57  ;;  %5155 = vmatpush1.bf16.msra.mxu1 %v6636_v61  ;;  %v6701_v57 = vld [vmem:[#allocation9 + $0x4c4] ss:$16 sps:$4 sm:$0xff]   ;;  %v6704_v61 = vld [vmem:[#allocation9 + $0x4cc] ss:$16 sps:$4 sm:$0xff]  }
 0x43e   :  { %4944 = vmatprep.subr.bf16.mxu0 %v6641_v19  ;;  %5156 = vmatprep.subr.bf16.mxu1 %v6644_v62  ;;  %v6699_v19 = vld [vmem:[#allocation9 + $0x4c0] ss:$16 sps:$4 sm:$0xff]   ;;  %v6702_v62 = vld [vmem:[#allocation9 + $0x4c8] ss:$16 sps:$4 sm:$0xff]  }
 0x441   :  { %4945 = vmatpush1.bf16.msra.mxu0 %v6639_v1  ;;  %5157 = vmatpush1.bf16.msra.mxu1 %v6642_v2  ;;  %v6707_v1 = vld [vmem:[#allocation9 + $0x4e4] ss:$16 sps:$4 sm:$0xff]   ;;  %v6710_v2 = vld [vmem:[#allocation9 + $0x4ec] ss:$16 sps:$4 sm:$0xff]  }
 0x442   :  { %4946 = vmatprep.subr.bf16.mxu0 %v6647_v46  ;;  %5158 = vmatprep.subr.bf16.mxu1 %v6650_v22  ;;  %v6705_v46 = vld [vmem:[#allocation9 + $0x4e0] ss:$16 sps:$4 sm:$0xff]   ;;  %v6708_v22 = vld [vmem:[#allocation9 + $0x4e8] ss:$16 sps:$4 sm:$0xff]  }
 0x445   :  { %4947 = vmatpush1.bf16.msra.mxu0 %v6645_v20  ;;  %5159 = vmatpush1.bf16.msra.mxu1 %v6648_v50  ;;  %v6713_v20 = vld [vmem:[#allocation9 + $0x504] ss:$16 sps:$4 sm:$0xff]   ;;  %v6716_v50 = vld [vmem:[#allocation9 + $0x50c] ss:$16 sps:$4 sm:$0xff]  }
 0x446   :  { %4948 = vmatprep.subr.bf16.mxu0 %v6653_v34  ;;  %5160 = vmatprep.subr.bf16.mxu1 %v6656_v51  ;;  %v6711_v34 = vld [vmem:[#allocation9 + $0x500] ss:$16 sps:$4 sm:$0xff]   ;;  %v6714_v51 = vld [vmem:[#allocation9 + $0x508] ss:$16 sps:$4 sm:$0xff]  }
 0x449   :  { %4949 = vmatpush1.bf16.msra.mxu0 %v6651_v41  ;;  %5161 = vmatpush1.bf16.msra.mxu1 %v6654_v54  ;;  %v6719_v41 = vld [vmem:[#allocation9 + $0x524] ss:$16 sps:$4 sm:$0xff]   ;;  %v6722_v54 = vld [vmem:[#allocation9 + $0x52c] ss:$16 sps:$4 sm:$0xff]  }
 0x44a   :  { %4950 = vmatprep.subr.bf16.mxu0 %v6659_v55  ;;  %5162 = vmatprep.subr.bf16.mxu1 %v6662_v63  ;;  %v6717_v55 = vld [vmem:[#allocation9 + $0x520] ss:$16 sps:$4 sm:$0xff]   ;;  %v6720_v63 = vld [vmem:[#allocation9 + $0x528] ss:$16 sps:$4 sm:$0xff]  }
 0x44d   :  { %4951 = vmatpush1.bf16.msra.mxu0 %v6657_v40  ;;  %5163 = vmatpush1.bf16.msra.mxu1 %v6660_v29  ;;  %v6725_v40 = vld [vmem:[#allocation9 + $0x544] ss:$16 sps:$4 sm:$0xff]   ;;  %v6728_v29 = vld [vmem:[#allocation9 + $0x54c] ss:$16 sps:$4 sm:$0xff]  }
 0x44e   :  { %4973 = vmatprep.subr.bf16.mxu0 %v6665_v16  ;;  %5185 = vmatprep.subr.bf16.mxu1 %v6668_v24  ;;  %v6723_v16 = vld [vmem:[#allocation9 + $0x540] ss:$16 sps:$4 sm:$0xff]   ;;  %v6726_v24 = vld [vmem:[#allocation9 + $0x548] ss:$16 sps:$4 sm:$0xff]  }
 0x450   :  { %4953 = vmatmul.mubr.bf16.vlgmr.msra.gmra.mrb[24].mxu0 %v7426_v32  ;;  %5165 = vmatmul.mubr.bf16.vlgmr.msra.gmra.mrb[24].mxu1 %v7426_v32  ;;  %v6686_v32 = vld [vmem:[#allocation9 + $0x46c] ss:$16 sps:$4 sm:$0xff]  }
 0x451   :  { %4962 = vmatprep.mubr.bf16.mxu0 %v7430_v12  ;;  %4974 = vmatpush1.bf16.msra.mxu0 %v6663_v42  ;;  %v6731_v42 = vld [vmem:[#allocation9 + $0x564] ss:$16 sps:$4 sm:$0xff]  }
 0x452   :  { %5174 = vmatprep.mubr.bf16.mxu1 %v7430_v12  ;;  %5186 = vmatpush1.bf16.msra.mxu1 %v6666_v28  ;;  %v6681_v12 = vld [vmem:[#allocation9 + $0x460] ss:$16 sps:$4 sm:$0xff]   ;;  %v6734_v28 = vld [vmem:[#allocation9 + $0x56c] ss:$16 sps:$4 sm:$0xff]  }
 0x453   :  { %4975 = vmatprep.subr.bf16.mxu0 %v6671_v23  ;;  %5187 = vmatprep.subr.bf16.mxu1 %v6674_v3  ;;  %v6729_v23 = vld [vmem:[#allocation9 + $0x560] ss:$16 sps:$4 sm:$0xff]   ;;  %v6732_v3 = vld [vmem:[#allocation9 + $0x568] ss:$16 sps:$4 sm:$0xff]  }
 0x455   :  { %4976 = vmatpush1.bf16.msra.mxu0 %v6669_v7  ;;  %v6737_v7 = vld [vmem:[#allocation9 + $0x584] ss:$16 sps:$4 sm:$0xff]  }
 0x456   :  { %5188 = vmatpush1.bf16.msra.mxu1 %v6672_v8  ;;  %4977 = vmatprep.subr.bf16.mxu0 %v6677_v37  ;;  %v6740_v8 = vld [vmem:[#allocation9 + $0x58c] ss:$16 sps:$4 sm:$0xff]   ;;  %v6735_v37 = vld [vmem:[#allocation9 + $0x580] ss:$16 sps:$4 sm:$0xff]  }
 0x457   :  { %5189 = vmatprep.subr.bf16.mxu1 %v6680_v14  ;;  %v6738_v14 = vld [vmem:[#allocation9 + $0x588] ss:$16 sps:$4 sm:$0xff]  }
 0x458   :  { %4963 = vmatmul.mubr.bf16.gmra.mrb[28].mxu0 %v7428_v31  ;;  %5175 = vmatmul.mubr.bf16.gmra.mrb[28].mxu1 %v7428_v31  ;;  %v6696_v31 = vld [vmem:[#allocation9 + $0x4a8] ss:$16 sps:$4 sm:$0xff]  }
 0x459   :  { %4978 = vmatpush1.bf16.msra.mxu0 %v6675_v21  ;;  %v6743_v21 = vld [vmem:[#allocation9 + $0x5a4] ss:$16 sps:$4 sm:$0xff]  }
 0x45a   :  { %5190 = vmatpush1.bf16.msra.mxu1 %v6678_v25  ;;  %4979 = vmatprep.subr.bf16.mxu0 %v6683_v26  ;;  %v6746_v25 = vld [vmem:[#allocation9 + $0x5ac] ss:$16 sps:$4 sm:$0xff]   ;;  %v1535_v26 = vsub.s32 4, %v7157_v27 }
 0x45b   :  { %5191 = vmatprep.subr.bf16.mxu1 %v6686_v32  ;;  %v1543_v32 = vsub.s32 6, %v7157_v27 }
 0x45d   :  { %4980 = vmatpush1.bf16.msra.mxu0 %v6681_v12  ;;  %v1539_v12 = vsub.s32 5, %v7157_v27 }
 0x45e   :  { %5192 = vmatpush1.bf16.msra.mxu1 %v6684_v43  ;;  %4981 = vmatprep.subr.bf16.mxu0 %v6689_v45  ;;  %v6741_v43 = vld [vmem:[#allocation9 + $0x5a0] ss:$16 sps:$4 sm:$0xff]   ;;  %v1547_v45 = vsub.s32 7, %v7157_v27 }
 0x45f   :  { %5193 = vmatprep.subr.bf16.mxu1 %v6692_v13  ;;  %v6744_v13 = vld [vmem:[#allocation9 + $0x5a8] ss:$16 sps:$4 sm:$0xff]   ;;  %v6747_v27 = vld [vmem:[#allocation9 + $0x5c0] ss:$16 sps:$4 sm:$0xff]  }
 0x461   :  { %4982 = vmatpush1.bf16.msra.mxu0 %v6687_v18  ;;  %v6749_v18 = vld [vmem:[#allocation9 + $0x5c4] ss:$16 sps:$4 sm:$0xff]  }
 0x462   :  { %5194 = vmatpush1.bf16.msra.mxu1 %v6690_v47  ;;  %4983 = vmatprep.subr.bf16.mxu0 %v6695_v39  ;;  %v7443_v47 = vrot.slane %v7416_v49, %v1535_v26  ;;  %v6752_v39 = vld [vmem:[#allocation9 + $0x5cc] ss:$16 sps:$4 sm:$0xff]  }
 0x463   :  { %5195 = vmatprep.subr.bf16.mxu1 %v6698_v11  ;;  %v7446_v11 = vrot.slane %v7416_v49, %v1543_v32 }
 0x465   :  { %4984 = vmatpush1.bf16.msra.mxu0 %v6693_v48  ;;  %v7449_v48 = vrot.slane %v7416_v49, %v1539_v12 }
 0x466   :  { %5196 = vmatpush1.bf16.msra.mxu1 %v6696_v31  ;;  %4985 = vmatprep.subr.bf16.mxu0 %v6701_v57  ;;  %v7452_v31 = vrot.slane %v7416_v49, %v1547_v45  ;;  %v6759_v45 = vld [vmem:[#allocation9 + $0x600] ss:$16 sps:$4 sm:$0xff]  }
 0x467   :  { %5197 = vmatprep.subr.bf16.mxu1 %v6704_v61  ;;  %v6750_v61 = vld [vmem:[#allocation9 + $0x5c8] ss:$16 sps:$4 sm:$0xff]  }
 0x469   :  { %4986 = vmatpush1.bf16.msra.mxu0 %v6699_v19  ;;  %v6755_v19 = vld [vmem:[#allocation9 + $0x5e4] ss:$16 sps:$4 sm:$0xff]  }
 0x46a   :  { %5198 = vmatpush1.bf16.msra.mxu1 %v6702_v62  ;;  %4987 = vmatprep.subr.bf16.mxu0 %v6707_v1 }
 0x46b   :  { %5199 = vmatprep.subr.bf16.mxu1 %v6710_v2 }
 0x46d   :  { %4988 = vmatpush1.bf16.msra.mxu0 %v6705_v46  ;;  %v6758_v46 = vld [vmem:[#allocation9 + $0x5ec] ss:$16 sps:$4 sm:$0xff]  }
 0x46e   :  { %5200 = vmatpush1.bf16.msra.mxu1 %v6708_v22  ;;  %4989 = vmatprep.subr.bf16.mxu0 %v6713_v20 }
 0x46f   :  { %5201 = vmatprep.subr.bf16.mxu1 %v6716_v50 }
 0x471   :  { %4990 = vmatpush1.bf16.msra.mxu0 %v6711_v34 }
 0x472   :  { %5202 = vmatpush1.bf16.msra.mxu1 %v6714_v51  ;;  %4991 = vmatprep.subr.bf16.mxu0 %v6719_v41 }
 0x473   :  { %5203 = vmatprep.subr.bf16.mxu1 %v6722_v54 }
 0x475   :  { %4992 = vmatpush1.bf16.msra.mxu0 %v6717_v55  ;;  %v6753_v55 = vld [vmem:[#allocation9 + $0x5e0] ss:$16 sps:$4 sm:$0xff]  }
 0x476   :  { %5204 = vmatpush1.bf16.msra.mxu1 %v6720_v63  ;;  %4993 = vmatprep.subr.bf16.mxu0 %v6725_v40 }
 0x477   :  { %5205 = vmatprep.subr.bf16.mxu1 %v6728_v29 }
 0x479   :  { %4994 = vmatpush1.bf16.msra.mxu0 %v6723_v16  ;;  %v6756_v16 = vld [vmem:[#allocation9 + $0x5e8] ss:$16 sps:$4 sm:$0xff]  }
 0x47a   :  { %5206 = vmatpush1.bf16.msra.mxu1 %v6726_v24  ;;  %4995 = vmatprep.subr.bf16.mxu0 %v6731_v42  ;;  %v6761_v24 = vld [vmem:[#allocation9 + $0x604] ss:$16 sps:$4 sm:$0xff]  }
 0x47b   :  { %5207 = vmatprep.subr.bf16.mxu1 %v6734_v28 }
 0x47d   :  { %4996 = vmatpush1.bf16.msra.mxu0 %v6729_v23 }
 0x47e   :  { %5208 = vmatpush1.bf16.msra.mxu1 %v6732_v3  ;;  %4997 = vmatprep.subr.bf16.mxu0 %v6737_v7  ;;  %v6764_v3 = vld [vmem:[#allocation9 + $0x60c] ss:$16 sps:$4 sm:$0xff]  }
 0x47f   :  { %5209 = vmatprep.subr.bf16.mxu1 %v6740_v8 }
 0x481   :  { %4998 = vmatpush1.bf16.msra.mxu0 %v6735_v37 }
 0x482   :  { %5210 = vmatpush1.bf16.msra.mxu1 %v6738_v14  ;;  %4999 = vmatprep.subr.bf16.mxu0 %v6743_v21 }
 0x483   :  { %5211 = vmatprep.subr.bf16.mxu1 %v6746_v25 }
 0x485   :  { %5000 = vmatpush1.bf16.msra.mxu0 %v6741_v43 }
 0x486   :  { %5212 = vmatpush1.bf16.msra.mxu1 %v6744_v13  ;;  %v3136_v57 = vpop.f32.mrb[16].mxu0  ;;  %5001 = vmatprep.subr.bf16.mxu0 %v6749_v18  ;;  %v6762_v13 = vld [vmem:[#allocation9 + $0x608] ss:$16 sps:$4 sm:$0xff]  }
 0x487   :  { %v6129_v62 = vadd.f32 %v3136_v57, %v7443_v47  ;;  %v3242_v1 = vpop.f32.mrb[16].mxu1  ;;  %v3138_v2 = vpop.f32.mrb[17].mxu0  ;;  %5213 = vmatprep.subr.bf16.mxu1 %v6752_v39 }
 0x488   :  { %v6137_v22 = vadd.f32 %v3242_v1, %v7446_v11  ;;  %v6130_v20 = vadd.f32 %v3138_v2, %v7449_v48  ;;  %v3244_v50 = vpop.f32.mrb[17].mxu1  ;;  %v3140_v34 = vpop.f32.mrb[18].mxu0 }
 0x489   :  { %v6138_v49 = vadd.f32 %v3244_v50, %v7452_v31  ;;  %v6131_v51 = vadd.f32 %v3140_v34, %v7443_v47  ;;  %v3246_v41 = vpop.f32.mrb[18].mxu1  ;;  %v3142_v54 = vpop.f32.mrb[19].mxu0  ;;  %5002 = vmatpush1.bf16.msra.mxu0 %v6747_v27  ;;  %v3265_v42 = vmax.f32 %v6129_v62, 0.0 }
 0x48a   :  { %v6139_v63 = vadd.f32 %v3246_v41, %v7446_v11  ;;  %v6132_v40 = vadd.f32 %v3142_v54, %v7449_v48  ;;  %v3248_v29 = vpop.f32.mrb[19].mxu1  ;;  %5214 = vmatpush1.bf16.msra.mxu1 %v6750_v61  ;;  %5003 = vmatprep.subr.bf16.mxu0 %v6755_v19  ;;  %v3267_v7 = vmax.f32 %v6137_v22, 0.0  ;;  %v3266_v8 = vmax.f32 %v6130_v20, 0.0  ;;  %v6767_v61 = vld [vmem:[#allocation9 + $0x624] ss:$16 sps:$4 sm:$0xff]  }
 0x48b   :  { %v3273_v28 = vmax.f32 %v6131_v51, 0.0  ;;  %v6140_v23 = vadd.f32 %v3248_v29, %v7452_v31  ;;  %5215 = vmatprep.subr.bf16.mxu1 %v6758_v46  ;;  %v3268_v21 = vmax.f32 %v6138_v49, 0.0  ;;  %v6770_v19 = vld [vmem:[#allocation9 + $0x62c] ss:$16 sps:$4 sm:$0xff]   ;;  %v6765_v54 = vld [vmem:[#allocation9 + $0x620] ss:$16 sps:$4 sm:$0xff]  }
 0x48c   :  { %v3275_v37 = vmax.f32 %v6139_v63, 0.0  ;;  %v3274_v14 = vmax.f32 %v6132_v40, 0.0 }
 0x48d   :  { %v3297_v25 = vpack.c.bf16 %v3273_v28, %v3265_v42  ;;  %v3276_v26 = vmax.f32 %v6140_v23, 0.0  ;;  %5004 = vmatpush1.bf16.msra.mxu0 %v6753_v55  ;;  %v6768_v55 = vld [vmem:[#allocation9 + $0x628] ss:$16 sps:$4 sm:$0xff]  }
 0x48e   :  { %v7462_v32 = vpack.c.bf16 %v3275_v37, %v3267_v7  ;;  %v3298_v12 = vpack.c.bf16 %v3274_v14, %v3266_v8  ;;  %5216 = vmatpush1.bf16.msra.mxu1 %v6756_v16  ;;  %v3146_v43 = vpop.f32.mrb[20].mxu0  ;;  %5026 = vmatprep.subr.bf16.mxu0 %v6761_v24  ;;  %v6776_v16 = vld [vmem:[#allocation9 + $0x64c] ss:$16 sps:$4 sm:$0xff]   ;;  %v6771_v37 = vld [vmem:[#allocation9 + $0x640] ss:$16 sps:$4 sm:$0xff]  }
 0x48f   :  { %v3300_v18 = vpack.c.bf16 %v3276_v26, %v3268_v21  ;;  %v6133_v39 = vadd.f32 %v3146_v43, %v7443_v47  ;;  %v3252_v27 = vpop.f32.mrb[20].mxu1  ;;  %v3148_v57 = vpop.f32.mrb[21].mxu0  ;;  %5238 = vmatprep.subr.bf16.mxu1 %v6764_v3  ;;  %v6774_v14 = vld [vmem:[#allocation9 + $0x648] ss:$16 sps:$4 sm:$0xff]   ;;  %v6777_v26 = vld [vmem:[#allocation9 + $0x660] ss:$16 sps:$4 sm:$0xff]  }
 0x490   :  { %v6141_v62 = vadd.f32 %v3252_v27, %v7446_v11  ;;  %v6134_v1 = vadd.f32 %v3148_v57, %v7449_v48  ;;  %v3254_v2 = vpop.f32.mrb[21].mxu1  ;;  %v3150_v46 = vpop.f32.mrb[22].mxu0  ;;  %5005 = vmatprep.mubr.bf16.mxu0 %v3298_v12  ;;  %5217 = vmatprep.mubr.bf16.mxu1 %v3298_v12  ;;  %v6780_v12 = vld [vmem:[#allocation9 + $0x668] ss:$16 sps:$4 sm:$0xff]   ;;  %v6785_v43 = vld [vmem:[#allocation9 + $0x684] ss:$16 sps:$4 sm:$0xff]  }
 0x491   :  { %v6142_v22 = vadd.f32 %v3254_v2, %v7452_v31  ;;  %v6135_v20 = vadd.f32 %v3150_v46, %v7443_v47  ;;  %v3256_v50 = vpop.f32.mrb[22].mxu1  ;;  %v3152_v34 = vpop.f32.mrb[23].mxu0  ;;  %5006 = vmatmul.mubr.bf16.vlgmr.msra.gmra.mrb[24].mxu0 %v3297_v25  ;;  %5218 = vmatmul.mubr.bf16.vlgmr.msra.gmra.mrb[24].mxu1 %v3297_v25  ;;  %v3281_v63 = vmax.f32 %v6133_v39, 0.0  ;;  %v6773_v47 = vld [vmem:[#allocation9 + $0x644] ss:$16 sps:$4 sm:$0xff]  }
 0x492   :  { %v6143_v49 = vadd.f32 %v3256_v50, %v7446_v11  ;;  %v6136_v51 = vadd.f32 %v3152_v34, %v7449_v48  ;;  %v3258_v41 = vpop.f32.mrb[23].mxu1  ;;  %5027 = vmatpush1.bf16.msra.mxu0 %v6759_v45  ;;  %5239 = vmatpush1.bf16.msra.mxu1 %v6762_v13  ;;  %v3283_v24 = vmax.f32 %v6141_v62, 0.0  ;;  %v3282_v42 = vmax.f32 %v6134_v1, 0.0  ;;  %v6782_v25 = vld [vmem:[#allocation9 + $0x66c] ss:$16 sps:$4 sm:$0xff]  }
 0x493   :  { %v3289_v40 = vmax.f32 %v6135_v20, 0.0  ;;  %v6144_v29 = vadd.f32 %v3258_v41, %v7452_v31  ;;  %5028 = vmatprep.subr.bf16.mxu0 %v6767_v61  ;;  %5240 = vmatprep.subr.bf16.mxu1 %v6770_v19  ;;  %v3284_v11 = vmax.f32 %v6142_v22, 0.0  ;;  %v6779_v31 = vld [vmem:[#allocation9 + $0x664] ss:$16 sps:$4 sm:$0xff]   ;;  %v6788_v45 = vld [vmem:[#allocation9 + $0x68c] ss:$16 sps:$4 sm:$0xff]  }
 0x494   :  { %v3291_v28 = vmax.f32 %v6143_v49, 0.0  ;;  %v3290_v23 = vmax.f32 %v6136_v51, 0.0  ;;  %v6783_v13 = vld [vmem:[#allocation9 + $0x680] ss:$16 sps:$4 sm:$0xff]   ;;  %v6786_v39 = vld [vmem:[#allocation9 + $0x688] ss:$16 sps:$4 sm:$0xff]  }
 0x495   :  { %v3305_v3 = vpack.c.bf16 %v3289_v40, %v3281_v63  ;;  %v3292_v48 = vmax.f32 %v6144_v29, 0.0  ;;  %v6791_v27 = vld [vmem:[#allocation9 + $0x6a4] ss:$16 sps:$4 sm:$0xff]   ;;  %v6794_v57 = vld [vmem:[#allocation9 + $0x6ac] ss:$16 sps:$4 sm:$0xff]  }
 0x496   :  { %v7472_v7 = vpack.c.bf16 %v3291_v28, %v3283_v24  ;;  %v3306_v8 = vpack.c.bf16 %v3290_v23, %v3282_v42  ;;  %5029 = vmatpush1.bf16.msra.mxu0 %v6765_v54  ;;  %5241 = vmatpush1.bf16.msra.mxu1 %v6768_v55  ;;  %v6789_v61 = vld [vmem:[#allocation9 + $0x6a0] ss:$16 sps:$4 sm:$0xff]   ;;  %v6792_v19 = vld [vmem:[#allocation9 + $0x6a8] ss:$16 sps:$4 sm:$0xff]   ;;  %v6797_v62 = vld [vmem:[#allocation9 + $0x6c4] ss:$16 sps:$4 sm:$0xff]  }
 0x497   :  { %v7474_v21 = vpack.c.bf16 %v3292_v48, %v3284_v11  ;;  %5030 = vmatprep.subr.bf16.mxu0 %v6773_v47  ;;  %5242 = vmatprep.subr.bf16.mxu1 %v6776_v16  ;;  %v6795_v1 = vld [vmem:[#allocation9 + $0x6c0] ss:$16 sps:$4 sm:$0xff]   ;;  %v6798_v2 = vld [vmem:[#allocation9 + $0x6c8] ss:$16 sps:$4 sm:$0xff]   ;;  %v6803_v46 = vld [vmem:[#allocation9 + $0x6e4] ss:$16 sps:$4 sm:$0xff]  }
 0x498   :  { %5015 = vmatprep.mubr.bf16.mxu0 %v3306_v8  ;;  %5227 = vmatprep.mubr.bf16.mxu1 %v3306_v8  ;;  %v6806_v22 = vld [vmem:[#allocation9 + $0x6ec] ss:$16 sps:$4 sm:$0xff]   ;;  %v6801_v20 = vld [vmem:[#allocation9 + $0x6e0] ss:$16 sps:$4 sm:$0xff]   ;;  %v6804_v50 = vld [vmem:[#allocation9 + $0x6e8] ss:$16 sps:$4 sm:$0xff]  }
 0x499   :  { %5016 = vmatmul.mubr.bf16.gmra.mrb[28].mxu0 %v3305_v3  ;;  %5228 = vmatmul.mubr.bf16.gmra.mrb[28].mxu1 %v3305_v3  ;;  %v6809_v34 = vld [vmem:[#allocation9 + $0x704] ss:$16 sps:$4 sm:$0xff]   ;;  %v6812_v49 = vld [vmem:[#allocation9 + $0x70c] ss:$16 sps:$4 sm:$0xff]   ;;  %v6807_v51 = vld [vmem:[#allocation9 + $0x700] ss:$16 sps:$4 sm:$0xff]  }
 0x49a   :  { %5031 = vmatpush1.bf16.msra.mxu0 %v6771_v37  ;;  %5243 = vmatpush1.bf16.msra.mxu1 %v6774_v14  ;;  %v6810_v41 = vld [vmem:[#allocation9 + $0x708] ss:$16 sps:$4 sm:$0xff]   ;;  %v6815_v54 = vld [vmem:[#allocation9 + $0x724] ss:$16 sps:$4 sm:$0xff]   ;;  %v6818_v55 = vld [vmem:[#allocation9 + $0x72c] ss:$16 sps:$4 sm:$0xff]  }
 0x49b   :  { %5058 = vmatprep.mubr.bf16.mxu0 %v3300_v18  ;;  %5270 = vmatprep.mubr.bf16.mxu1 %v3300_v18  ;;  %v6800_v18 = vld [vmem:[#allocation9 + $0x6cc] ss:$16 sps:$4 sm:$0xff]   ;;  %v6813_v63 = vld [vmem:[#allocation9 + $0x720] ss:$16 sps:$4 sm:$0xff]   ;;  %v6816_v40 = vld [vmem:[#allocation9 + $0x728] ss:$16 sps:$4 sm:$0xff]  }
 0x49c   :  { %5032 = vmatprep.subr.bf16.mxu0 %v6779_v31  ;;  %5244 = vmatprep.subr.bf16.mxu1 %v6782_v25  ;;  %v6821_v29 = vld [vmem:[#allocation9 + $0x744] ss:$16 sps:$4 sm:$0xff]   ;;  %v6824_v47 = vld [vmem:[#allocation9 + $0x74c] ss:$16 sps:$4 sm:$0xff]   ;;  %v6819_v16 = vld [vmem:[#allocation9 + $0x740] ss:$16 sps:$4 sm:$0xff]  }
 0x49d   :  { %v6822_v24 = vld [vmem:[#allocation9 + $0x748] ss:$16 sps:$4 sm:$0xff]   ;;  %v6827_v42 = vld [vmem:[#allocation9 + $0x764] ss:$16 sps:$4 sm:$0xff]   ;;  %v6830_v28 = vld [vmem:[#allocation9 + $0x76c] ss:$16 sps:$4 sm:$0xff]  }
 0x49e   :  { %5033 = vmatpush1.bf16.msra.mxu0 %v6777_v26  ;;  %5245 = vmatpush1.bf16.msra.mxu1 %v6780_v12  ;;  %v6825_v23 = vld [vmem:[#allocation9 + $0x760] ss:$16 sps:$4 sm:$0xff]   ;;  %v6828_v11 = vld [vmem:[#allocation9 + $0x768] ss:$16 sps:$4 sm:$0xff]   ;;  %v6833_v3 = vld [vmem:[#allocation9 + $0x784] ss:$16 sps:$4 sm:$0xff]  }
 0x49f   :  { %5034 = vmatprep.subr.bf16.mxu0 %v6785_v43  ;;  %5246 = vmatprep.subr.bf16.mxu1 %v6788_v45  ;;  %v6836_v48 = vld [vmem:[#allocation9 + $0x78c] ss:$16 sps:$4 sm:$0xff]   ;;  %v6831_v8 = vld [vmem:[#allocation9 + $0x780] ss:$16 sps:$4 sm:$0xff]   ;;  %v6834_v37 = vld [vmem:[#allocation9 + $0x788] ss:$16 sps:$4 sm:$0xff]  }
 0x4a0   :  { %v6839_v14 = vld [vmem:[#allocation9 + $0x7a4] ss:$16 sps:$4 sm:$0xff]   ;;  %v6842_v31 = vld [vmem:[#allocation9 + $0x7ac] ss:$16 sps:$4 sm:$0xff]   ;;  %v6837_v25 = vld [vmem:[#allocation9 + $0x7a0] ss:$16 sps:$4 sm:$0xff]  }
 0x4a1   :  { %v6840_v26 = vld [vmem:[#allocation9 + $0x7a8] ss:$16 sps:$4 sm:$0xff]   ;;  %v6845_v12 = vld [vmem:[#allocation9 + $0x7c4] ss:$16 sps:$4 sm:$0xff]   ;;  %v6848_v43 = vld [vmem:[#allocation9 + $0x7cc] ss:$16 sps:$4 sm:$0xff]  }
 0x4a2   :  { %5035 = vmatpush1.bf16.msra.mxu0 %v6783_v13  ;;  %5247 = vmatpush1.bf16.msra.mxu1 %v6786_v39  ;;  %v6843_v45 = vld [vmem:[#allocation9 + $0x7c0] ss:$16 sps:$4 sm:$0xff]   ;;  %v6846_v13 = vld [vmem:[#allocation9 + $0x7c8] ss:$16 sps:$4 sm:$0xff]   ;;  %v6851_v39 = vld [vmem:[#allocation9 + $0x7e4] ss:$16 sps:$4 sm:$0xff]  }
 0x4a3   :  { %5036 = vmatprep.subr.bf16.mxu0 %v6791_v27  ;;  %5248 = vmatprep.subr.bf16.mxu1 %v6794_v57  ;;  %v6854_v27 = vld [vmem:[#allocation9 + $0x7ec] ss:$16 sps:$4 sm:$0xff]   ;;  %v6849_v57 = vld [vmem:[#allocation9 + $0x7e0] ss:$16 sps:$4 sm:$0xff]  }
 0x4a6   :  { %5037 = vmatpush1.bf16.msra.mxu0 %v6789_v61  ;;  %5249 = vmatpush1.bf16.msra.mxu1 %v6792_v19  ;;  %v6852_v61 = vld [vmem:[#allocation9 + $0x7e8] ss:$16 sps:$4 sm:$0xff]   ;;  %v3565_v19 = vld [vmem:[%s7640_s6] sm:$0xf] }
 0x4a7   :  { %5038 = vmatprep.subr.bf16.mxu0 %v6797_v62  ;;  %5250 = vmatprep.subr.bf16.mxu1 %v6800_v18  ;;  %v7486_v62 = vrot.slane %v3565_v19, %v7160_v30  ;;  %v7489_v18 = vrot.slane %v3565_v19, %v7163_v33 }
 0x4aa   :  { %5039 = vmatpush1.bf16.msra.mxu0 %v6795_v1  ;;  %5251 = vmatpush1.bf16.msra.mxu1 %v6798_v2  ;;  %v7495_v1 = vrot.slane %v3565_v19, %v7172_v36 }
 0x4ab   :  { %5040 = vmatprep.subr.bf16.mxu0 %v6803_v46  ;;  %5252 = vmatprep.subr.bf16.mxu1 %v6806_v22 }
 0x4ae   :  { %5041 = vmatpush1.bf16.msra.mxu0 %v6801_v20  ;;  %5253 = vmatpush1.bf16.msra.mxu1 %v6804_v50 }
 0x4af   :  { %5042 = vmatprep.subr.bf16.mxu0 %v6809_v34  ;;  %5254 = vmatprep.subr.bf16.mxu1 %v6812_v49 }
 0x4b2   :  { %5043 = vmatpush1.bf16.msra.mxu0 %v6807_v51  ;;  %5255 = vmatpush1.bf16.msra.mxu1 %v6810_v41 }
 0x4b3   :  { %5044 = vmatprep.subr.bf16.mxu0 %v6815_v54  ;;  %5256 = vmatprep.subr.bf16.mxu1 %v6818_v55 }
 0x4b6   :  { %5045 = vmatpush1.bf16.msra.mxu0 %v6813_v63  ;;  %5257 = vmatpush1.bf16.msra.mxu1 %v6816_v40 }
 0x4b7   :  { %5046 = vmatprep.subr.bf16.mxu0 %v6821_v29  ;;  %5258 = vmatprep.subr.bf16.mxu1 %v6824_v47 }
 0x4ba   :  { %5047 = vmatpush1.bf16.msra.mxu0 %v6819_v16  ;;  %5259 = vmatpush1.bf16.msra.mxu1 %v6822_v24 }
 0x4bb   :  { %5048 = vmatprep.subr.bf16.mxu0 %v6827_v42  ;;  %5260 = vmatprep.subr.bf16.mxu1 %v6830_v28 }
 0x4be   :  { %5049 = vmatpush1.bf16.msra.mxu0 %v6825_v23  ;;  %5261 = vmatpush1.bf16.msra.mxu1 %v6828_v11 }
 0x4bf   :  { %5050 = vmatprep.subr.bf16.mxu0 %v6833_v3  ;;  %5262 = vmatprep.subr.bf16.mxu1 %v6836_v48 }
 0x4c2   :  { %5051 = vmatpush1.bf16.msra.mxu0 %v6831_v8  ;;  %5263 = vmatpush1.bf16.msra.mxu1 %v6834_v37 }
 0x4c3   :  { %5052 = vmatprep.subr.bf16.mxu0 %v6839_v14  ;;  %5264 = vmatprep.subr.bf16.mxu1 %v6842_v31 }
 0x4c6   :  { %5053 = vmatpush1.bf16.msra.mxu0 %v6837_v25  ;;  %5265 = vmatpush1.bf16.msra.mxu1 %v6840_v26 }
 0x4c7   :  { %5054 = vmatprep.subr.bf16.mxu0 %v6845_v12  ;;  %5266 = vmatprep.subr.bf16.mxu1 %v6848_v43 }
 0x4ca   :  { %5055 = vmatpush1.bf16.msra.mxu0 %v6843_v45  ;;  %5267 = vmatpush1.bf16.msra.mxu1 %v6846_v13 }
 0x4cb   :  { %5056 = vmatprep.subr.bf16.mxu0 %v6851_v39  ;;  %5268 = vmatprep.subr.bf16.mxu1 %v6854_v27 }
 0x4ce   :  { %5057 = vmatpush1.bf16.msra.mxu0 %v6849_v57  ;;  %5269 = vmatpush1.bf16.msra.mxu1 %v6852_v61 }
 0x4d1   :  { %5059 = vmatmul.mubr.bf16.vlgmr.msra.gmra.mrb[24].mxu0 %v7462_v32  ;;  %5271 = vmatmul.mubr.bf16.vlgmr.msra.gmra.mrb[24].mxu1 %v7462_v32  ;;  %v7492_v32 = vrot.slane %v3565_v19, %v7169_v35 }
 0x4d2   :  { %5068 = vmatprep.mubr.bf16.mxu0 %v7474_v21  ;;  %5280 = vmatprep.mubr.bf16.mxu1 %v7474_v21 }
 0x4d9   :  { %5069 = vmatmul.mubr.bf16.gmra.mrb[28].mxu0 %v7472_v7  ;;  %5281 = vmatmul.mubr.bf16.gmra.mrb[28].mxu1 %v7472_v7 }
 0x5a4   :  { %v5060_v21 = vpop.f32.mrb[24].mxu0  ;;  %v5272_v2 = vpop.f32.mrb[24].mxu1 }
 0x5a5   :  { %v6145_v7 = vadd.f32 %v5060_v21, %v7486_v62  ;;  %v6153_v46 = vadd.f32 %v5272_v2, %v7489_v18  ;;  %v5062_v22 = vpop.f32.mrb[25].mxu0  ;;  %v5274_v20 = vpop.f32.mrb[25].mxu1 }
 0x5a6   :  { %v6146_v30 = vadd.f32 %v5062_v22, %v7492_v32  ;;  %v6154_v50 = vadd.f32 %v5274_v20, %v7495_v1  ;;  %v5064_v33 = vpop.f32.mrb[26].mxu0  ;;  %v5276_v34 = vpop.f32.mrb[26].mxu1 }
 0x5a7   :  { %v7502_v35 = vadd.f32 %v6145_v7, %v7191_v53  ;;  %v5066_v49 = vpop.f32.mrb[27].mxu0  ;;  %v5278_v36 = vpop.f32.mrb[27].mxu1  ;;  %v7505_v51 = vadd.f32 %v6153_v46, %v7193_v56  ;;  %v6147_v54 = vadd.f32 %v5064_v33, %v7486_v62  ;;  %v6155_v29 = vadd.f32 %v5276_v34, %v7489_v18 }
 0x5a8   :  { %v7508_v41 = vadd.f32 %v6146_v30, %v7195_v58  ;;  %v7518_v40 = vadd.f32 %v6154_v50, %v7205_v4  ;;  %v6148_v56 = vadd.f32 %v5066_v49, %v7492_v32  ;;  %v6156_v23 = vadd.f32 %v5278_v36, %v7495_v1 }
 0x5a9   :  { %v5332_v55 = vmul.f32 %v7502_v35, %v7502_v35  ;;  %v5334_v58 = vmul.f32 %v7505_v51, %v7505_v51  ;;  %v7526_v24 = vadd.f32 %v6147_v54, %v7213_v6  ;;  %v7536_v6 = vadd.f32 %v6155_v29, %v7222_v5 }
 0x5aa   :  { %v5307_v63 = vadd.f32 %v7508_v41, %v7502_v35  ;;  %v5333_v53 = vmul.f32 %v7508_v41, %v7508_v41  ;;  %v5335_v48 = vmul.f32 %v7518_v40, %v7518_v40  ;;  %v7533_v37 = vadd.f32 %v6148_v56, %v7219_v15 }
 0x5ab   :  { %v5336_v45 = vmul.f32 %v7526_v24, %v7526_v24  ;;  %v7543_v39 = vadd.f32 %v6156_v23, %v7229_v44  ;;  %v5338_v19 = vmul.f32 %v7536_v6, %v7536_v6 }
 0x5ac   :  { %v5348_v47 = vadd.f32 %v5333_v53, %v5332_v55  ;;  %v5308_v16 = vadd.f32 %v5307_v63, %v7505_v51  ;;  %v5070_v42 = vpop.f32.mrb[28].mxu0  ;;  %v5282_v28 = vpop.f32.mrb[28].mxu1  ;;  %v5337_v5 = vmul.f32 %v7533_v37, %v7533_v37 }
 0x5ad   :  { %v5072_v11 = vpop.f32.mrb[29].mxu0  ;;  %v5284_v4 = vpop.f32.mrb[29].mxu1  ;;  %v6149_v13 = vadd.f32 %v5070_v42, %v7486_v62  ;;  %v6157_v61 = vadd.f32 %v5282_v28, %v7489_v18  ;;  %v5339_v22 = vmul.f32 %v7543_v39, %v7543_v39 }
 0x5ae   :  { %v5309_v3 = vadd.f32 %v5308_v16, %v7518_v40  ;;  %v5349_v8 = vadd.f32 %v5348_v47, %v5334_v58  ;;  %v5074_v14 = vpop.f32.mrb[30].mxu0  ;;  %v5286_v31 = vpop.f32.mrb[30].mxu1  ;;  %v6150_v57 = vadd.f32 %v5072_v11, %v7492_v32  ;;  %v6158_v44 = vadd.f32 %v5284_v4, %v7495_v1 }
 0x5af   :  { %v5076_v25 = vpop.f32.mrb[31].mxu0  ;;  %v5288_v26 = vpop.f32.mrb[31].mxu1  ;;  %v7554_v7 = vadd.f32 %v6149_v13, %v7240_v52  ;;  %v7564_v50 = vadd.f32 %v6157_v61, %v7250_v60  ;;  %v6151_v49 = vadd.f32 %v5074_v14, %v7486_v62  ;;  %v6159_v63 = vadd.f32 %v5286_v31, %v7489_v18 }
 0x5b0   :  { %v5350_v12 = vadd.f32 %v5349_v8, %v5335_v48  ;;  %v5310_v43 = vadd.f32 %v5309_v3, %v7526_v24  ;;  %v7561_v30 = vadd.f32 %v6150_v57, %v7247_v59  ;;  %v7571_v36 = vadd.f32 %v6158_v44, %v7257_v0 }
 0x5b1   :  { %v5340_v52 = vmul.f32 %v7554_v7, %v7554_v7  ;;  %v6152_v60 = vadd.f32 %v5076_v25, %v7492_v32  ;;  %v5342_v53 = vmul.f32 %v7564_v50, %v7564_v50  ;;  %v7582_v62 = vadd.f32 %v6151_v49, %v7267_v9 }
 0x5b2   :  { %v5351_v15 = vadd.f32 %v5350_v12, %v5336_v45  ;;  %v5311_v27 = vadd.f32 %v5310_v43, %v7533_v37  ;;  %v5341_v59 = vmul.f32 %v7561_v30, %v7561_v30  ;;  %v5343_v58 = vmul.f32 %v7571_v36, %v7571_v36 }
 0x5b3   :  { %v7588_v16 = vadd.f32 %v6152_v60, %v7273_v10  ;;  %v7591_v18 = vadd.f32 %v6159_v63, %v7277_v38  ;;  %v5344_v42 = vmul.f32 %v7582_v62, %v7582_v62  ;;  %v6160_v28 = vadd.f32 %v5288_v26, %v7495_v1 }
 0x5b4   :  { %v5352_v21 = vadd.f32 %v5351_v15, %v5337_v5  ;;  %v5312_v2 = vadd.f32 %v5311_v27, %v7536_v6 }
 0x5b5   :  { %v5345_v23 = vmul.f32 %v7588_v16, %v7588_v16  ;;  %v5306_v10 = vadd.f32 %v6160_v28, %v7287_v17  ;;  %v5346_v38 = vmul.f32 %v7591_v18, %v7591_v18 }
 0x5b6   :  { %v5313_v46 = vadd.f32 %v5312_v2, %v7543_v39  ;;  %v5353_v20 = vadd.f32 %v5352_v21, %v5338_v19 }
 0x5b7   :  { %v5347_v1 = vmul.f32 %v5306_v10, %v5306_v10 }
 0x5b8   :  { %v5354_v33 = vadd.f32 %v5353_v20, %v5339_v22  ;;  %v5314_v34 = vadd.f32 %v5313_v46, %v7554_v7 }
 0x5ba   :  { %v5355_v54 = vadd.f32 %v5354_v33, %v5340_v52  ;;  %v5315_v55 = vadd.f32 %v5314_v34, %v7561_v30 }
 0x5bc   :  { %v5356_v56 = vadd.f32 %v5355_v54, %v5341_v59  ;;  %v5316_v29 = vadd.f32 %v5315_v55, %v7564_v50 }
 0x5be   :  { %v5317_v0 = vadd.f32 %v5316_v29, %v7571_v36  ;;  %v5357_v47 = vadd.f32 %v5356_v56, %v5342_v53 }
 0x5c0   :  { %v5358_v32 = vadd.f32 %v5357_v47, %v5343_v58  ;;  %v5318_v9 = vadd.f32 %v5317_v0, %v7582_v62 }
 0x5c2   :  { %v5319_v11 = vadd.f32 %v5318_v9, %v7588_v16  ;;  %v5359_v4 = vadd.f32 %v5358_v32, %v5344_v42 }
 0x5c4   :  { %v5320_v3 = vadd.f32 %v5319_v11, %v7591_v18  ;;  %v5360_v48 = vadd.f32 %v5359_v4, %v5345_v23 }
 0x5c6   :  { %v5321_v8 = vadd.f32 %v5320_v3, %v5306_v10  ;;  %v5361_v14 = vadd.f32 %v5360_v48, %v5346_v38 }
 0x5c8   :  { %5322 = vadd.xlane.f32.xlu1 %v5321_v8  ;;  %v5362_v31 = vadd.f32 %v5361_v14, %v5347_v1 }
 0x5cc   :  { %5363 = vadd.xlane.f32.xlu1 %v5362_v31 }
 0x655   :  { %v5323_v25 = vpop.xlane.xlu1 %5322 }
 0x656   :  { %v5324_v26 = vrot.slane %v5323_v25, 4 }
 0x658   :  { %v5325_v12 = vadd.f32 %v5324_v26, %v5323_v25 }
 0x659   :  { %v5364_v43 = vpop.xlane.xlu1 %5363 }
 0x65a   :  { %v5326_v45 = vrot.slane %v5325_v12, 2  ;;  %v5365_v13 = vrot.slane %v5364_v43, 4 }
 0x65c   :  { %v5366_v15 = vadd.f32 %v5365_v13, %v5364_v43  ;;  %v5327_v17 = vadd.f32 %v5326_v45, %v5325_v12 }
 0x65e   :  { %v5367_v27 = vrot.slane %v5366_v15, 2  ;;  %v5328_v5 = vrot.slane %v5327_v17, 1 }
 0x660   :  { %v5368_v57 = vadd.f32 %v5367_v27, %v5366_v15  ;;  %v5329_v61 = vadd.f32 %v5328_v5, %v5327_v17 }
 0x662   :  { %6263 = vpush %v5329_v61  ;;  %v5369_v19 = vrot.slane %v5368_v57, 1 }
 0x664   :  { %v5370_v21 = vadd.f32 %v5369_v19, %v5368_v57 }
 0x666   :  { %6265 = vpush %v5370_v21 }
 0x693   :  { %s6264_s6 = spop %6263 }
 0x694   :  { %s5331_s12 = smul.f32 6.1035156e-05, %s6264_s6 }
 0x696   :  { %s5373_s3 = smul.f32 %s5331_s12, %s5331_s12 }
 0x697   :  { %s6266_s11 = spop %6265 }
 0x698   :  { %s5372_s14 = smul.f32 6.1035156e-05, %s6266_s11 }
 0x69a   :  { %s5374_s17 = ssub.f32 %s5372_s14, %s5373_s3 }
 0x69c   :  { %s5376_s18 = sadd.f32 1e-05, %s5374_s17 }
 0x69e   :  { %v5377_v2 = vstv %s5376_s18 }
 0x69f   :  { %6857 = vrsqrt.f32 %v5377_v2 }
 0x6a9   :  { %v6858_v44 = vpop.eup %6857 }
 0x6aa   :  { %6267 = vpush %v6858_v44 }
 0x6db   :  { %s6268_s5 = spop %6267 }
 0x6dc   :  { %s5380_s7 = smul.f32 %s6268_s5, %s6095_s19 }
 0x6de   :  { %s5382_s2 = smul.f32 %s5380_s7, %s5331_s12  ;;  %v5384_v46 = vstv %s5380_s7 }
 0x6df   :  { %v5385_v22 = vmul.f32 %v5384_v46, %v7502_v35  ;;  %v5386_v20 = vmul.f32 %v5384_v46, %v7508_v41  ;;  %v5387_v33 = vmul.f32 %v5384_v46, %v7505_v51  ;;  %v5388_v34 = vmul.f32 %v5384_v46, %v7518_v40 }
 0x6e0   :  { %s5383_s15 = ssub.f32 %s6096_s21, %s5382_s2  ;;  %v5389_v52 = vmul.f32 %v5384_v46, %v7526_v24  ;;  %v5390_v49 = vmul.f32 %v5384_v46, %v7533_v37  ;;  %v5391_v54 = vmul.f32 %v5384_v46, %v7536_v6  ;;  %v5392_v55 = vmul.f32 %v5384_v46, %v7543_v39 }
 0x6e1   :  { %v5393_v59 = vmul.f32 %v5384_v46, %v7554_v7  ;;  %v5394_v60 = vmul.f32 %v5384_v46, %v7561_v30  ;;  %v5395_v35 = vmul.f32 %v5384_v46, %v7564_v50  ;;  %v5396_v41 = vmul.f32 %v5384_v46, %v7571_v36 }
 0x6e2   :  { %v5397_v51 = vmul.f32 %v5384_v46, %v7582_v62  ;;  %v5398_v40 = vmul.f32 %v5384_v46, %v7588_v16  ;;  %v5399_v24 = vmul.f32 %v5384_v46, %v7591_v18  ;;  %v5400_v63 = vmul.f32 %v5384_v46, %v5306_v10 }
 0x6e3   :  { %v5401_v37 = vstv %s5383_s15 }
 0x6e4   :  { %v5402_v53 = vadd.f32 %v5401_v37, %v5385_v22  ;;  %v5403_v6 = vadd.f32 %v5401_v37, %v5386_v20  ;;  %v5404_v56 = vadd.f32 %v5401_v37, %v5387_v33  ;;  %v5405_v39 = vadd.f32 %v5401_v37, %v5388_v34 }
 0x6e5   :  { %v5406_v7 = vadd.f32 %v5401_v37, %v5389_v52  ;;  %v5407_v30 = vadd.f32 %v5401_v37, %v5390_v49  ;;  %v5408_v29 = vadd.f32 %v5401_v37, %v5391_v54  ;;  %v5409_v50 = vadd.f32 %v5401_v37, %v5392_v55 }
 0x6e6   :  { %v5410_v0 = vadd.f32 %v5401_v37, %v5393_v59  ;;  %v5411_v36 = vadd.f32 %v5401_v37, %v5394_v60  ;;  %v5412_v58 = vadd.f32 %v5401_v37, %v5395_v35  ;;  %v5413_v62 = vadd.f32 %v5401_v37, %v5396_v41  ;;  %5418 = vst [vmem:[#allocation12] sm:$0xff] %v5402_v53 }
 0x6e7   :  { %5419 = vst [vmem:[#allocation12 + $0x8] sm:$0xff] %v5403_v6  ;;  %5420 = vst [vmem:[#allocation12 + $0x10] sm:$0xff] %v5404_v56  ;;  %v5414_v47 = vadd.f32 %v5401_v37, %v5397_v51  ;;  %v5415_v16 = vadd.f32 %v5401_v37, %v5398_v40  ;;  %v5416_v18 = vadd.f32 %v5401_v37, %v5399_v24 }
 0x6e8   :  { %5421 = vst [vmem:[#allocation12 + $0x18] sm:$0xff] %v5405_v39  ;;  %v5417_v32 = vadd.f32 %v5401_v37, %v5400_v63  ;;  %5422 = vst [vmem:[#allocation12 + $0x20] sm:$0xff] %v5406_v7 }
 0x6e9   :  { %5423 = vst [vmem:[#allocation12 + $0x28] sm:$0xff] %v5407_v30  ;;  %5424 = vst [vmem:[#allocation12 + $0x30] sm:$0xff] %v5408_v29 }
 0x6ea   :  { %5425 = vst [vmem:[#allocation12 + $0x38] sm:$0xff] %v5409_v50  ;;  %5426 = vst [vmem:[#allocation12 + $0x40] sm:$0xff] %v5410_v0 }
 0x6eb   :  { %5427 = vst [vmem:[#allocation12 + $0x48] sm:$0xff] %v5411_v36  ;;  %5428 = vst [vmem:[#allocation12 + $0x50] sm:$0xff] %v5412_v58 }
 0x6ec   :  { %5429 = vst [vmem:[#allocation12 + $0x58] sm:$0xff] %v5413_v62  ;;  %5430 = vst [vmem:[#allocation12 + $0x60] sm:$0xff] %v5414_v47 }
 0x6ed   :  { %5431 = vst [vmem:[#allocation12 + $0x68] sm:$0xff] %v5415_v16  ;;  %5432 = vst [vmem:[#allocation12 + $0x70] sm:$0xff] %v5416_v18 }
 0x6ee   :  { %5433 = vst [vmem:[#allocation12 + $0x78] sm:$0xff] %v5417_v32 }
 0x6ef   :  { %6972 = shalt.err (!%p6969_p13)
}
 0x6f0   :  { %s6973_s20 = scalar_lea.hbm %s7642_s8, 2048 }
 0x6f1   :  { %p6974_p0 = scmp.ne.s32.totalorder %s7642_s8, %s6973_s20  ;;  %p6977_p1 = scmp.lt.u32.totalorder %s6973_s20, %s7642_s8 }
 0x6f3   :  { %p6979_p2 = pnand %p6977_p1, %p6974_p0 }
 0x6f5   :  { %6982 = shalt.err (!%p6979_p2)
}
 0x6f6   :  { %5445 = dma.vmem_to_hbm [thread:$0]  %s5440_s13, 2048, %s7642_s8, [#allocation4], %s6997_s1, %s6997_s1, %s6998_s28  }
 0x6f7   :  { %6991 = dma.done.wait [#allocation4], 2048  }
 0x6f8   :  { %6992 = vsyncadd [#allocation4], 4294965248 }
 0x6f9   :  { %5449 = vsyncpa [#allocation3], 1 }
 0x6fa   :  { %5450 = vsyncpa [#allocation7], 1 }
 0x6fb   :  { %5451 = vsyncpa [#allocation10], 1 }
 0x6fc   :  { %5452 = vsyncpa [#allocation4], 1 }
 0x6fd   :  { %5453 = vsyncpa [#allocation5], 1 }

</bundles_post_ra>
